<compile_context>
chip_gen: v7x
topology: tpu7x:2x2x1
jax: 0.10.0
libtpu: 0.0.40
codegen_flags: <defaults>
</compile_context>

<pallas_src>
import functools

import jax
import jax.numpy as jnp
from jax.experimental import pallas as pl
from jax.experimental.pallas import tpu as pltpu

K = 5              # conv kernel size
PAD = 2            # same padding for 5x5, stride 1
NEG_SLOPE = 0.01   # torch.nn.LeakyReLU default negative_slope
BN_EPS = 1e-5      # torch.nn.BatchNorm2d default eps
NUM_LAYERS = 5


def _net_kernel(x_ref, w_ref, scale_ref, bias_ref, mask_ref, out_ref, xp_ref,
                *, H, W):
    """Fused 5-layer network for one batch element.

    x_ref:     (1, C_MAX, H*WB)          flat zero-padded input (VMEM)
    w_ref:     (5, C_OUT, K*K*C_MAX)     im2col-layout conv weights
    scale_ref: (5, C_OUT, 1)             folded BN scale (ones for final layer)
    bias_ref:  (5, C_OUT, 1)             folded BN bias + conv bias
    mask_ref:  (1, H*WB)                 1.0 on valid columns, 0.0 on garbage
    out_ref:   (1, C_OUT, H*WB)
    xp_ref:    (C_MAX, (H+5)*WB) scratch padded activation buffer (flat)
    """
    WB = W + 2 * PAD            # padded row width (cols W..WB-1 are garbage)
    HWB = H * WB                # flattened compute slab width (lane dim)
    OFF = PAD * WB + PAD        # flat offset of the valid interior
    c_out = out_ref.shape[1]

    mask = mask_ref[...]                                   # (1, HWB)

    # Zero the whole padded buffer once; its border must stay zero for every
    # layer (we only ever write masked interiors afterwards).
    xp_ref[...] = jnp.zeros_like(xp_ref)
    # Load this batch element's (already flat, zero-padded) input.
    xp_ref[:, OFF:OFF + HWB] = x_ref[0]

    for layer in range(NUM_LAYERS):
        xflat = xp_ref[...]                                # (C_MAX, (H+5)*WB)
        # im2col: tap (kh, kw) == contiguous lane slice at offset kh*WB + kw.
        patches = jnp.concatenate(
            [xflat[:, kh * WB + kw: kh * WB + kw + HWB]
             for kh in range(K) for kw in range(K)],
            axis=0)                                        # (K*K*C_MAX, HWB)
        acc = jnp.dot(w_ref[layer], patches,
                      preferred_element_type=jnp.float32)  # (C_OUT, HWB)
        y = acc * scale_ref[layer] + bias_ref[layer]       # conv bias / BN fold
        if layer < NUM_LAYERS - 1:
            y = jnp.maximum(y, NEG_SLOPE * y)              # LeakyReLU(0.01)
            # Write back into the interior; masking zeroes the garbage columns
            # so they land exactly on the buffer's zero padding positions.
            xp_ref[:c_out, OFF:OFF + HWB] = y * mask
        else:
            out_ref[0] = 1.0 / (1.0 + jnp.exp(-y))         # Sigmoid


def net_forward(x_nchw, w2_all, scale_all, bias_all):
    """Forward pass matching Net.forward; input/output in PyTorch NCHW."""
    N, c_in, H, W = x_nchw.shape
    num_layers, c_out, kkc = w2_all.shape
    c_max = kkc // (K * K)
    WB = W + 2 * PAD
    HB = H + 2 * PAD + 1          # one extra row so flat tap reads stay in-bounds
    HWB = H * WB

    # Cheap one-time glue: zero-pad channels to C_MAX and width to WB, flatten
    # spatial so the kernel sees a lane-dense (C_MAX, H*WB) slab per image.
    xp = jnp.pad(x_nchw.astype(jnp.float32),
                 ((0, 0), (0, c_max - c_in), (0, 0), (0, WB - W)))
    x_flat = xp.reshape(N, c_max, HWB)
    mask = (jnp.arange(HWB, dtype=jnp.int32) % WB < W)
    mask = mask.astype(jnp.float32).reshape(1, HWB)

    kernel = functools.partial(_net_kernel, H=H, W=W)
    out_flat = pl.pallas_call(
        kernel,
        out_shape=jax.ShapeDtypeStruct((N, c_out, HWB), jnp.float32),
        grid=(N,),
        in_specs=[
            pl.BlockSpec((1, c_max, HWB), lambda b: (b, 0, 0)),
            pl.BlockSpec((num_layers, c_out, kkc), lambda b: (0, 0, 0)),
            pl.BlockSpec((num_layers, c_out, 1), lambda b: (0, 0, 0)),
            pl.BlockSpec((num_layers, c_out, 1), lambda b: (0, 0, 0)),
            pl.BlockSpec((1, HWB), lambda b: (0, 0)),
        ],
        out_specs=pl.BlockSpec((1, c_out, HWB), lambda b: (b, 0, 0)),
        scratch_shapes=[pltpu.VMEM((c_max, HB * WB), jnp.float32)],
        compiler_params=pltpu.CompilerParams(
            dimension_semantics=("parallel",)),
    )(x_flat, w2_all, scale_all, bias_all, mask)

    # Drop the garbage columns; result is already NCHW-ordered.
    return out_flat.reshape(N, c_out, H, WB)[:, :, :, :W]


def init_params(out_channel, key):
    """Deterministic synthetic parameters matching Net(out_channel).__init__,
    pre-packed into the kernel's im2col / folded-BN layout."""
    c_max = max(3, out_channel)
    cins = [3] + [out_channel] * (NUM_LAYERS - 1)
    w2_list, scale_list, bias_list = [], [], []
    for li, cin in enumerate(cins):
        key, k_w, k_b, k_g, k_be, k_m, k_v = jax.random.split(key, 7)
        # PyTorch layout (Cout, Cin, KH, KW)
        w_torch = 0.1 * jax.random.normal(k_w, (out_channel, cin, K, K),
                                          jnp.float32)
        b_conv = 0.1 * jax.random.normal(k_b, (out_channel,), jnp.float32)

        if li < NUM_LAYERS - 1:
            # BatchNorm2d in eval mode, folded into a per-channel affine.
            gamma = 1.0 + 0.1 * jax.random.normal(k_g, (out_channel,), jnp.float32)
            beta = 0.1 * jax.random.normal(k_be, (out_channel,), jnp.float32)
            run_mean = 0.1 * jax.random.normal(k_m, (out_channel,), jnp.float32)
            run_var = 1.0 + 0.1 * jnp.abs(
                jax.random.normal(k_v, (out_channel,), jnp.float32))
            scale = gamma / jnp.sqrt(run_var + BN_EPS)
            bias = (b_conv - run_mean) * scale + beta
        else:
            scale = jnp.ones((out_channel,), jnp.float32)
            bias = b_conv

        # (Cout, Cin, K, K) -> zero-pad Cin to C_MAX -> (Cout, K, K, C_MAX)
        # -> (Cout, K*K*C_MAX); column index = (kh*K + kw)*C_MAX + ci, matching
        # the in-kernel im2col row order.
        w_pad = jnp.zeros((out_channel, c_max, K, K), jnp.float32)
        w_pad = w_pad.at[:, :cin].set(w_torch)
        w2 = jnp.transpose(w_pad, (0, 2, 3, 1)).reshape(out_channel, K * K * c_max)

        w2_list.append(w2)
        scale_list.append(scale)
        bias_list.append(bias)

    w2_all = jnp.stack(w2_list)                       # (5, Cout, K*K*C_MAX)
    scale_all = jnp.stack(scale_list)[:, :, None]     # (5, Cout, 1)
    bias_all = jnp.stack(bias_list)[:, :, None]       # (5, Cout, 1)
    return w2_all, scale_all, bias_all


if __name__ == "__main__":
    out_channel = 8
    N, H, W = 2, 16, 16

    key = jax.random.PRNGKey(0)
    key, k_x = jax.random.split(key)
    x = jax.random.normal(k_x, (N, 3, H, W), jnp.float32)   # PyTorch NCHW input

    w2_all, scale_all, bias_all = init_params(out_channel, key)

    fwd = jax.jit(net_forward)
    out = fwd(x, w2_all, scale_all, bias_all)
    jax.block_until_ready(out)

    assert out.shape == (N, out_channel, H, W), out.shape
    assert bool(jnp.all(jnp.isfinite(out)))
    assert bool(jnp.all((out >= 0.0) & (out <= 1.0)))  # final sigmoid range
    print("KERNEL_OK")
</pallas_src>

<mosaic_0001>
module attributes {stable_mosaic.version = 11 : i64} {
  func.func @_net_kernel(%arg0: i32, %arg1: memref<1x8x320xf32, #tpu.memory_space<vmem>>, %arg2: memref<5x8x200xf32, #tpu.memory_space<vmem>>, %arg3: memref<5x8x1xf32, #tpu.memory_space<vmem>>, %arg4: memref<5x8x1xf32, #tpu.memory_space<vmem>>, %arg5: memref<1x320xf32, #tpu.memory_space<vmem>>, %arg6: memref<1x8x320xf32, #tpu.memory_space<vmem>>, %arg7: memref<8x420xf32, #tpu.memory_space<vmem>>) attributes {dimension_semantics = [#tpu.dimension_semantics<parallel>], iteration_bounds = array<i64: 2>, scalar_prefetch = 0 : i64, scratch_operands = 1 : i64, tpu.core_type = #tpu.core_type<tc>, window_params = [{transform_indices = @transform_0, window_bounds = array<i64: 1, 8, 320>}, {pipeline_mode = #tpu.pipeline_mode<synchronous>, transform_indices = @transform_1, window_bounds = array<i64: 5, 8, 200>}, {pipeline_mode = #tpu.pipeline_mode<synchronous>, transform_indices = @transform_2, window_bounds = array<i64: 5, 8, 1>}, {pipeline_mode = #tpu.pipeline_mode<synchronous>, transform_indices = @transform_3, window_bounds = array<i64: 5, 8, 1>}, {pipeline_mode = #tpu.pipeline_mode<synchronous>, transform_indices = @transform_4, window_bounds = array<i64: 1, 320>}, {transform_indices = @transform_5, window_bounds = array<i64: 1, 8, 320>}]} {
    %c0 = arith.constant 0 : index
    %c0_0 = arith.constant 0 : index
    %0 = vector.load %arg5[%c0, %c0_0] : memref<1x320xf32, #tpu.memory_space<vmem>>, vector<1x320xf32>
    %cst = arith.constant 0.000000e+00 : f32
    %1 = vector.broadcast %cst : f32 to vector<8x420xf32>
    %c0_1 = arith.constant 0 : index
    %c0_2 = arith.constant 0 : index
    %2 = vector.load %arg7[%c0_1, %c0_2] : memref<8x420xf32, #tpu.memory_space<vmem>>, vector<8x420xf32>
    tpu.vector_store %arg7[%c0_1, %c0_2], %1 {strides = array<i32>} : memref<8x420xf32, #tpu.memory_space<vmem>>, vector<8x420xf32>,
    %c0_3 = arith.constant 0 : index
    %c0_4 = arith.constant 0 : index
    %c0_5 = arith.constant 0 : index
    %3 = vector.load %arg1[%c0_3, %c0_4, %c0_5] : memref<1x8x320xf32, #tpu.memory_space<vmem>>, vector<1x8x320xf32>
    %4 = vector.shape_cast %3 : vector<1x8x320xf32> to vector<8x320xf32>
    %c0_6 = arith.constant 0 : index
    %c42 = arith.constant 42 : index
    %5 = vector.load %arg7[%c0_6, %c42] : memref<8x420xf32, #tpu.memory_space<vmem>>, vector<8x320xf32>
    tpu.vector_store %arg7[%c0_6, %c42], %4 {strides = array<i32>} : memref<8x420xf32, #tpu.memory_space<vmem>>, vector<8x320xf32>,
    %c0_7 = arith.constant 0 : index
    %c0_8 = arith.constant 0 : index
    %6 = vector.load %arg7[%c0_7, %c0_8] : memref<8x420xf32, #tpu.memory_space<vmem>>, vector<8x420xf32>
    %7 = vector.extract_strided_slice %6 {offsets = [0, 0], sizes = [8, 320], strides = [1, 1]} : vector<8x420xf32> to vector<8x320xf32>
    %8 = vector.extract_strided_slice %6 {offsets = [0, 1], sizes = [8, 320], strides = [1, 1]} : vector<8x420xf32> to vector<8x320xf32>
    %9 = vector.extract_strided_slice %6 {offsets = [0, 2], sizes = [8, 320], strides = [1, 1]} : vector<8x420xf32> to vector<8x320xf32>
    %10 = vector.extract_strided_slice %6 {offsets = [0, 3], sizes = [8, 320], strides = [1, 1]} : vector<8x420xf32> to vector<8x320xf32>
    %11 = vector.extract_strided_slice %6 {offsets = [0, 4], sizes = [8, 320], strides = [1, 1]} : vector<8x420xf32> to vector<8x320xf32>
    %12 = vector.extract_strided_slice %6 {offsets = [0, 20], sizes = [8, 320], strides = [1, 1]} : vector<8x420xf32> to vector<8x320xf32>
    %13 = vector.extract_strided_slice %6 {offsets = [0, 21], sizes = [8, 320], strides = [1, 1]} : vector<8x420xf32> to vector<8x320xf32>
    %14 = vector.extract_strided_slice %6 {offsets = [0, 22], sizes = [8, 320], strides = [1, 1]} : vector<8x420xf32> to vector<8x320xf32>
    %15 = vector.extract_strided_slice %6 {offsets = [0, 23], sizes = [8, 320], strides = [1, 1]} : vector<8x420xf32> to vector<8x320xf32>
    %16 = vector.extract_strided_slice %6 {offsets = [0, 24], sizes = [8, 320], strides = [1, 1]} : vector<8x420xf32> to vector<8x320xf32>
    %17 = vector.extract_strided_slice %6 {offsets = [0, 40], sizes = [8, 320], strides = [1, 1]} : vector<8x420xf32> to vector<8x320xf32>
    %18 = vector.extract_strided_slice %6 {offsets = [0, 41], sizes = [8, 320], strides = [1, 1]} : vector<8x420xf32> to vector<8x320xf32>
    %19 = vector.extract_strided_slice %6 {offsets = [0, 42], sizes = [8, 320], strides = [1, 1]} : vector<8x420xf32> to vector<8x320xf32>
    %20 = vector.extract_strided_slice %6 {offsets = [0, 43], sizes = [8, 320], strides = [1, 1]} : vector<8x420xf32> to vector<8x320xf32>
    %21 = vector.extract_strided_slice %6 {offsets = [0, 44], sizes = [8, 320], strides = [1, 1]} : vector<8x420xf32> to vector<8x320xf32>
    %22 = vector.extract_strided_slice %6 {offsets = [0, 60], sizes = [8, 320], strides = [1, 1]} : vector<8x420xf32> to vector<8x320xf32>
    %23 = vector.extract_strided_slice %6 {offsets = [0, 61], sizes = [8, 320], strides = [1, 1]} : vector<8x420xf32> to vector<8x320xf32>
    %24 = vector.extract_strided_slice %6 {offsets = [0, 62], sizes = [8, 320], strides = [1, 1]} : vector<8x420xf32> to vector<8x320xf32>
    %25 = vector.extract_strided_slice %6 {offsets = [0, 63], sizes = [8, 320], strides = [1, 1]} : vector<8x420xf32> to vector<8x320xf32>
    %26 = vector.extract_strided_slice %6 {offsets = [0, 64], sizes = [8, 320], strides = [1, 1]} : vector<8x420xf32> to vector<8x320xf32>
    %27 = vector.extract_strided_slice %6 {offsets = [0, 80], sizes = [8, 320], strides = [1, 1]} : vector<8x420xf32> to vector<8x320xf32>
    %28 = vector.extract_strided_slice %6 {offsets = [0, 81], sizes = [8, 320], strides = [1, 1]} : vector<8x420xf32> to vector<8x320xf32>
    %29 = vector.extract_strided_slice %6 {offsets = [0, 82], sizes = [8, 320], strides = [1, 1]} : vector<8x420xf32> to vector<8x320xf32>
    %30 = vector.extract_strided_slice %6 {offsets = [0, 83], sizes = [8, 320], strides = [1, 1]} : vector<8x420xf32> to vector<8x320xf32>
    %31 = vector.extract_strided_slice %6 {offsets = [0, 84], sizes = [8, 320], strides = [1, 1]} : vector<8x420xf32> to vector<8x320xf32>
    %32 = tpu.concatenate %7, %8, %9, %10, %11, %12, %13, %14, %15, %16, %17, %18, %19, %20, %21, %22 in 0 : vector<8x320xf32>, vector<8x320xf32>, vector<8x320xf32>, vector<8x320xf32>, vector<8x320xf32>, vector<8x320xf32>, vector<8x320xf32>, vector<8x320xf32>, vector<8x320xf32>, vector<8x320xf32>, vector<8x320xf32>, vector<8x320xf32>, vector<8x320xf32>, vector<8x320xf32>, vector<8x320xf32>, vector<8x320xf32> -> vector<128x320xf32>
    %33 = tpu.concatenate %23, %24, %25, %26, %27, %28, %29, %30, %31 in 0 : vector<8x320xf32>, vector<8x320xf32>, vector<8x320xf32>, vector<8x320xf32>, vector<8x320xf32>, vector<8x320xf32>, vector<8x320xf32>, vector<8x320xf32>, vector<8x320xf32> -> vector<72x320xf32>
    %34 = tpu.concatenate %32, %33 in 0 : vector<128x320xf32>, vector<72x320xf32> -> vector<200x320xf32>
    %c0_9 = arith.constant 0 : index
    %c0_10 = arith.constant 0 : index
    %c0_11 = arith.constant 0 : index
    %35 = vector.load %arg2[%c0_9, %c0_10, %c0_11] : memref<5x8x200xf32, #tpu.memory_space<vmem>>, vector<1x8x200xf32>
    %36 = vector.shape_cast %35 : vector<1x8x200xf32> to vector<8x200xf32>
    %cst_12 = arith.constant dense<0.000000e+00> : vector<8x320xf32>
    %37 = tpu.matmul %36, %34, %cst_12 {dimension_numbers = #tpu.dot_dimension_numbers<[1], [0], [0], [1], [0, 0, 1, 1], [], []>} : vector<8x200xf32>, vector<200x320xf32>, vector<8x320xf32> -> vector<8x320xf32>
    %c0_13 = arith.constant 0 : index
    %c0_14 = arith.constant 0 : index
    %c0_15 = arith.constant 0 : index
    %38 = vector.load %arg3[%c0_13, %c0_14, %c0_15] : memref<5x8x1xf32, #tpu.memory_space<vmem>>, vector<1x8x1xf32>
    %39 = vector.shape_cast %38 : vector<1x8x1xf32> to vector<8x1xf32>
    %40 = vector.broadcast %39 : vector<8x1xf32> to vector<8x320xf32>
    %41 = arith.mulf %37, %40 : vector<8x320xf32>
    %c0_16 = arith.constant 0 : index
    %c0_17 = arith.constant 0 : index
    %c0_18 = arith.constant 0 : index
    %42 = vector.load %arg4[%c0_16, %c0_17, %c0_18] : memref<5x8x1xf32, #tpu.memory_space<vmem>>, vector<1x8x1xf32>
    %43 = vector.shape_cast %42 : vector<1x8x1xf32> to vector<8x1xf32>
    %44 = vector.broadcast %43 : vector<8x1xf32> to vector<8x320xf32>
    %45 = arith.addf %41, %44 : vector<8x320xf32>
    %cst_19 = arith.constant 0.00999999977 : f32
    %46 = vector.broadcast %cst_19 : f32 to vector<8x320xf32>
    %47 = arith.mulf %46, %45 : vector<8x320xf32>
    %48 = arith.maximumf %45, %47 : vector<8x320xf32>
    %49 = vector.broadcast %0 : vector<1x320xf32> to vector<8x320xf32>
    %50 = arith.mulf %48, %49 : vector<8x320xf32>
    %c0_20 = arith.constant 0 : index
    %c42_21 = arith.constant 42 : index
    %51 = vector.load %arg7[%c0_20, %c42_21] : memref<8x420xf32, #tpu.memory_space<vmem>>, vector<8x320xf32>
    tpu.vector_store %arg7[%c0_20, %c42_21], %50 {strides = array<i32>} : memref<8x420xf32, #tpu.memory_space<vmem>>, vector<8x320xf32>,
    %c0_22 = arith.constant 0 : index
    %c0_23 = arith.constant 0 : index
    %52 = vector.load %arg7[%c0_22, %c0_23] : memref<8x420xf32, #tpu.memory_space<vmem>>, vector<8x420xf32>
    %53 = vector.extract_strided_slice %52 {offsets = [0, 0], sizes = [8, 320], strides = [1, 1]} : vector<8x420xf32> to vector<8x320xf32>
    %54 = vector.extract_strided_slice %52 {offsets = [0, 1], sizes = [8, 320], strides = [1, 1]} : vector<8x420xf32> to vector<8x320xf32>
    %55 = vector.extract_strided_slice %52 {offsets = [0, 2], sizes = [8, 320], strides = [1, 1]} : vector<8x420xf32> to vector<8x320xf32>
    %56 = vector.extract_strided_slice %52 {offsets = [0, 3], sizes = [8, 320], strides = [1, 1]} : vector<8x420xf32> to vector<8x320xf32>
    %57 = vector.extract_strided_slice %52 {offsets = [0, 4], sizes = [8, 320], strides = [1, 1]} : vector<8x420xf32> to vector<8x320xf32>
    %58 = vector.extract_strided_slice %52 {offsets = [0, 20], sizes = [8, 320], strides = [1, 1]} : vector<8x420xf32> to vector<8x320xf32>
    %59 = vector.extract_strided_slice %52 {offsets = [0, 21], sizes = [8, 320], strides = [1, 1]} : vector<8x420xf32> to vector<8x320xf32>
    %60 = vector.extract_strided_slice %52 {offsets = [0, 22], sizes = [8, 320], strides = [1, 1]} : vector<8x420xf32> to vector<8x320xf32>
    %61 = vector.extract_strided_slice %52 {offsets = [0, 23], sizes = [8, 320], strides = [1, 1]} : vector<8x420xf32> to vector<8x320xf32>
    %62 = vector.extract_strided_slice %52 {offsets = [0, 24], sizes = [8, 320], strides = [1, 1]} : vector<8x420xf32> to vector<8x320xf32>
    %63 = vector.extract_strided_slice %52 {offsets = [0, 40], sizes = [8, 320], strides = [1, 1]} : vector<8x420xf32> to vector<8x320xf32>
    %64 = vector.extract_strided_slice %52 {offsets = [0, 41], sizes = [8, 320], strides = [1, 1]} : vector<8x420xf32> to vector<8x320xf32>
    %65 = vector.extract_strided_slice %52 {offsets = [0, 42], sizes = [8, 320], strides = [1, 1]} : vector<8x420xf32> to vector<8x320xf32>
    %66 = vector.extract_strided_slice %52 {offsets = [0, 43], sizes = [8, 320], strides = [1, 1]} : vector<8x420xf32> to vector<8x320xf32>
    %67 = vector.extract_strided_slice %52 {offsets = [0, 44], sizes = [8, 320], strides = [1, 1]} : vector<8x420xf32> to vector<8x320xf32>
    %68 = vector.extract_strided_slice %52 {offsets = [0, 60], sizes = [8, 320], strides = [1, 1]} : vector<8x420xf32> to vector<8x320xf32>
    %69 = vector.extract_strided_slice %52 {offsets = [0, 61], sizes = [8, 320], strides = [1, 1]} : vector<8x420xf32> to vector<8x320xf32>
    %70 = vector.extract_strided_slice %52 {offsets = [0, 62], sizes = [8, 320], strides = [1, 1]} : vector<8x420xf32> to vector<8x320xf32>
    %71 = vector.extract_strided_slice %52 {offsets = [0, 63], sizes = [8, 320], strides = [1, 1]} : vector<8x420xf32> to vector<8x320xf32>
    %72 = vector.extract_strided_slice %52 {offsets = [0, 64], sizes = [8, 320], strides = [1, 1]} : vector<8x420xf32> to vector<8x320xf32>
    %73 = vector.extract_strided_slice %52 {offsets = [0, 80], sizes = [8, 320], strides = [1, 1]} : vector<8x420xf32> to vector<8x320xf32>
    %74 = vector.extract_strided_slice %52 {offsets = [0, 81], sizes = [8, 320], strides = [1, 1]} : vector<8x420xf32> to vector<8x320xf32>
    %75 = vector.extract_strided_slice %52 {offsets = [0, 82], sizes = [8, 320], strides = [1, 1]} : vector<8x420xf32> to vector<8x320xf32>
    %76 = vector.extract_strided_slice %52 {offsets = [0, 83], sizes = [8, 320], strides = [1, 1]} : vector<8x420xf32> to vector<8x320xf32>
    %77 = vector.extract_strided_slice %52 {offsets = [0, 84], sizes = [8, 320], strides = [1, 1]} : vector<8x420xf32> to vector<8x320xf32>
    %78 = tpu.concatenate %53, %54, %55, %56, %57, %58, %59, %60, %61, %62, %63, %64, %65, %66, %67, %68 in 0 : vector<8x320xf32>, vector<8x320xf32>, vector<8x320xf32>, vector<8x320xf32>, vector<8x320xf32>, vector<8x320xf32>, vector<8x320xf32>, vector<8x320xf32>, vector<8x320xf32>, vector<8x320xf32>, vector<8x320xf32>, vector<8x320xf32>, vector<8x320xf32>, vector<8x320xf32>, vector<8x320xf32>, vector<8x320xf32> -> vector<128x320xf32>
    %79 = tpu.concatenate %69, %70, %71, %72, %73, %74, %75, %76, %77 in 0 : vector<8x320xf32>, vector<8x320xf32>, vector<8x320xf32>, vector<8x320xf32>, vector<8x320xf32>, vector<8x320xf32>, vector<8x320xf32>, vector<8x320xf32>, vector<8x320xf32> -> vector<72x320xf32>
    %80 = tpu.concatenate %78, %79 in 0 : vector<128x320xf32>, vector<72x320xf32> -> vector<200x320xf32>
    %c1 = arith.constant 1 : index
    %c0_24 = arith.constant 0 : index
    %c0_25 = arith.constant 0 : index
    %81 = vector.load %arg2[%c1, %c0_24, %c0_25] : memref<5x8x200xf32, #tpu.memory_space<vmem>>, vector<1x8x200xf32>
    %82 = vector.shape_cast %81 : vector<1x8x200xf32> to vector<8x200xf32>
    %cst_26 = arith.constant dense<0.000000e+00> : vector<8x320xf32>
    %83 = tpu.matmul %82, %80, %cst_26 {dimension_numbers = #tpu.dot_dimension_numbers<[1], [0], [0], [1], [0, 0, 1, 1], [], []>} : vector<8x200xf32>, vector<200x320xf32>, vector<8x320xf32> -> vector<8x320xf32>
    %c1_27 = arith.constant 1 : index
    %c0_28 = arith.constant 0 : index
    %c0_29 = arith.constant 0 : index
    %84 = vector.load %arg3[%c1_27, %c0_28, %c0_29] : memref<5x8x1xf32, #tpu.memory_space<vmem>>, vector<1x8x1xf32>
    %85 = vector.shape_cast %84 : vector<1x8x1xf32> to vector<8x1xf32>
    %86 = vector.broadcast %85 : vector<8x1xf32> to vector<8x320xf32>
    %87 = arith.mulf %83, %86 : vector<8x320xf32>
    %c1_30 = arith.constant 1 : index
    %c0_31 = arith.constant 0 : index
    %c0_32 = arith.constant 0 : index
    %88 = vector.load %arg4[%c1_30, %c0_31, %c0_32] : memref<5x8x1xf32, #tpu.memory_space<vmem>>, vector<1x8x1xf32>
    %89 = vector.shape_cast %88 : vector<1x8x1xf32> to vector<8x1xf32>
    %90 = vector.broadcast %89 : vector<8x1xf32> to vector<8x320xf32>
    %91 = arith.addf %87, %90 : vector<8x320xf32>
    %cst_33 = arith.constant 0.00999999977 : f32
    %92 = vector.broadcast %cst_33 : f32 to vector<8x320xf32>
    %93 = arith.mulf %92, %91 : vector<8x320xf32>
    %94 = arith.maximumf %91, %93 : vector<8x320xf32>
    %95 = vector.broadcast %0 : vector<1x320xf32> to vector<8x320xf32>
    %96 = arith.mulf %94, %95 : vector<8x320xf32>
    %c0_34 = arith.constant 0 : index
    %c42_35 = arith.constant 42 : index
    %97 = vector.load %arg7[%c0_34, %c42_35] : memref<8x420xf32, #tpu.memory_space<vmem>>, vector<8x320xf32>
    tpu.vector_store %arg7[%c0_34, %c42_35], %96 {strides = array<i32>} : memref<8x420xf32, #tpu.memory_space<vmem>>, vector<8x320xf32>,
    %c0_36 = arith.constant 0 : index
    %c0_37 = arith.constant 0 : index
    %98 = vector.load %arg7[%c0_36, %c0_37] : memref<8x420xf32, #tpu.memory_space<vmem>>, vector<8x420xf32>
    %99 = vector.extract_strided_slice %98 {offsets = [0, 0], sizes = [8, 320], strides = [1, 1]} : vector<8x420xf32> to vector<8x320xf32>
    %100 = vector.extract_strided_slice %98 {offsets = [0, 1], sizes = [8, 320], strides = [1, 1]} : vector<8x420xf32> to vector<8x320xf32>
    %101 = vector.extract_strided_slice %98 {offsets = [0, 2], sizes = [8, 320], strides = [1, 1]} : vector<8x420xf32> to vector<8x320xf32>
    %102 = vector.extract_strided_slice %98 {offsets = [0, 3], sizes = [8, 320], strides = [1, 1]} : vector<8x420xf32> to vector<8x320xf32>
    %103 = vector.extract_strided_slice %98 {offsets = [0, 4], sizes = [8, 320], strides = [1, 1]} : vector<8x420xf32> to vector<8x320xf32>
    %104 = vector.extract_strided_slice %98 {offsets = [0, 20], sizes = [8, 320], strides = [1, 1]} : vector<8x420xf32> to vector<8x320xf32>
    %105 = vector.extract_strided_slice %98 {offsets = [0, 21], sizes = [8, 320], strides = [1, 1]} : vector<8x420xf32> to vector<8x320xf32>
    %106 = vector.extract_strided_slice %98 {offsets = [0, 22], sizes = [8, 320], strides = [1, 1]} : vector<8x420xf32> to vector<8x320xf32>
    %107 = vector.extract_strided_slice %98 {offsets = [0, 23], sizes = [8, 320], strides = [1, 1]} : vector<8x420xf32> to vector<8x320xf32>
    %108 = vector.extract_strided_slice %98 {offsets = [0, 24], sizes = [8, 320], strides = [1, 1]} : vector<8x420xf32> to vector<8x320xf32>
    %109 = vector.extract_strided_slice %98 {offsets = [0, 40], sizes = [8, 320], strides = [1, 1]} : vector<8x420xf32> to vector<8x320xf32>
    %110 = vector.extract_strided_slice %98 {offsets = [0, 41], sizes = [8, 320], strides = [1, 1]} : vector<8x420xf32> to vector<8x320xf32>
    %111 = vector.extract_strided_slice %98 {offsets = [0, 42], sizes = [8, 320], strides = [1, 1]} : vector<8x420xf32> to vector<8x320xf32>
    %112 = vector.extract_strided_slice %98 {offsets = [0, 43], sizes = [8, 320], strides = [1, 1]} : vector<8x420xf32> to vector<8x320xf32>
    %113 = vector.extract_strided_slice %98 {offsets = [0, 44], sizes = [8, 320], strides = [1, 1]} : vector<8x420xf32> to vector<8x320xf32>
    %114 = vector.extract_strided_slice %98 {offsets = [0, 60], sizes = [8, 320], strides = [1, 1]} : vector<8x420xf32> to vector<8x320xf32>
    %115 = vector.extract_strided_slice %98 {offsets = [0, 61], sizes = [8, 320], strides = [1, 1]} : vector<8x420xf32> to vector<8x320xf32>
    %116 = vector.extract_strided_slice %98 {offsets = [0, 62], sizes = [8, 320], strides = [1, 1]} : vector<8x420xf32> to vector<8x320xf32>
    %117 = vector.extract_strided_slice %98 {offsets = [0, 63], sizes = [8, 320], strides = [1, 1]} : vector<8x420xf32> to vector<8x320xf32>
    %118 = vector.extract_strided_slice %98 {offsets = [0, 64], sizes = [8, 320], strides = [1, 1]} : vector<8x420xf32> to vector<8x320xf32>
    %119 = vector.extract_strided_slice %98 {offsets = [0, 80], sizes = [8, 320], strides = [1, 1]} : vector<8x420xf32> to vector<8x320xf32>
    %120 = vector.extract_strided_slice %98 {offsets = [0, 81], sizes = [8, 320], strides = [1, 1]} : vector<8x420xf32> to vector<8x320xf32>
    %121 = vector.extract_strided_slice %98 {offsets = [0, 82], sizes = [8, 320], strides = [1, 1]} : vector<8x420xf32> to vector<8x320xf32>
    %122 = vector.extract_strided_slice %98 {offsets = [0, 83], sizes = [8, 320], strides = [1, 1]} : vector<8x420xf32> to vector<8x320xf32>
    %123 = vector.extract_strided_slice %98 {offsets = [0, 84], sizes = [8, 320], strides = [1, 1]} : vector<8x420xf32> to vector<8x320xf32>
    %124 = tpu.concatenate %99, %100, %101, %102, %103, %104, %105, %106, %107, %108, %109, %110, %111, %112, %113, %114 in 0 : vector<8x320xf32>, vector<8x320xf32>, vector<8x320xf32>, vector<8x320xf32>, vector<8x320xf32>, vector<8x320xf32>, vector<8x320xf32>, vector<8x320xf32>, vector<8x320xf32>, vector<8x320xf32>, vector<8x320xf32>, vector<8x320xf32>, vector<8x320xf32>, vector<8x320xf32>, vector<8x320xf32>, vector<8x320xf32> -> vector<128x320xf32>
    %125 = tpu.concatenate %115, %116, %117, %118, %119, %120, %121, %122, %123 in 0 : vector<8x320xf32>, vector<8x320xf32>, vector<8x320xf32>, vector<8x320xf32>, vector<8x320xf32>, vector<8x320xf32>, vector<8x320xf32>, vector<8x320xf32>, vector<8x320xf32> -> vector<72x320xf32>
    %126 = tpu.concatenate %124, %125 in 0 : vector<128x320xf32>, vector<72x320xf32> -> vector<200x320xf32>
    %c2 = arith.constant 2 : index
    %c0_38 = arith.constant 0 : index
    %c0_39 = arith.constant 0 : index
    %127 = vector.load %arg2[%c2, %c0_38, %c0_39] : memref<5x8x200xf32, #tpu.memory_space<vmem>>, vector<1x8x200xf32>
    %128 = vector.shape_cast %127 : vector<1x8x200xf32> to vector<8x200xf32>
    %cst_40 = arith.constant dense<0.000000e+00> : vector<8x320xf32>
    %129 = tpu.matmul %128, %126, %cst_40 {dimension_numbers = #tpu.dot_dimension_numbers<[1], [0], [0], [1], [0, 0, 1, 1], [], []>} : vector<8x200xf32>, vector<200x320xf32>, vector<8x320xf32> -> vector<8x320xf32>
    %c2_41 = arith.constant 2 : index
    %c0_42 = arith.constant 0 : index
    %c0_43 = arith.constant 0 : index
    %130 = vector.load %arg3[%c2_41, %c0_42, %c0_43] : memref<5x8x1xf32, #tpu.memory_space<vmem>>, vector<1x8x1xf32>
    %131 = vector.shape_cast %130 : vector<1x8x1xf32> to vector<8x1xf32>
    %132 = vector.broadcast %131 : vector<8x1xf32> to vector<8x320xf32>
    %133 = arith.mulf %129, %132 : vector<8x320xf32>
    %c2_44 = arith.constant 2 : index
    %c0_45 = arith.constant 0 : index
    %c0_46 = arith.constant 0 : index
    %134 = vector.load %arg4[%c2_44, %c0_45, %c0_46] : memref<5x8x1xf32, #tpu.memory_space<vmem>>, vector<1x8x1xf32>
    %135 = vector.shape_cast %134 : vector<1x8x1xf32> to vector<8x1xf32>
    %136 = vector.broadcast %135 : vector<8x1xf32> to vector<8x320xf32>
    %137 = arith.addf %133, %136 : vector<8x320xf32>
    %cst_47 = arith.constant 0.00999999977 : f32
    %138 = vector.broadcast %cst_47 : f32 to vector<8x320xf32>
    %139 = arith.mulf %138, %137 : vector<8x320xf32>
    %140 = arith.maximumf %137, %139 : vector<8x320xf32>
    %141 = vector.broadcast %0 : vector<1x320xf32> to vector<8x320xf32>
    %142 = arith.mulf %140, %141 : vector<8x320xf32>
    %c0_48 = arith.constant 0 : index
    %c42_49 = arith.constant 42 : index
    %143 = vector.load %arg7[%c0_48, %c42_49] : memref<8x420xf32, #tpu.memory_space<vmem>>, vector<8x320xf32>
    tpu.vector_store %arg7[%c0_48, %c42_49], %142 {strides = array<i32>} : memref<8x420xf32, #tpu.memory_space<vmem>>, vector<8x320xf32>,
    %c0_50 = arith.constant 0 : index
    %c0_51 = arith.constant 0 : index
    %144 = vector.load %arg7[%c0_50, %c0_51] : memref<8x420xf32, #tpu.memory_space<vmem>>, vector<8x420xf32>
    %145 = vector.extract_strided_slice %144 {offsets = [0, 0], sizes = [8, 320], strides = [1, 1]} : vector<8x420xf32> to vector<8x320xf32>
    %146 = vector.extract_strided_slice %144 {offsets = [0, 1], sizes = [8, 320], strides = [1, 1]} : vector<8x420xf32> to vector<8x320xf32>
    %147 = vector.extract_strided_slice %144 {offsets = [0, 2], sizes = [8, 320], strides = [1, 1]} : vector<8x420xf32> to vector<8x320xf32>
    %148 = vector.extract_strided_slice %144 {offsets = [0, 3], sizes = [8, 320], strides = [1, 1]} : vector<8x420xf32> to vector<8x320xf32>
    %149 = vector.extract_strided_slice %144 {offsets = [0, 4], sizes = [8, 320], strides = [1, 1]} : vector<8x420xf32> to vector<8x320xf32>
    %150 = vector.extract_strided_slice %144 {offsets = [0, 20], sizes = [8, 320], strides = [1, 1]} : vector<8x420xf32> to vector<8x320xf32>
    %151 = vector.extract_strided_slice %144 {offsets = [0, 21], sizes = [8, 320], strides = [1, 1]} : vector<8x420xf32> to vector<8x320xf32>
    %152 = vector.extract_strided_slice %144 {offsets = [0, 22], sizes = [8, 320], strides = [1, 1]} : vector<8x420xf32> to vector<8x320xf32>
    %153 = vector.extract_strided_slice %144 {offsets = [0, 23], sizes = [8, 320], strides = [1, 1]} : vector<8x420xf32> to vector<8x320xf32>
    %154 = vector.extract_strided_slice %144 {offsets = [0, 24], sizes = [8, 320], strides = [1, 1]} : vector<8x420xf32> to vector<8x320xf32>
    %155 = vector.extract_strided_slice %144 {offsets = [0, 40], sizes = [8, 320], strides = [1, 1]} : vector<8x420xf32> to vector<8x320xf32>
    %156 = vector.extract_strided_slice %144 {offsets = [0, 41], sizes = [8, 320], strides = [1, 1]} : vector<8x420xf32> to vector<8x320xf32>
    %157 = vector.extract_strided_slice %144 {offsets = [0, 42], sizes = [8, 320], strides = [1, 1]} : vector<8x420xf32> to vector<8x320xf32>
    %158 = vector.extract_strided_slice %144 {offsets = [0, 43], sizes = [8, 320], strides = [1, 1]} : vector<8x420xf32> to vector<8x320xf32>
    %159 = vector.extract_strided_slice %144 {offsets = [0, 44], sizes = [8, 320], strides = [1, 1]} : vector<8x420xf32> to vector<8x320xf32>
    %160 = vector.extract_strided_slice %144 {offsets = [0, 60], sizes = [8, 320], strides = [1, 1]} : vector<8x420xf32> to vector<8x320xf32>
    %161 = vector.extract_strided_slice %144 {offsets = [0, 61], sizes = [8, 320], strides = [1, 1]} : vector<8x420xf32> to vector<8x320xf32>
    %162 = vector.extract_strided_slice %144 {offsets = [0, 62], sizes = [8, 320], strides = [1, 1]} : vector<8x420xf32> to vector<8x320xf32>
    %163 = vector.extract_strided_slice %144 {offsets = [0, 63], sizes = [8, 320], strides = [1, 1]} : vector<8x420xf32> to vector<8x320xf32>
    %164 = vector.extract_strided_slice %144 {offsets = [0, 64], sizes = [8, 320], strides = [1, 1]} : vector<8x420xf32> to vector<8x320xf32>
    %165 = vector.extract_strided_slice %144 {offsets = [0, 80], sizes = [8, 320], strides = [1, 1]} : vector<8x420xf32> to vector<8x320xf32>
    %166 = vector.extract_strided_slice %144 {offsets = [0, 81], sizes = [8, 320], strides = [1, 1]} : vector<8x420xf32> to vector<8x320xf32>
    %167 = vector.extract_strided_slice %144 {offsets = [0, 82], sizes = [8, 320], strides = [1, 1]} : vector<8x420xf32> to vector<8x320xf32>
    %168 = vector.extract_strided_slice %144 {offsets = [0, 83], sizes = [8, 320], strides = [1, 1]} : vector<8x420xf32> to vector<8x320xf32>
    %169 = vector.extract_strided_slice %144 {offsets = [0, 84], sizes = [8, 320], strides = [1, 1]} : vector<8x420xf32> to vector<8x320xf32>
    %170 = tpu.concatenate %145, %146, %147, %148, %149, %150, %151, %152, %153, %154, %155, %156, %157, %158, %159, %160 in 0 : vector<8x320xf32>, vector<8x320xf32>, vector<8x320xf32>, vector<8x320xf32>, vector<8x320xf32>, vector<8x320xf32>, vector<8x320xf32>, vector<8x320xf32>, vector<8x320xf32>, vector<8x320xf32>, vector<8x320xf32>, vector<8x320xf32>, vector<8x320xf32>, vector<8x320xf32>, vector<8x320xf32>, vector<8x320xf32> -> vector<128x320xf32>
    %171 = tpu.concatenate %161, %162, %163, %164, %165, %166, %167, %168, %169 in 0 : vector<8x320xf32>, vector<8x320xf32>, vector<8x320xf32>, vector<8x320xf32>, vector<8x320xf32>, vector<8x320xf32>, vector<8x320xf32>, vector<8x320xf32>, vector<8x320xf32> -> vector<72x320xf32>
    %172 = tpu.concatenate %170, %171 in 0 : vector<128x320xf32>, vector<72x320xf32> -> vector<200x320xf32>
    %c3 = arith.constant 3 : index
    %c0_52 = arith.constant 0 : index
    %c0_53 = arith.constant 0 : index
    %173 = vector.load %arg2[%c3, %c0_52, %c0_53] : memref<5x8x200xf32, #tpu.memory_space<vmem>>, vector<1x8x200xf32>
    %174 = vector.shape_cast %173 : vector<1x8x200xf32> to vector<8x200xf32>
    %cst_54 = arith.constant dense<0.000000e+00> : vector<8x320xf32>
    %175 = tpu.matmul %174, %172, %cst_54 {dimension_numbers = #tpu.dot_dimension_numbers<[1], [0], [0], [1], [0, 0, 1, 1], [], []>} : vector<8x200xf32>, vector<200x320xf32>, vector<8x320xf32> -> vector<8x320xf32>
    %c3_55 = arith.constant 3 : index
    %c0_56 = arith.constant 0 : index
    %c0_57 = arith.constant 0 : index
    %176 = vector.load %arg3[%c3_55, %c0_56, %c0_57] : memref<5x8x1xf32, #tpu.memory_space<vmem>>, vector<1x8x1xf32>
    %177 = vector.shape_cast %176 : vector<1x8x1xf32> to vector<8x1xf32>
    %178 = vector.broadcast %177 : vector<8x1xf32> to vector<8x320xf32>
    %179 = arith.mulf %175, %178 : vector<8x320xf32>
    %c3_58 = arith.constant 3 : index
    %c0_59 = arith.constant 0 : index
    %c0_60 = arith.constant 0 : index
    %180 = vector.load %arg4[%c3_58, %c0_59, %c0_60] : memref<5x8x1xf32, #tpu.memory_space<vmem>>, vector<1x8x1xf32>
    %181 = vector.shape_cast %180 : vector<1x8x1xf32> to vector<8x1xf32>
    %182 = vector.broadcast %181 : vector<8x1xf32> to vector<8x320xf32>
    %183 = arith.addf %179, %182 : vector<8x320xf32>
    %cst_61 = arith.constant 0.00999999977 : f32
    %184 = vector.broadcast %cst_61 : f32 to vector<8x320xf32>
    %185 = arith.mulf %184, %183 : vector<8x320xf32>
    %186 = arith.maximumf %183, %185 : vector<8x320xf32>
    %187 = vector.broadcast %0 : vector<1x320xf32> to vector<8x320xf32>
    %188 = arith.mulf %186, %187 : vector<8x320xf32>
    %c0_62 = arith.constant 0 : index
    %c42_63 = arith.constant 42 : index
    %189 = vector.load %arg7[%c0_62, %c42_63] : memref<8x420xf32, #tpu.memory_space<vmem>>, vector<8x320xf32>
    tpu.vector_store %arg7[%c0_62, %c42_63], %188 {strides = array<i32>} : memref<8x420xf32, #tpu.memory_space<vmem>>, vector<8x320xf32>,
    %c0_64 = arith.constant 0 : index
    %c0_65 = arith.constant 0 : index
    %190 = vector.load %arg7[%c0_64, %c0_65] : memref<8x420xf32, #tpu.memory_space<vmem>>, vector<8x420xf32>
    %191 = vector.extract_strided_slice %190 {offsets = [0, 0], sizes = [8, 320], strides = [1, 1]} : vector<8x420xf32> to vector<8x320xf32>
    %192 = vector.extract_strided_slice %190 {offsets = [0, 1], sizes = [8, 320], strides = [1, 1]} : vector<8x420xf32> to vector<8x320xf32>
    %193 = vector.extract_strided_slice %190 {offsets = [0, 2], sizes = [8, 320], strides = [1, 1]} : vector<8x420xf32> to vector<8x320xf32>
    %194 = vector.extract_strided_slice %190 {offsets = [0, 3], sizes = [8, 320], strides = [1, 1]} : vector<8x420xf32> to vector<8x320xf32>
    %195 = vector.extract_strided_slice %190 {offsets = [0, 4], sizes = [8, 320], strides = [1, 1]} : vector<8x420xf32> to vector<8x320xf32>
    %196 = vector.extract_strided_slice %190 {offsets = [0, 20], sizes = [8, 320], strides = [1, 1]} : vector<8x420xf32> to vector<8x320xf32>
    %197 = vector.extract_strided_slice %190 {offsets = [0, 21], sizes = [8, 320], strides = [1, 1]} : vector<8x420xf32> to vector<8x320xf32>
    %198 = vector.extract_strided_slice %190 {offsets = [0, 22], sizes = [8, 320], strides = [1, 1]} : vector<8x420xf32> to vector<8x320xf32>
    %199 = vector.extract_strided_slice %190 {offsets = [0, 23], sizes = [8, 320], strides = [1, 1]} : vector<8x420xf32> to vector<8x320xf32>
    %200 = vector.extract_strided_slice %190 {offsets = [0, 24], sizes = [8, 320], strides = [1, 1]} : vector<8x420xf32> to vector<8x320xf32>
    %201 = vector.extract_strided_slice %190 {offsets = [0, 40], sizes = [8, 320], strides = [1, 1]} : vector<8x420xf32> to vector<8x320xf32>
    %202 = vector.extract_strided_slice %190 {offsets = [0, 41], sizes = [8, 320], strides = [1, 1]} : vector<8x420xf32> to vector<8x320xf32>
    %203 = vector.extract_strided_slice %190 {offsets = [0, 42], sizes = [8, 320], strides = [1, 1]} : vector<8x420xf32> to vector<8x320xf32>
    %204 = vector.extract_strided_slice %190 {offsets = [0, 43], sizes = [8, 320], strides = [1, 1]} : vector<8x420xf32> to vector<8x320xf32>
    %205 = vector.extract_strided_slice %190 {offsets = [0, 44], sizes = [8, 320], strides = [1, 1]} : vector<8x420xf32> to vector<8x320xf32>
    %206 = vector.extract_strided_slice %190 {offsets = [0, 60], sizes = [8, 320], strides = [1, 1]} : vector<8x420xf32> to vector<8x320xf32>
    %207 = vector.extract_strided_slice %190 {offsets = [0, 61], sizes = [8, 320], strides = [1, 1]} : vector<8x420xf32> to vector<8x320xf32>
    %208 = vector.extract_strided_slice %190 {offsets = [0, 62], sizes = [8, 320], strides = [1, 1]} : vector<8x420xf32> to vector<8x320xf32>
    %209 = vector.extract_strided_slice %190 {offsets = [0, 63], sizes = [8, 320], strides = [1, 1]} : vector<8x420xf32> to vector<8x320xf32>
    %210 = vector.extract_strided_slice %190 {offsets = [0, 64], sizes = [8, 320], strides = [1, 1]} : vector<8x420xf32> to vector<8x320xf32>
    %211 = vector.extract_strided_slice %190 {offsets = [0, 80], sizes = [8, 320], strides = [1, 1]} : vector<8x420xf32> to vector<8x320xf32>
    %212 = vector.extract_strided_slice %190 {offsets = [0, 81], sizes = [8, 320], strides = [1, 1]} : vector<8x420xf32> to vector<8x320xf32>
    %213 = vector.extract_strided_slice %190 {offsets = [0, 82], sizes = [8, 320], strides = [1, 1]} : vector<8x420xf32> to vector<8x320xf32>
    %214 = vector.extract_strided_slice %190 {offsets = [0, 83], sizes = [8, 320], strides = [1, 1]} : vector<8x420xf32> to vector<8x320xf32>
    %215 = vector.extract_strided_slice %190 {offsets = [0, 84], sizes = [8, 320], strides = [1, 1]} : vector<8x420xf32> to vector<8x320xf32>
    %216 = tpu.concatenate %191, %192, %193, %194, %195, %196, %197, %198, %199, %200, %201, %202, %203, %204, %205, %206 in 0 : vector<8x320xf32>, vector<8x320xf32>, vector<8x320xf32>, vector<8x320xf32>, vector<8x320xf32>, vector<8x320xf32>, vector<8x320xf32>, vector<8x320xf32>, vector<8x320xf32>, vector<8x320xf32>, vector<8x320xf32>, vector<8x320xf32>, vector<8x320xf32>, vector<8x320xf32>, vector<8x320xf32>, vector<8x320xf32> -> vector<128x320xf32>
    %217 = tpu.concatenate %207, %208, %209, %210, %211, %212, %213, %214, %215 in 0 : vector<8x320xf32>, vector<8x320xf32>, vector<8x320xf32>, vector<8x320xf32>, vector<8x320xf32>, vector<8x320xf32>, vector<8x320xf32>, vector<8x320xf32>, vector<8x320xf32> -> vector<72x320xf32>
    %218 = tpu.concatenate %216, %217 in 0 : vector<128x320xf32>, vector<72x320xf32> -> vector<200x320xf32>
    %c4 = arith.constant 4 : index
    %c0_66 = arith.constant 0 : index
    %c0_67 = arith.constant 0 : index
    %219 = vector.load %arg2[%c4, %c0_66, %c0_67] : memref<5x8x200xf32, #tpu.memory_space<vmem>>, vector<1x8x200xf32>
    %220 = vector.shape_cast %219 : vector<1x8x200xf32> to vector<8x200xf32>
    %cst_68 = arith.constant dense<0.000000e+00> : vector<8x320xf32>
    %221 = tpu.matmul %220, %218, %cst_68 {dimension_numbers = #tpu.dot_dimension_numbers<[1], [0], [0], [1], [0, 0, 1, 1], [], []>} : vector<8x200xf32>, vector<200x320xf32>, vector<8x320xf32> -> vector<8x320xf32>
    %c4_69 = arith.constant 4 : index
    %c0_70 = arith.constant 0 : index
    %c0_71 = arith.constant 0 : index
    %222 = vector.load %arg3[%c4_69, %c0_70, %c0_71] : memref<5x8x1xf32, #tpu.memory_space<vmem>>, vector<1x8x1xf32>
    %223 = vector.shape_cast %222 : vector<1x8x1xf32> to vector<8x1xf32>
    %224 = vector.broadcast %223 : vector<8x1xf32> to vector<8x320xf32>
    %225 = arith.mulf %221, %224 : vector<8x320xf32>
    %c4_72 = arith.constant 4 : index
    %c0_73 = arith.constant 0 : index
    %c0_74 = arith.constant 0 : index
    %226 = vector.load %arg4[%c4_72, %c0_73, %c0_74] : memref<5x8x1xf32, #tpu.memory_space<vmem>>, vector<1x8x1xf32>
    %227 = vector.shape_cast %226 : vector<1x8x1xf32> to vector<8x1xf32>
    %228 = vector.broadcast %227 : vector<8x1xf32> to vector<8x320xf32>
    %229 = arith.addf %225, %228 : vector<8x320xf32>
    %cst_75 = arith.constant 0.000000e+00 : f32
    %230 = vector.broadcast %cst_75 : f32 to vector<8x320xf32>
    %231 = arith.subf %230, %229 : vector<8x320xf32>
    %232 = math.exp %231 : vector<8x320xf32>
    %cst_76 = arith.constant 1.000000e+00 : f32
    %233 = vector.broadcast %cst_76 : f32 to vector<8x320xf32>
    %234 = arith.addf %233, %232 : vector<8x320xf32>
    %cst_77 = arith.constant 1.000000e+00 : f32
    %235 = vector.broadcast %cst_77 : f32 to vector<8x320xf32>
    %236 = arith.divf %235, %234 : vector<8x320xf32>
    %c0_78 = arith.constant 0 : index
    %c0_79 = arith.constant 0 : index
    %c0_80 = arith.constant 0 : index
    %237 = vector.load %arg6[%c0_78, %c0_79, %c0_80] : memref<1x8x320xf32, #tpu.memory_space<vmem>>, vector<1x8x320xf32>
    %238 = vector.shape_cast %237 : vector<1x8x320xf32> to vector<8x320xf32>
    %239 = vector.shape_cast %236 : vector<8x320xf32> to vector<1x8x320xf32>
    tpu.vector_store %arg6[%c0_78, %c0_79, %c0_80], %239 {strides = array<i32>} : memref<1x8x320xf32, #tpu.memory_space<vmem>>, vector<1x8x320xf32>,
    return
  }
  func.func @transform_0(%arg0: i32) -> (i32, i32, i32) {
    %c0_i32 = arith.constant 0 : i32
    %c0_i32_0 = arith.constant 0 : i32
    %c0_i32_1 = arith.constant 0 : i32
    return %arg0, %c0_i32, %c0_i32_0 : i32, i32, i32
  }
  func.func @transform_1(%arg0: i32) -> (i32, i32, i32) {
    %c0_i32 = arith.constant 0 : i32
    %c0_i32_0 = arith.constant 0 : i32
    %c0_i32_1 = arith.constant 0 : i32
    %c0_i32_2 = arith.constant 0 : i32
    return %c0_i32, %c0_i32_0, %c0_i32_1 : i32, i32, i32
  }
  func.func @transform_2(%arg0: i32) -> (i32, i32, i32) {
    %c0_i32 = arith.constant 0 : i32
    %c0_i32_0 = arith.constant 0 : i32
    %c0_i32_1 = arith.constant 0 : i32
    %c0_i32_2 = arith.constant 0 : i32
    return %c0_i32, %c0_i32_0, %c0_i32_1 : i32, i32, i32
  }
  func.func @transform_3(%arg0: i32) -> (i32, i32, i32) {
    %c0_i32 = arith.constant 0 : i32
    %c0_i32_0 = arith.constant 0 : i32
    %c0_i32_1 = arith.constant 0 : i32
    %c0_i32_2 = arith.constant 0 : i32
    return %c0_i32, %c0_i32_0, %c0_i32_1 : i32, i32, i32
  }
  func.func @transform_4(%arg0: i32) -> (i32, i32) {
    %c0_i32 = arith.constant 0 : i32
    %c0_i32_0 = arith.constant 0 : i32
    %c0_i32_1 = arith.constant 0 : i32
    return %c0_i32, %c0_i32_0 : i32, i32
  }
  func.func @transform_5(%arg0: i32) -> (i32, i32, i32) {
    %c0_i32 = arith.constant 0 : i32
    %c0_i32_0 = arith.constant 0 : i32
    %c0_i32_1 = arith.constant 0 : i32
    return %arg0, %c0_i32, %c0_i32_0 : i32, i32, i32
  }
}

</mosaic_0001>

<bundles_post_ra>
// kernel: net_forward.1
= control target key start
LH: loop header
LB: loop body
LE: loop exit
PB: predicated region body
PF: predicated region fallthrough
CT: control target
= control target key end

     0   :  { %s4108_s18 = smov 0   ;;  %s5234_s0 = inlined_call_operand.vmem [shape: f32[2,8,320], index: 0, kind: input, shape index: {}]   ;;  %s5235_s1 = inlined_call_operand.vmem [shape: f32[5,8,200], index: 1, kind: input, shape index: {}]   ;;  %s5236_s2 = inlined_call_operand.vmem [shape: f32[5,8,1], index: 2, kind: input, shape index: {}]   ;;  %s5237_s3 = inlined_call_operand.vmem [shape: f32[5,8,1], index: 3, kind: input, shape index: {}]   ;;  %s5238_s4 = inlined_call_operand.vmem [shape: f32[1,320], index: 4, kind: input, shape index: {}]   ;;  %s5239_s5 = inlined_call_operand.vmem [shape: f32[2,8,320], index: 5, kind: output, shape index: {}]  }
   0x1 LB: > { %s2775_s19 = sadd.s32 4294967295, %s4055_s18   ;;  %p2779_p0 = scmp.ge.s32.totalorder %s4055_s18, 1  ;;  %s4055_s18 = sphi %s4108_s18, %s15_s18  }
   0x2   : > { %p187_p1 = scmp.lt.s32.totalorder %s4055_s18, 3 }
   0x4   : > { %p188_p2 = pnand %p2779_p0, %p187_p1 }
   0x5   : > { %p215_p3 = scmp.lt.s32.totalorder (!%p188_p2), %s2775_s19, 1  ;;  %v4057_v0 = vmov (!%p188_p2), 0.0   ;;  %vm229_vm0 = vcmask (!%p188_p2), 293888   ;;  %s4058_s24 = smov (!%p188_p2), 42   ;;  %vm249_vm1 = vcmask (!%p188_p2), 1047888   ;;  %vm243_vm2 = vcmask (!%p188_p2), 343040  }
   0x6   : > { %191 = sbr.rel (%p188_p2) target bundleno = 3159 (0xc57), region = 40  ;;  %226 = vst [vmem:[#allocation2] sm:$0xff] (!%p188_p2), %v4057_v0  ;;  %228 = vst [vmem:[#allocation2 + $0x10] sm:$0xff] (!%p188_p2), %v4057_v0  ;;  %s4059_s25 = smov (!%p188_p2), 105   ;;  %vm252_vm3 = vcmask (!%p188_p2), 867328   ;;  %v4062_v10 = vmov (!%p188_p2), 0.0|0.0  }
   0x7   : > { %230 = vst.msk [vmem:[#allocation2 + $0x18] sm:$0xff] (!%p188_p2), %vm229_vm0, %v4057_v0  ;;  %s4060_s26 = smov (!%p188_p2), 126   ;;  %s4061_s27 = smov (!%p188_p2), 127   ;;  %2858 = vmatprep.subr.bf16.mxu1 (!%p188_p2), %v4062_v10  ;;  %vm267_vm4 = vcmask (!%p188_p2), 1039360   ;;  %vm279_vm5 = vcmask (!%p188_p2), 1031168   ;;  %vm5247_vm6 = vcmask (!%p188_p2), 1022976  }
   0x8   : > { %s4063_s28 = smov (!%p188_p2), 109   ;;  %s4064_s29 = smov (!%p188_p2), 125   ;;  %vm315_vm7 = vcmask (!%p188_p2), 883712   ;;  %vm5246_vm8 = vcmask (!%p188_p2), 891904   ;;  %vm5245_vm9 = vcmask (!%p188_p2), 875520   ;;  %vm5244_vm10 = vcmask (!%p188_p2), 588800  }
   0x9   : > { %s4065_s30 = smov (!%p188_p2), 107   ;;  %s4066_s6 = smov (!%p188_p2), 108   ;;  %vm350_vm11 = vcmask (!%p188_p2), 859136   ;;  %vm5241_vm12 = vcmask (!%p188_p2), 1014784   ;;  %vm5240_vm13 = vcmask (!%p188_p2), 850944   ;;  %vm374_vm14 = vcmask (!%p188_p2), 719872  }
   0xa   : > { %s4067_s7 = smov (!%p188_p2), 106   ;;  %s4068_s8 = smov (!%p188_p2), 88   ;;  %vm5242_vm15 = vcmask (!%p188_p2), 711680   ;;  %vm398_vm0 = vcmask (!%p188_p2), 703488  }
   0xb   : > { %s4069_s9 = smov (!%p188_p2), 124   ;;  %s4070_s10 = smov (!%p188_p2), 86  }
   0xc   : > { %s4071_s11 = smov (!%p188_p2), 104   ;;  %s4072_s12 = smov (!%p188_p2), 84  }
   0xd   : > { %s5302_s19 = smov (!%p215_p3, %s2775_s19), 1  ;;  %s4073_s13 = smov 87  }
   0xe   : > { %s3230_s20 = smul.u32 24, %s5302_s19  ;;  %v4129_v4 = vld [vmem:[#allocation2 + $0x18] sm:$0xff]  ;;  %s4074_s14 = smov 85  }
   0xf   : > { %s4075_s15 = smov 68   ;;  %s4076_s16 = smov 67  }
  0x10   : > { %s219_s23 = scalar_lea.vmem %s5234_s0, %s3230_s20 }
  0x11   : > { %v231_v1 = vld [vmem:[%s219_s23] sm:$0xff]  ;;  %v233_v2 = vld [vmem:[%s219_s23 + $0x10] sm:$0xff]  ;;  %v232_v3 = vld [vmem:[%s219_s23 + $0x8] sm:$0xff] }
  0x12   : > { %237 = vrot.lane.b32.xlu0 %v231_v1, %s4058_s24  ;;  %241 = vrot.lane.b32.xlu1 %v233_v2, %s4058_s24 }
  0x16   : > { %239 = vrot.lane.b32.xlu0 %v232_v3, %s4058_s24  ;;  %462 = vrot.lane.b32.xlu1 %v4129_v4, %s4059_s25 }
  0x84   : > { %v238_v5 = vpop.permute.xlu0 %237  ;;  %v242_v6 = vpop.permute.xlu1 %241 }
  0x85   : > { %250 = vst.msk [vmem:[#allocation2] sm:$0xff] %vm249_vm1, %v238_v5 }
  0x88   : > { %v240_v7 = vpop.permute.xlu0 %239  ;;  %v4197_v15 = vpop.permute.xlu1 %462 }
  0x89   : > { %v245_v8 = vsel %vm243_vm2, %v240_v7, %v242_v6  ;;  %v4154_v13 = vsel %vm243_vm2, %v238_v5, %v240_v7 }
  0x8a   : > { %253 = vst.msk [vmem:[#allocation2 + $0x10] sm:$0xff] %vm252_vm3, %v245_v8 }
  0x8c   : > { %v4137_v9 = vld [vmem:[#allocation2] sm:$0xff] }
  0x8d   : > { %273 = vrot.lane.b32.xlu1 %v4137_v9, %s4060_s26  ;;  %261 = vrot.lane.b32.xlu0 %v4137_v9, %s4061_s27  ;;  %v3260_v11 = vpack.i.bf16 %v4137_v9, %v4129_v4 }
  0x91   : > { %3261 = vrot.lane.b32.xlu1 %v3260_v11, %s4063_s28  ;;  %285 = vrot.lane.b32.xlu0 %v4137_v9, %s4064_s29  ;;  %v4149_v12 = vld [vmem:[#allocation2 + $0x10] sm:$0xff] }
  0x92   : > { %v3280_v14 = vpack.i.bf16 %v4149_v12, %v4154_v13 }
  0x95   : > { %3271 = vrot.lane.b32.xlu1 %v3260_v11, %s4065_s30  ;;  %3266 = vrot.lane.b32.xlu0 %v3260_v11, %s4066_s6 }
  0x99   : > { %3276 = vrot.lane.b32.xlu0 %v3260_v11, %s4067_s7  ;;  %3281 = vrot.lane.b32.xlu1 %v3280_v14, %s4061_s27 }
  0x9d   : > { %344 = vrot.lane.b32.xlu0 %v4137_v9, %s4059_s25  ;;  %3286 = vrot.lane.b32.xlu1 %v3280_v14, %s4060_s26 }
  0xa1   : > { %3291 = vrot.lane.b32.xlu0 %v3280_v14, %s4064_s29  ;;  %3296 = vrot.lane.b32.xlu1 %v3280_v14, %s4066_s6 }
  0xa5   : > { %3301 = vrot.lane.b32.xlu0 %v3280_v14, %s4063_s28  ;;  %3306 = vrot.lane.b32.xlu1 %v3280_v14, %s4065_s30 }
  0xa9   : > { %3311 = vrot.lane.b32.xlu0 %v3280_v14, %s4067_s7  ;;  %346 = vrot.lane.b32.xlu1 %v4154_v13, %s4059_s25 }
  0xad   : > { %348 = vrot.lane.b32.xlu0 %v4149_v12, %s4059_s25  ;;  %368 = vrot.lane.b32.xlu1 %v4137_v9, %s4068_s8 }
  0xb1   : > { %297 = vrot.lane.b32.xlu0 %v4137_v9, %s4069_s9  ;;  %392 = vrot.lane.b32.xlu1 %v4137_v9, %s4070_s10 }
  0xb5   : > { %356 = vrot.lane.b32.xlu0 %v4137_v9, %s4071_s11  ;;  %416 = vrot.lane.b32.xlu1 %v4137_v9, %s4072_s12 }
  0xb9   : > { %380 = vrot.lane.b32.xlu0 %v4137_v9, %s4073_s13  ;;  %3316 = vrot.lane.b32.xlu1 %v3280_v14, %s4069_s9 }
  0xbd   : > { %404 = vrot.lane.b32.xlu0 %v4137_v9, %s4074_s14  ;;  %3321 = vrot.lane.b32.xlu1 %v3280_v14, %s4071_s11 }
  0xc1   : > { %428 = vrot.lane.b32.xlu0 %v4137_v9, %s4075_s15  ;;  %3326 = vrot.lane.b32.xlu1 %v3280_v14, %s4068_s8 }
  0xc5   : > { %3331 = vrot.lane.b32.xlu0 %v3280_v14, %s4073_s13  ;;  %3336 = vrot.lane.b32.xlu1 %v3280_v14, %s4070_s10 }
  0xc9   : > { %3341 = vrot.lane.b32.xlu0 %v3280_v14, %s4074_s14  ;;  %3346 = vrot.lane.b32.xlu1 %v3280_v14, %s4072_s12 }
  0xcd   : > { %3351 = vrot.lane.b32.xlu0 %v3280_v14, %s4075_s15  ;;  %3356 = vrot.lane.b32.xlu1 %v3280_v14, %s4076_s16 }
  0xff   : > { %v274_v16 = vpop.permute.xlu1 %273  ;;  %v262_v17 = vpop.permute.xlu0 %261 }
 0x103   : > { %v4199_v18 = vpop.permute.xlu1 %3261  ;;  %v286_v19 = vpop.permute.xlu0 %285 }
 0x104   : > { %v3263_v56 = vunpack.i.l.bf16 %v4199_v18  ;;  %v3264_v63 = vunpack.i.h.bf16 %v4199_v18 }
 0x107   : > { %v4201_v20 = vpop.permute.xlu1 %3271  ;;  %v4203_v21 = vpop.permute.xlu0 %3266 }
 0x108   : > { %v3268_v43 = vunpack.i.l.bf16 %v4203_v21  ;;  %v3273_v3 = vunpack.i.l.bf16 %v4201_v20  ;;  %v3269_v5 = vunpack.i.h.bf16 %v4203_v21 }
 0x10b   : > { %v3282_v22 = vpop.permute.xlu1 %3281  ;;  %v4205_v23 = vpop.permute.xlu0 %3276 }
 0x10c   : > { %v3284_v24 = vunpack.i.h.bf16 %v3282_v22  ;;  %v3283_v25 = vunpack.i.l.bf16 %v3282_v22 }
 0x10e   : > { %v2859_v26 = vpack.c.bf16 %v3284_v24, %v4149_v12  ;;  %v269_v27 = vsel %vm267_vm4, %v3283_v25, %v3284_v24  ;;  %v268_v28 = vsel %vm267_vm4, %v262_v17, %v3283_v25  ;;  %v3278_v17 = vunpack.i.l.bf16 %v4205_v23 }
 0x10f   : > { %v3287_v29 = vpop.permute.xlu1 %3286  ;;  %v4210_v30 = vpop.permute.xlu0 %344  ;;  %v3360_v31 = vpack.i.bf16 %v3284_v24, %v269_v27  ;;  %v2810_v32 = vpack.c.bf16 %v269_v27, %v4154_v13  ;;  %v3365_v33 = vpack.i.bf16 %v268_v28, %v4137_v9  ;;  %v2812_v34 = vpack.c.bf16 %v268_v28, %v4137_v9  ;;  %v566_v28 = vld [vmem:[%s5235_s1 + $0x8] sm:$0xff] }
 0x110   : > { %v3289_v35 = vunpack.i.h.bf16 %v3287_v29  ;;  %v3288_v36 = vunpack.i.l.bf16 %v3287_v29  ;;  %2860 = vmatpush1.bf16.msra.mxu1 %v2859_v26  ;;  %2783 = vmatprep.mubr.msk.f32.mxu1 %vm5244_vm10, %v566_v28 }
 0x111   : > { %3361 = vrot.lane.b32.xlu0 %v3360_v31, %s4076_s16  ;;  %2811 = vmatprep.subr.bf16.mxu0 %v2810_v32 }
 0x112   : > { %3366 = vrot.lane.b32.xlu1 %v3365_v33, %s4076_s16  ;;  %2813 = vmatpush1.bf16.msra.mxu0 %v2812_v34  ;;  %v281_v37 = vsel %vm279_vm5, %v3288_v36, %v3289_v35  ;;  %v280_v48 = vsel %vm279_vm5, %v274_v16, %v3288_v36  ;;  %v4077_v36 = vmov 0  }
 0x113   : > { %v3297_v38 = vpop.permute.xlu1 %3296  ;;  %v3292_v39 = vpop.permute.xlu0 %3291  ;;  %v3370_v40 = vpack.i.bf16 %v3289_v35, %v281_v37  ;;  %2861 = vmatprep.subr.bf16.mxu1 %v4062_v10  ;;  %2782 = vmatprep.mubr.msk.f32.mxu0 %vm5244_vm10, %v566_v28 }
 0x114   : > { %v3294_v41 = vunpack.i.h.bf16 %v3292_v39  ;;  %v3293_v42 = vunpack.i.l.bf16 %v3292_v39  ;;  %v4220_v44 = vunpack.i.h.bf16 %v3297_v38  ;;  %v3298_v45 = vunpack.i.l.bf16 %v3297_v38  ;;  %3415 = vset.pattern.permute.xlu0 %v4077_v36  ;;  %3416 = vset.pattern.permute.xlu1 %v4077_v36 }
 0x115   : > { %3371 = vrot.lane.b32.xlu0 %v3370_v40, %s4076_s16 }
 0x116   : > { %v2862_v46 = vpack.c.bf16 %v3294_v41, %v3289_v35  ;;  %v293_v47 = vsel %vm5247_vm6, %v3293_v42, %v3294_v41  ;;  %v292_v49 = vsel %vm5247_vm6, %v286_v19, %v3293_v42  ;;  %v4232_v61 = vsel %vm315_vm7, %v3298_v45, %v4220_v44  ;;  %v712_v42 = vld [vmem:[%s5236_s2] sm:$0xff] }
 0x117   : > { %v3307_v50 = vpop.permute.xlu1 %3306  ;;  %v3302_v51 = vpop.permute.xlu0 %3301  ;;  %v3375_v52 = vpack.i.bf16 %v3294_v41, %v293_v47  ;;  %v2814_v53 = vpack.c.bf16 %v293_v47, %v281_v37  ;;  %v3380_v54 = vpack.i.bf16 %v292_v49, %v280_v48  ;;  %v2816_v55 = vpack.c.bf16 %v292_v49, %v280_v48 }
 0x118   : > { %v3304_v57 = vunpack.i.h.bf16 %v3302_v51  ;;  %v3303_v58 = vunpack.i.l.bf16 %v3302_v51  ;;  %2863 = vmatpush1.bf16.msra.mxu1 %v2862_v46  ;;  %v4227_v59 = vunpack.i.h.bf16 %v3307_v50  ;;  %v3308_v60 = vunpack.i.l.bf16 %v3307_v50 }
 0x119   : > { %3376 = vrot.lane.b32.xlu1 %v3375_v52, %s4076_s16  ;;  %2815 = vmatprep.subr.bf16.mxu0 %v2814_v53  ;;  %v455_v62 = vsel %vm315_vm7, %v4220_v44, %v3268_v43  ;;  %v316_v18 = vsel %vm315_vm7, %v3269_v5, %v3298_v45  ;;  %v3279_v19 = vunpack.i.h.bf16 %v4205_v23  ;;  %v3274_v23 = vunpack.i.h.bf16 %v4201_v20 }
 0x11a   : > { %3381 = vrot.lane.b32.xlu0 %v3380_v54, %s4076_s16  ;;  %2817 = vmatpush1.bf16.msra.mxu0 %v2816_v55  ;;  %v451_v1 = vsel %vm5246_vm8, %v3303_v58, %v3304_v57  ;;  %v452_v2 = vsel %vm5246_vm8, %v3304_v57, %v3263_v56  ;;  %v3390_v12 = vpack.i.bf16 %v455_v62, %v4232_v61 }
 0x11b   : > { %v347_v6 = vpop.permute.xlu1 %346  ;;  %v3312_v7 = vpop.permute.xlu0 %3311  ;;  %v3385_v8 = vpack.i.bf16 %v452_v2, %v451_v1  ;;  %2864 = vmatprep.subr.bf16.mxu1 %v4062_v10  ;;  %v450_v13 = vsel %vm5246_vm8, %v3264_v63, %v3303_v58  ;;  %v4250_v14 = vsel %vm5245_vm9, %v3308_v60, %v4227_v59  ;;  %v458_v16 = vsel %vm5245_vm9, %v4227_v59, %v3273_v3 }
 0x11c   : > { %v4243_v9 = vunpack.i.h.bf16 %v3312_v7  ;;  %v3313_v11 = vunpack.i.l.bf16 %v3312_v7  ;;  %v3395_v24 = vpack.i.bf16 %v316_v18, %v450_v13  ;;  %v3400_v25 = vpack.i.bf16 %v458_v16, %v4250_v14 }
 0x11d   : > { %3386 = vrot.lane.b32.xlu1 %v3385_v8, %s4076_s16  ;;  %v328_v34 = vsel %vm5245_vm9, %v3274_v23, %v3308_v60  ;;  %v351_v46 = vsel %vm350_vm11, %v4210_v30, %v347_v6  ;;  %v721_v30 = vld [vmem:[%s5237_s3] sm:$0xff] }
 0x11e   : > { %3391 = vrot.lane.b32.xlu0 %v3390_v12, %s4076_s16  ;;  %v340_v26 = vsel %vm252_vm3, %v3313_v11, %v4243_v9  ;;  %v461_v27 = vsel %vm252_vm3, %v4243_v9, %v3278_v17  ;;  %v339_v29 = vsel %vm252_vm3, %v3279_v19, %v3313_v11  ;;  %v2868_v55 = vpack.c.bf16 %v4243_v9, %v4227_v59 }
 0x11f   : > { %v4258_v21 = vpop.permute.xlu1 %368  ;;  %v4260_v22 = vpop.permute.xlu0 %348  ;;  %v3405_v33 = vpack.i.bf16 %v461_v27, %v340_v26  ;;  %v3410_v35 = vpack.i.bf16 %v339_v29, %v328_v34  ;;  %v2824_v60 = vpack.c.bf16 %v339_v29, %v328_v34 }
 0x120   : > { %v352_v38 = vsel %vm350_vm11, %v347_v6, %v4260_v22  ;;  %v464_v39 = vsel %vm350_vm11, %v4260_v22, %v4197_v15 }
 0x121   : > { %3396 = vrot.lane.b32.xlu1 %v3395_v24, %s4076_s16 }
 0x122   : > { %3401 = vrot.lane.b32.xlu0 %v3400_v25, %s4076_s16 }
 0x123   : > { %v4276_v31 = vpop.permute.xlu1 %392  ;;  %v298_v32 = vpop.permute.xlu0 %297 }
 0x125   : > { %3406 = vrot.lane.b32.xlu1 %v3405_v33, %s4076_s16 }
 0x126   : > { %3411 = vrot.lane.b32.xlu0 %v3410_v35, %s4076_s16 }
 0x127   : > { %v4281_v20 = vpop.permute.xlu1 %416  ;;  %v357_v37 = vpop.permute.xlu0 %356 }
 0x129   : > { %515 = vrot.lane.b32.xlu1 %v352_v38, %s4076_s16 }
 0x12a   : > { %517 = vrot.lane.b32.xlu0 %v464_v39, %s4076_s16 }
 0x12b   : > { %v3317_v40 = vpop.permute.xlu1 %3316  ;;  %v381_v41 = vpop.permute.xlu0 %380 }
 0x12c   : > { %v3319_v43 = vunpack.i.h.bf16 %v3317_v40  ;;  %v3318_v45 = vunpack.i.l.bf16 %v3317_v40 }
 0x12d   : > { %513 = vrot.lane.b32.xlu1 %v351_v46, %s4076_s16 }
 0x12e   : > { %v2865_v47 = vpack.c.bf16 %v4220_v44, %v3319_v43  ;;  %v305_v15 = vsel %vm5241_vm12, %v3318_v45, %v3319_v43  ;;  %v304_v48 = vsel %vm5241_vm12, %v298_v32, %v3318_v45  ;;  %715 = vperm.xlu0 %3415, %v712_v42   ;;  %v2822_v44 = vpack.c.bf16 %v340_v26, %v4250_v14 }
 0x12f   : > { %v3322_v49 = vpop.permute.xlu1 %3321  ;;  %v4299_v50 = vpop.permute.xlu0 %404  ;;  %v2818_v51 = vpack.c.bf16 %v4232_v61, %v305_v15  ;;  %v2820_v52 = vpack.c.bf16 %v316_v18, %v304_v48  ;;  %vm422_vm12 = vcmask 687104  }
 0x130   : > { %v3324_v53 = vunpack.i.h.bf16 %v3322_v49  ;;  %v3323_v54 = vunpack.i.l.bf16 %v3322_v49  ;;  %2866 = vmatpush1.bf16.msra.mxu1 %v2865_v47 }
 0x131   : > { %2819 = vmatprep.subr.bf16.mxu0 %v2818_v51  ;;  %2867 = vmatprep.subr.bf16.mxu1 %v4062_v10 }
 0x132   : > { %2821 = vmatpush1.bf16.msra.mxu0 %v2820_v52  ;;  %v364_v56 = vsel %vm5240_vm13, %v3323_v54, %v3324_v53  ;;  %724 = vperm.xlu1 %3416, %v721_v30   ;;  %v363_v1 = vsel %vm5240_vm13, %v357_v37, %v3323_v54  ;;  %v2871_v2 = vpack.c.bf16 %v3324_v53, %v4260_v22  ;;  %vm5243_vm13 = vcmask 695296  }
 0x133   : > { %v3327_v57 = vpop.permute.xlu1 %3326  ;;  %v4310_v58 = vpop.permute.xlu0 %428  ;;  %2823 = vmatprep.subr.bf16.mxu0 %v2822_v44  ;;  %v2826_v63 = vpack.c.bf16 %v364_v56, %v352_v38  ;;  %v2828_v7 = vpack.c.bf16 %v363_v1, %v351_v46 }
 0x134   : > { %2869 = vmatpush1.bf16.msra.mxu1 %v2868_v55  ;;  %v3329_v61 = vunpack.i.h.bf16 %v3327_v57  ;;  %v3328_v62 = vunpack.i.l.bf16 %v3327_v57 }
 0x135   : > { %2870 = vmatprep.subr.bf16.mxu1 %v4062_v10 }
 0x136   : > { %2825 = vmatpush1.bf16.msra.mxu0 %v2824_v60  ;;  %v376_v11 = vsel %vm374_vm14, %v3328_v62, %v3329_v61  ;;  %v375_v14 = vsel %vm374_vm14, %v4258_v21, %v3328_v62 }
 0x137   : > { %v3337_v59 = vpop.permute.xlu1 %3336  ;;  %v3332_v3 = vpop.permute.xlu0 %3331  ;;  %2827 = vmatprep.subr.bf16.mxu0 %v2826_v63 }
 0x138   : > { %v3334_v5 = vunpack.i.h.bf16 %v3332_v3  ;;  %v3333_v6 = vunpack.i.l.bf16 %v3332_v3  ;;  %2872 = vmatpush1.bf16.msra.mxu1 %v2871_v2  ;;  %v3339_v8 = vunpack.i.h.bf16 %v3337_v59  ;;  %v3338_v9 = vunpack.i.l.bf16 %v3337_v59 }
 0x139   : > { %2873 = vmatprep.subr.bf16.mxu1 %v4062_v10 }
 0x13a   : > { %2829 = vmatpush1.bf16.msra.mxu0 %v2828_v7  ;;  %v2874_v12 = vpack.c.bf16 %v3334_v5, %v3329_v61  ;;  %v388_v13 = vsel %vm5242_vm15, %v3333_v6, %v3334_v5  ;;  %v387_v16 = vsel %vm5242_vm15, %v381_v41, %v3333_v6  ;;  %v400_v28 = vsel %vm398_vm0, %v3338_v9, %v3339_v8 }
 0x13b   : > { %v3347_v17 = vpop.permute.xlu1 %3346  ;;  %v3342_v18 = vpop.permute.xlu0 %3341  ;;  %v2830_v19 = vpack.c.bf16 %v388_v13, %v376_v11  ;;  %v2832_v22 = vpack.c.bf16 %v387_v16, %v375_v14  ;;  %v399_v29 = vsel %vm398_vm0, %v4276_v31, %v3338_v9  ;;  %vm434_vm15 = vcmask 556032  }
 0x13c   : > { %v3344_v24 = vunpack.i.h.bf16 %v3342_v18  ;;  %v3343_v25 = vunpack.i.l.bf16 %v3342_v18  ;;  %2875 = vmatpush1.bf16.msra.mxu1 %v2874_v12  ;;  %v3349_v26 = vunpack.i.h.bf16 %v3347_v17  ;;  %v3348_v27 = vunpack.i.l.bf16 %v3347_v17 }
 0x13d   : > { %2831 = vmatprep.subr.bf16.mxu0 %v2830_v19  ;;  %2876 = vmatprep.subr.bf16.mxu1 %v4062_v10 }
 0x13e   : > { %2833 = vmatpush1.bf16.msra.mxu0 %v2832_v22  ;;  %v2877_v21 = vpack.c.bf16 %v3344_v24, %v3339_v8  ;;  %v412_v23 = vsel %vm5243_vm13, %v3343_v25, %v3344_v24  ;;  %v411_v32 = vsel %vm5243_vm13, %v4299_v50, %v3343_v25  ;;  %v424_v38 = vsel %vm422_vm12, %v3348_v27, %v3349_v26 }
 0x13f   : > { %v3352_v33 = vpop.permute.xlu0 %3351  ;;  %v2834_v34 = vpack.c.bf16 %v412_v23, %v400_v28  ;;  %v2836_v35 = vpack.c.bf16 %v411_v32, %v399_v29  ;;  %v423_v31 = vsel %vm422_vm12, %v4281_v20, %v3348_v27  ;;  %v3357_v45 = vpop.permute.xlu1 %3356  ;;  %vm519_vm13 = vcmask 547840  }
 0x140   : > { %v3354_v36 = vunpack.i.h.bf16 %v3352_v33  ;;  %v3353_v37 = vunpack.i.l.bf16 %v3352_v33  ;;  %2878 = vmatpush1.bf16.msra.mxu1 %v2877_v21  ;;  %v3359_v46 = vunpack.i.h.bf16 %v3357_v45  ;;  %v3358_v47 = vunpack.i.l.bf16 %v3357_v45 }
 0x141   : > { %2835 = vmatprep.subr.bf16.mxu0 %v2834_v34  ;;  %2879 = vmatprep.subr.bf16.mxu1 %v4062_v10 }
 0x142   : > { %2837 = vmatpush1.bf16.msra.mxu0 %v2836_v35  ;;  %v2880_v39 = vpack.c.bf16 %v3354_v36, %v3349_v26  ;;  %v436_v40 = vsel %vm434_vm15, %v3353_v37, %v3354_v36  ;;  %v435_v41 = vsel %vm434_vm15, %v4310_v58, %v3353_v37  ;;  %v521_v30 = vsel %vm519_vm13, %v3358_v47, %v3359_v46 }
 0x143   : > { %v2838_v42 = vpack.c.bf16 %v436_v40, %v424_v38  ;;  %v2840_v43 = vpack.c.bf16 %v435_v41, %v423_v31 }
 0x144   : > { %2881 = vmatpush1.bf16.msra.mxu1 %v2880_v39 }
 0x145   : > { %2839 = vmatprep.subr.bf16.mxu0 %v2838_v42  ;;  %2882 = vmatprep.subr.bf16.mxu1 %v4062_v10 }
 0x146   : > { %2841 = vmatpush1.bf16.msra.mxu0 %v2840_v43 }
 0x183   : > { %v3362_v15 = vpop.permute.xlu0 %3361 }
 0x184   : > { %v3367_v48 = vpop.permute.xlu1 %3366  ;;  %v3364_v49 = vunpack.i.h.bf16 %v3362_v15  ;;  %v3363_v50 = vunpack.i.l.bf16 %v3362_v15 }
 0x185   : > { %v3369_v51 = vunpack.i.h.bf16 %v3367_v48  ;;  %v3368_v20 = vunpack.i.l.bf16 %v3367_v48 }
 0x186   : > { %v2883_v52 = vpack.c.bf16 %v3364_v49, %v3359_v46  ;;  %v523_v53 = vsel %vm519_vm13, %v3363_v50, %v3364_v49 }
 0x187   : > { %v3372_v54 = vpop.permute.xlu0 %3371  ;;  %v2842_v44 = vpack.c.bf16 %v523_v53, %v521_v30  ;;  %v520_v55 = vsel %vm519_vm13, %v3368_v20, %v3358_v47  ;;  %v522_v56 = vsel %vm519_vm13, %v3369_v51, %v3363_v50  ;;  %v565_v50 = vld [vmem:[%s5235_s1] sm:$0xff] }
 0x188   : > { %2884 = vmatpush1.bf16.msra.mxu1 %v2883_v52  ;;  %v2844_v57 = vpack.c.bf16 %v522_v56, %v520_v55  ;;  %v3374_v58 = vunpack.i.h.bf16 %v3372_v54  ;;  %v3373_v60 = vunpack.i.l.bf16 %v3372_v54  ;;  %v737_v52 = vlaneseq }
 0x189   : > { %2843 = vmatprep.subr.bf16.mxu0 %v2842_v44  ;;  %2885 = vmatprep.subr.bf16.mxu1 %v4062_v10 }
 0x18a   : > { %2845 = vmatpush1.bf16.msra.mxu0 %v2844_v57  ;;  %v525_v5 = vsel %vm519_vm13, %v3373_v60, %v3374_v58  ;;  %v738_v56 = vshrl.u32 %v737_v52, 7 }
 0x18b   : > { %v3377_v61 = vpop.permute.xlu1 %3376 }
 0x18c   : > { %v3379_v62 = vunpack.i.h.bf16 %v3377_v61  ;;  %v3378_v63 = vunpack.i.l.bf16 %v3377_v61  ;;  %v3382_v1 = vpop.permute.xlu0 %3381 }
 0x18d   : > { %v3384_v2 = vunpack.i.h.bf16 %v3382_v1  ;;  %v3383_v59 = vunpack.i.l.bf16 %v3382_v1  ;;  %v743_v1 = vsub.s32 1, %v738_v56 }
 0x18e   : > { %v2886_v3 = vpack.c.bf16 %v3379_v62, %v3374_v58  ;;  %v527_v6 = vsel %vm519_vm13, %v3378_v63, %v3379_v62  ;;  %v739_v62 = vsub.s32 0, %v738_v56 }
 0x18f   : > { %v3387_v7 = vpop.permute.xlu1 %3386  ;;  %v2846_v8 = vpack.c.bf16 %v527_v6, %v525_v5  ;;  %v524_v9 = vsel %vm519_vm13, %v3383_v59, %v3373_v60  ;;  %v526_v11 = vsel %vm519_vm13, %v3384_v2, %v3378_v63 }
 0x190   : > { %v3389_v12 = vunpack.i.h.bf16 %v3387_v7  ;;  %v3388_v13 = vunpack.i.l.bf16 %v3387_v7  ;;  %v3392_v14 = vpop.permute.xlu0 %3391  ;;  %2887 = vmatpush1.bf16.msra.mxu1 %v2886_v3  ;;  %v2848_v16 = vpack.c.bf16 %v526_v11, %v524_v9  ;;  %v225_v3 = vld [vmem:[%s5238_s4] sm:$0x7] }
 0x191   : > { %v3394_v17 = vunpack.i.h.bf16 %v3392_v14  ;;  %v3393_v18 = vunpack.i.l.bf16 %v3392_v14  ;;  %2847 = vmatprep.subr.bf16.mxu0 %v2846_v8  ;;  %2888 = vmatprep.subr.bf16.mxu1 %v4062_v10  ;;  %v4365_v7 = vrot.slane %v225_v3, %v739_v62  ;;  %v747_v8 = vsub.s32 2, %v738_v56 }
 0x192   : > { %2849 = vmatpush1.bf16.msra.mxu0 %v2848_v16  ;;  %v529_v19 = vsel %vm519_vm13, %v3388_v13, %v3389_v12  ;;  %v4367_v11 = vrot.slane %v225_v3, %v743_v1 }
 0x193   : > { %v3397_v22 = vpop.permute.xlu1 %3396  ;;  %v2889_v24 = vpack.c.bf16 %v3394_v17, %v3389_v12  ;;  %v531_v25 = vsel %vm519_vm13, %v3393_v18, %v3394_v17  ;;  %v4370_v17 = vrot.slane %v225_v3, %v747_v8 }
 0x194   : > { %v3399_v26 = vunpack.i.h.bf16 %v3397_v22  ;;  %v3398_v27 = vunpack.i.l.bf16 %v3397_v22  ;;  %v3402_v28 = vpop.permute.xlu0 %3401  ;;  %v2850_v21 = vpack.c.bf16 %v531_v25, %v529_v19 }
 0x195   : > { %2890 = vmatpush1.bf16.msra.mxu1 %v2889_v24  ;;  %v3404_v23 = vunpack.i.h.bf16 %v3402_v28  ;;  %v3403_v29 = vunpack.i.l.bf16 %v3402_v28 }
 0x196   : > { %2851 = vmatprep.subr.bf16.mxu0 %v2850_v21  ;;  %v528_v32 = vsel %vm519_vm13, %v3398_v27, %v3388_v13  ;;  %v530_v33 = vsel %vm519_vm13, %v3399_v26, %v3393_v18  ;;  %2891 = vmatprep.subr.bf16.mxu1 %v4062_v10 }
 0x197   : > { %v3407_v34 = vpop.permute.xlu1 %3406  ;;  %v2852_v35 = vpack.c.bf16 %v530_v33, %v528_v32  ;;  %v533_v41 = vsel %vm519_vm13, %v3403_v29, %v3404_v23 }
 0x198   : > { %v3409_v36 = vunpack.i.h.bf16 %v3407_v34  ;;  %v3408_v37 = vunpack.i.l.bf16 %v3407_v34  ;;  %v3412_v38 = vpop.permute.xlu0 %3411 }
 0x199   : > { %v3414_v39 = vunpack.i.h.bf16 %v3412_v38  ;;  %v3413_v40 = vunpack.i.l.bf16 %v3412_v38  ;;  %2853 = vmatpush1.bf16.msra.mxu0 %v2852_v35 }
 0x19a   : > { %v2892_v31 = vpack.c.bf16 %v3409_v36, %v3404_v23  ;;  %v535_v42 = vsel %vm519_vm13, %v3408_v37, %v3409_v36 }
 0x19b   : > { %v516_v43 = vpop.permute.xlu1 %515  ;;  %v2854_v45 = vpack.c.bf16 %v535_v42, %v533_v41  ;;  %v532_v46 = vsel %vm519_vm13, %v3413_v40, %v3403_v29  ;;  %v534_v47 = vsel %vm519_vm13, %v3414_v39, %v3408_v37 }
 0x19c   : > { %v518_v15 = vpop.permute.xlu0 %517  ;;  %2893 = vmatpush1.bf16.msra.mxu1 %v2892_v31  ;;  %v2856_v48 = vpack.c.bf16 %v534_v47, %v532_v46 }
 0x19d   : > { %2855 = vmatprep.subr.bf16.mxu0 %v2854_v45  ;;  %690 = vmatprep.subr.mxu1 %v4057_v0  ;;  %v537_v49 = vsel %vm519_vm13, %v516_v43, %v518_v15 }
 0x19e   : > { %2857 = vmatpush1.bf16.msra.mxu0 %v2856_v48 }
 0x19f   : > { %v514_v51 = vpop.permute.xlu1 %513  ;;  %619 = vmatprep.subr.mxu0 %v537_v49 }
 0x1a0   : > { %691 = vmatpush1.msra.mxu1 %v518_v15  ;;  %v536_v20 = vsel %vm519_vm13, %v514_v51, %v516_v43 }
 0x1a1   : > { %707 = vmatmul.mubr.f32.vlgmr.msra.gmra.mrb[0].mxu1 %v565_v50  ;;  %2942 = vmatprep.subr.bf16.mxu1 %v4062_v10 }
 0x1a2   : > { %620 = vmatpush1.msra.mxu0 %v536_v20 }
 0x1a3   : > { %636 = vmatmul.mubr.f32.vlgmr.msra.gmra.mrb[0].mxu0 %v565_v50 }
 0x1ad   : > { %v716_v30 = vpop.permute.xlu0 %715 }
 0x1b1   : > { %v725_v54 = vpop.permute.xlu1 %724 }
 0x274   : > { %v708_v53 = vpop.f32.mrb[0].mxu1 }
 0x275   : > { %v720_v44 = vmul.f32 %v716_v30, %v708_v53  ;;  %v710_v55 = vpop.f32.mrb[1].mxu1 }
 0x276   : > { %v637_v57 = vpop.f32.mrb[0].mxu0 }
 0x277   : > { %v729_v58 = vadd.f32 %v725_v54, %v720_v44  ;;  %v718_v60 = vmul.f32 %v716_v30, %v637_v57  ;;  %v639_v61 = vpop.f32.mrb[1].mxu0 }
 0x278   : > { %v719_v63 = vmul.f32 %v716_v30, %v639_v61 }
 0x279   : > { %v727_v2 = vadd.f32 %v725_v54, %v718_v60  ;;  %v732_v5 = vmul.f32 0.01, %v729_v58 }
 0x27a   : > { %v728_v59 = vadd.f32 %v725_v54, %v719_v63 }
 0x27b   : > { %v730_v6 = vmul.f32 0.01, %v727_v2  ;;  %v735_v16 = vmax.f32 %v729_v58, %v732_v5 }
 0x27c   : > { %v731_v9 = vmul.f32 0.01, %v728_v59 }
 0x27d   : > { %v733_v12 = vmax.f32 %v727_v2, %v730_v6  ;;  %v754_v19 = vmul.f32 %v4370_v17, %v735_v16 }
 0x27e   : > { %v734_v13 = vmax.f32 %v728_v59, %v731_v9 }
 0x27f   : > { %v752_v14 = vmul.f32 %v4365_v7, %v733_v12 }
 0x280   : > { %v753_v18 = vmul.f32 %v4367_v11, %v734_v13 }
 0x281   : > { %758 = vrot.lane.b32.xlu1 %v752_v14, %s4058_s24 }
 0x282   : > { %760 = vrot.lane.b32.xlu0 %v753_v18, %s4058_s24 }
 0x285   : > { %762 = vrot.lane.b32.xlu1 %v754_v19, %s4058_s24 }
 0x286   : > { %965 = vrot.lane.b32.xlu0 %v4129_v4, %s4059_s25 }
 0x2f3   : > { %v759_v22 = vpop.permute.xlu1 %758 }
 0x2f4   : > { %769 = vst.msk [vmem:[#allocation2] sm:$0xff] %vm249_vm1, %v759_v22  ;;  %v761_v24 = vpop.permute.xlu0 %760 }
 0x2f5   : > { %v764_v23 = vsel %vm243_vm2, %v759_v22, %v761_v24 }
 0x2f7   : > { %v763_v25 = vpop.permute.xlu1 %762 }
 0x2f8   : > { %v765_v26 = vsel %vm243_vm2, %v761_v24, %v763_v25 }
 0x2f9   : > { %771 = vst.msk [vmem:[#allocation2 + $0x10] sm:$0xff] %vm252_vm3, %v765_v26 }
 0x2fb   : > { %v4382_v27 = vld [vmem:[#allocation2] sm:$0xff] }
 0x2fc   : > { %779 = vrot.lane.b32.xlu1 %v4382_v27, %s4061_s27  ;;  %790 = vrot.lane.b32.xlu0 %v4382_v27, %s4060_s26  ;;  %v3417_v28 = vpack.i.bf16 %v4382_v27, %v4129_v4  ;;  %v4433_v4 = vpop.permute.xlu0 %965 }
 0x300   : > { %801 = vrot.lane.b32.xlu1 %v4382_v27, %s4064_s29  ;;  %3418 = vrot.lane.b32.xlu0 %v3417_v28, %s4063_s28  ;;  %v774_v21 = vld [vmem:[#allocation2 + $0x10] sm:$0xff] }
 0x301   : > { %v3437_v29 = vpack.i.bf16 %v774_v21, %v764_v23 }
 0x304   : > { %3423 = vrot.lane.b32.xlu1 %v3417_v28, %s4066_s6  ;;  %3428 = vrot.lane.b32.xlu0 %v3417_v28, %s4065_s30 }
 0x308   : > { %3433 = vrot.lane.b32.xlu1 %v3417_v28, %s4067_s7  ;;  %3438 = vrot.lane.b32.xlu0 %v3437_v29, %s4061_s27 }
 0x30c   : > { %856 = vrot.lane.b32.xlu1 %v4382_v27, %s4059_s25  ;;  %3443 = vrot.lane.b32.xlu0 %v3437_v29, %s4060_s26 }
 0x310   : > { %3448 = vrot.lane.b32.xlu1 %v3437_v29, %s4064_s29  ;;  %3453 = vrot.lane.b32.xlu0 %v3437_v29, %s4066_s6 }
 0x314   : > { %3458 = vrot.lane.b32.xlu1 %v3437_v29, %s4063_s28  ;;  %3463 = vrot.lane.b32.xlu0 %v3437_v29, %s4065_s30 }
 0x318   : > { %3468 = vrot.lane.b32.xlu1 %v3437_v29, %s4067_s7  ;;  %858 = vrot.lane.b32.xlu0 %v764_v23, %s4059_s25 }
 0x31c   : > { %860 = vrot.lane.b32.xlu1 %v774_v21, %s4059_s25  ;;  %878 = vrot.lane.b32.xlu0 %v4382_v27, %s4068_s8 }
 0x320   : > { %812 = vrot.lane.b32.xlu1 %v4382_v27, %s4069_s9  ;;  %900 = vrot.lane.b32.xlu0 %v4382_v27, %s4070_s10 }
 0x324   : > { %867 = vrot.lane.b32.xlu1 %v4382_v27, %s4071_s11  ;;  %922 = vrot.lane.b32.xlu0 %v4382_v27, %s4072_s12 }
 0x328   : > { %889 = vrot.lane.b32.xlu1 %v4382_v27, %s4073_s13  ;;  %3473 = vrot.lane.b32.xlu0 %v3437_v29, %s4069_s9 }
 0x32c   : > { %911 = vrot.lane.b32.xlu1 %v4382_v27, %s4074_s14  ;;  %3478 = vrot.lane.b32.xlu0 %v3437_v29, %s4071_s11 }
 0x330   : > { %933 = vrot.lane.b32.xlu1 %v4382_v27, %s4075_s15  ;;  %3483 = vrot.lane.b32.xlu0 %v3437_v29, %s4068_s8 }
 0x334   : > { %3488 = vrot.lane.b32.xlu1 %v3437_v29, %s4073_s13  ;;  %3493 = vrot.lane.b32.xlu0 %v3437_v29, %s4070_s10 }
 0x338   : > { %3498 = vrot.lane.b32.xlu1 %v3437_v29, %s4074_s14  ;;  %3503 = vrot.lane.b32.xlu0 %v3437_v29, %s4072_s12 }
 0x33c   : > { %3508 = vrot.lane.b32.xlu1 %v3437_v29, %s4075_s15  ;;  %3513 = vrot.lane.b32.xlu0 %v3437_v29, %s4076_s16 }
 0x36e   : > { %v780_v32 = vpop.permute.xlu1 %779  ;;  %v791_v33 = vpop.permute.xlu0 %790 }
 0x372   : > { %v802_v34 = vpop.permute.xlu1 %801  ;;  %v4435_v35 = vpop.permute.xlu0 %3418 }
 0x373   : > { %v3420_v58 = vunpack.i.l.bf16 %v4435_v35  ;;  %v3421_v18 = vunpack.i.h.bf16 %v4435_v35 }
 0x376   : > { %v4437_v36 = vpop.permute.xlu1 %3423  ;;  %v4439_v37 = vpop.permute.xlu0 %3428 }
 0x377   : > { %v3425_v1 = vunpack.i.l.bf16 %v4437_v36  ;;  %v3430_v26 = vunpack.i.l.bf16 %v4439_v37  ;;  %v3426_v28 = vunpack.i.h.bf16 %v4437_v36 }
 0x37a   : > { %v4441_v38 = vpop.permute.xlu1 %3433  ;;  %v3439_v39 = vpop.permute.xlu0 %3438 }
 0x37b   : > { %v3441_v40 = vunpack.i.h.bf16 %v3439_v39  ;;  %v3440_v31 = vunpack.i.l.bf16 %v3439_v39  ;;  %v3436_v39 = vunpack.i.h.bf16 %v4441_v38 }
 0x37d   : > { %v2943_v41 = vpack.c.bf16 %v3441_v40, %v774_v21  ;;  %v786_v42 = vsel %vm267_vm4, %v3440_v31, %v3441_v40  ;;  %v785_v43 = vsel %vm267_vm4, %v780_v32, %v3440_v31 }
 0x37e   : > { %v4445_v45 = vpop.permute.xlu1 %856  ;;  %v3444_v46 = vpop.permute.xlu0 %3443  ;;  %v3517_v47 = vpack.i.bf16 %v3441_v40, %v786_v42  ;;  %v2894_v15 = vpack.c.bf16 %v786_v42, %v764_v23  ;;  %v3522_v48 = vpack.i.bf16 %v785_v43, %v4382_v27  ;;  %v2896_v49 = vpack.c.bf16 %v785_v43, %v4382_v27 }
 0x37f   : > { %v3446_v50 = vunpack.i.h.bf16 %v3444_v46  ;;  %v3445_v51 = vunpack.i.l.bf16 %v3444_v46  ;;  %2944 = vmatpush1.bf16.msra.mxu1 %v2943_v41  ;;  %v3435_v40 = vunpack.i.l.bf16 %v4441_v38  ;;  %v3431_v43 = vunpack.i.h.bf16 %v4439_v37 }
 0x380   : > { %3518 = vrot.lane.b32.xlu1 %v3517_v47, %s4076_s16  ;;  %2895 = vmatprep.subr.bf16.mxu0 %v2894_v15 }
 0x381   : > { %3523 = vrot.lane.b32.xlu0 %v3522_v48, %s4076_s16  ;;  %2897 = vmatpush1.bf16.msra.mxu0 %v2896_v49  ;;  %v797_v20 = vsel %vm279_vm5, %v3445_v51, %v3446_v50  ;;  %v796_v3 = vsel %vm279_vm5, %v791_v33, %v3445_v51  ;;  %v2785_v48 = vld [vmem:[%s5235_s1 + $0x18] sm:$0xff] }
 0x382   : > { %v3449_v52 = vpop.permute.xlu1 %3448  ;;  %v3454_v30 = vpop.permute.xlu0 %3453  ;;  %v3527_v53 = vpack.i.bf16 %v3446_v50, %v797_v20  ;;  %2945 = vmatprep.subr.bf16.mxu1 %v4062_v10  ;;  %2787 = vmatprep.mubr.msk.f32.mxu1 %vm5244_vm10, %v2785_v48 }
 0x383   : > { %v3451_v54 = vunpack.i.h.bf16 %v3449_v52  ;;  %v3450_v44 = vunpack.i.l.bf16 %v3449_v52  ;;  %v4454_v55 = vunpack.i.h.bf16 %v3454_v30  ;;  %v3455_v56 = vunpack.i.l.bf16 %v3454_v30  ;;  %2786 = vmatprep.mubr.msk.f32.mxu0 %vm5244_vm10, %v2785_v48 }
 0x384   : > { %3528 = vrot.lane.b32.xlu1 %v3527_v53, %s4076_s16  ;;  %vm5248_vm10 = vcmask 1014784  }
 0x385   : > { %v2946_v57 = vpack.c.bf16 %v3451_v54, %v3446_v50  ;;  %v807_v62 = vsel %vm5247_vm6, %v802_v34, %v3450_v44  ;;  %v808_v63 = vsel %vm5247_vm6, %v3450_v44, %v3451_v54  ;;  %v958_v12 = vsel %vm315_vm7, %v4454_v55, %v3425_v1 }
 0x386   : > { %v3459_v60 = vpop.permute.xlu1 %3458  ;;  %v3464_v61 = vpop.permute.xlu0 %3463  ;;  %v3537_v5 = vpack.i.bf16 %v807_v62, %v796_v3  ;;  %v2900_v6 = vpack.c.bf16 %v807_v62, %v796_v3  ;;  %v3532_v8 = vpack.i.bf16 %v3451_v54, %v808_v63  ;;  %v2898_v9 = vpack.c.bf16 %v808_v63, %v797_v20 }
 0x387   : > { %v3461_v2 = vunpack.i.h.bf16 %v3459_v60  ;;  %v3460_v59 = vunpack.i.l.bf16 %v3459_v60  ;;  %2947 = vmatpush1.bf16.msra.mxu1 %v2946_v57  ;;  %v4466_v13 = vsel %vm315_vm7, %v3455_v56, %v4454_v55  ;;  %v4468_v14 = vunpack.i.h.bf16 %v3464_v61 }
 0x388   : > { %2948 = vmatprep.subr.bf16.mxu1 %v4062_v10  ;;  %v3465_v16 = vunpack.i.l.bf16 %v3464_v61  ;;  %3538 = vrot.lane.b32.xlu1 %v3537_v5, %s4076_s16  ;;  %v3547_v23 = vpack.i.bf16 %v958_v12, %v4466_v13  ;;  %v829_v31 = vsel %vm315_vm7, %v3426_v28, %v3455_v56 }
 0x389   : > { %3533 = vrot.lane.b32.xlu0 %v3532_v8, %s4076_s16  ;;  %v954_v24 = vsel %vm5246_vm8, %v3460_v59, %v3461_v2  ;;  %v955_v25 = vsel %vm5246_vm8, %v3461_v2, %v3420_v58  ;;  %2899 = vmatprep.subr.bf16.mxu0 %v2898_v9  ;;  %v953_v21 = vsel %vm5246_vm8, %v3421_v18, %v3460_v59  ;;  %v2788_v58 = vld [vmem:[%s5236_s2 + $0x8] sm:$0xff] }
 0x38a   : > { %v3469_v19 = vpop.permute.xlu1 %3468  ;;  %v859_v22 = vpop.permute.xlu0 %858  ;;  %v3542_v27 = vpack.i.bf16 %v955_v25, %v954_v24  ;;  %2901 = vmatpush1.bf16.msra.mxu0 %v2900_v6  ;;  %v4481_v29 = vsel %vm5245_vm9, %v3465_v16, %v4468_v14  ;;  %v961_v32 = vsel %vm5245_vm9, %v4468_v14, %v3430_v26  ;;  %v3552_v42 = vpack.i.bf16 %v829_v31, %v953_v21 }
 0x38b   : > { %v3471_v33 = vunpack.i.h.bf16 %v3469_v19  ;;  %v3470_v34 = vunpack.i.l.bf16 %v3469_v19  ;;  %v3557_v41 = vpack.i.bf16 %v961_v32, %v4481_v29  ;;  %v840_v50 = vsel %vm5245_vm9, %v3431_v43, %v3465_v16  ;;  %vm5249_vm9 = vmmov %vm5248_vm10 }
 0x38c   : > { %3548 = vrot.lane.b32.xlu1 %v3547_v23, %s4076_s16 }
 0x38d   : > { %3543 = vrot.lane.b32.xlu0 %v3542_v27, %s4076_s16  ;;  %v964_v46 = vsel %vm252_vm3, %v3471_v33, %v3435_v40  ;;  %v851_v47 = vsel %vm252_vm3, %v3436_v39, %v3470_v34  ;;  %v852_v15 = vsel %vm252_vm3, %v3470_v34, %v3471_v33  ;;  %v2952_v6 = vpack.c.bf16 %v3471_v33, %v4468_v14 }
 0x38e   : > { %v4487_v35 = vpop.permute.xlu1 %860  ;;  %v4489_v36 = vpop.permute.xlu0 %878  ;;  %v3567_v37 = vpack.i.bf16 %v851_v47, %v840_v50  ;;  %v3562_v51 = vpack.i.bf16 %v964_v46, %v852_v15 }
 0x38f   : > { %v967_v30 = vsel %vm350_vm11, %v4487_v35, %v4433_v4  ;;  %v863_v53 = vsel %vm350_vm11, %v859_v22, %v4487_v35  ;;  %v862_v4 = vsel %vm350_vm11, %v4445_v45, %v859_v22  ;;  %v2906_v45 = vpack.c.bf16 %v852_v15, %v4481_v29 }
 0x390   : > { %3558 = vrot.lane.b32.xlu1 %v3557_v41, %s4076_s16 }
 0x391   : > { %3553 = vrot.lane.b32.xlu0 %v3552_v42, %s4076_s16 }
 0x392   : > { %v813_v38 = vpop.permute.xlu1 %812  ;;  %v4504_v49 = vpop.permute.xlu0 %900 }
 0x394   : > { %3568 = vrot.lane.b32.xlu1 %v3567_v37, %s4076_s16 }
 0x395   : > { %3563 = vrot.lane.b32.xlu0 %v3562_v51, %s4076_s16 }
 0x396   : > { %v868_v20 = vpop.permute.xlu1 %867  ;;  %v4511_v52 = vpop.permute.xlu0 %922 }
 0x398   : > { %1020 = vrot.lane.b32.xlu1 %v967_v30, %s4076_s16 }
 0x399   : > { %1018 = vrot.lane.b32.xlu0 %v863_v53, %s4076_s16 }
 0x39a   : > { %v890_v54 = vpop.permute.xlu1 %889  ;;  %v3474_v44 = vpop.permute.xlu0 %3473 }
 0x39b   : > { %v3476_v56 = vunpack.i.h.bf16 %v3474_v44  ;;  %v3475_v57 = vunpack.i.l.bf16 %v3474_v44 }
 0x39c   : > { %1218 = vperm.xlu1 %3416, %v2788_v58  }
 0x39d   : > { %v818_v60 = vsel %vm5248_vm10, %v813_v38, %v3475_v57  ;;  %v2949_v61 = vpack.c.bf16 %v4454_v55, %v3476_v56  ;;  %v819_v62 = vsel %vm5249_vm9, %v3475_v57, %v3476_v56  ;;  %1016 = vrot.lane.b32.xlu0 %v862_v4, %s4076_s16  ;;  %v2789_v55 = vld [vmem:[%s5237_s3 + $0x8] sm:$0xff]  ;;  %vm5250_vm9 = vcmask 850944  }
 0x39e   : > { %v912_v63 = vpop.permute.xlu1 %911  ;;  %v3479_v1 = vpop.permute.xlu0 %3478  ;;  %v2902_v2 = vpack.c.bf16 %v4466_v13, %v819_v62  ;;  %v2904_v59 = vpack.c.bf16 %v829_v31, %v818_v60  ;;  %v2908_v13 = vpack.c.bf16 %v851_v47, %v840_v50  ;;  %vm5251_vm10 = vmmov %vm5250_vm9 }
 0x39f   : > { %v3481_v3 = vunpack.i.h.bf16 %v3479_v1  ;;  %v3480_v5 = vunpack.i.l.bf16 %v3479_v1  ;;  %2950 = vmatpush1.bf16.msra.mxu1 %v2949_v61 }
 0x3a0   : > { %2903 = vmatprep.subr.bf16.mxu0 %v2902_v2  ;;  %2951 = vmatprep.subr.bf16.mxu1 %v4062_v10 }
 0x3a1   : > { %2905 = vmatpush1.bf16.msra.mxu0 %v2904_v59  ;;  %v874_v8 = vsel %vm5250_vm9, %v3480_v5, %v3481_v3  ;;  %1228 = vperm.xlu0 %3415, %v2789_v55   ;;  %v873_v16 = vsel %vm5251_vm10, %v868_v20, %v3480_v5  ;;  %v2955_v22 = vpack.c.bf16 %v3481_v3, %v4487_v35  ;;  %vm5252_vm9 = vcmask 711680  }
 0x3a2   : > { %v934_v9 = vpop.permute.xlu1 %933  ;;  %v3484_v12 = vpop.permute.xlu0 %3483  ;;  %2907 = vmatprep.subr.bf16.mxu0 %v2906_v45  ;;  %v2910_v19 = vpack.c.bf16 %v874_v8, %v863_v53  ;;  %v2912_v28 = vpack.c.bf16 %v873_v16, %v862_v4  ;;  %vm5253_vm10 = vmmov %vm5252_vm9 }
 0x3a3   : > { %2953 = vmatpush1.bf16.msra.mxu1 %v2952_v6  ;;  %v3485_v18 = vunpack.i.l.bf16 %v3484_v12  ;;  %v3486_v24 = vunpack.i.h.bf16 %v3484_v12 }
 0x3a4   : > { %2954 = vmatprep.subr.bf16.mxu1 %v4062_v10 }
 0x3a5   : > { %2909 = vmatpush1.bf16.msra.mxu0 %v2908_v13  ;;  %v884_v21 = vsel %vm374_vm14, %v4489_v36, %v3485_v18  ;;  %v885_v34 = vsel %vm374_vm14, %v3485_v18, %v3486_v24 }
 0x3a6   : > { %v3489_v25 = vpop.permute.xlu1 %3488  ;;  %v3494_v14 = vpop.permute.xlu0 %3493  ;;  %2911 = vmatprep.subr.bf16.mxu0 %v2910_v19 }
 0x3a7   : > { %v3491_v26 = vunpack.i.h.bf16 %v3489_v25  ;;  %v3490_v27 = vunpack.i.l.bf16 %v3489_v25  ;;  %2956 = vmatpush1.bf16.msra.mxu1 %v2955_v22  ;;  %v3496_v23 = vunpack.i.h.bf16 %v3494_v14  ;;  %v3495_v29 = vunpack.i.l.bf16 %v3494_v14 }
 0x3a8   : > { %2957 = vmatprep.subr.bf16.mxu1 %v4062_v10 }
 0x3a9   : > { %v895_v32 = vsel %vm5252_vm9, %v890_v54, %v3490_v27  ;;  %v2958_v33 = vpack.c.bf16 %v3491_v26, %v3486_v24  ;;  %2913 = vmatpush1.bf16.msra.mxu0 %v2912_v28  ;;  %v896_v35 = vsel %vm5253_vm10, %v3490_v27, %v3491_v26  ;;  %v906_v36 = vsel %vm398_vm0, %v4504_v49, %v3495_v29 }
 0x3aa   : > { %v3499_v39 = vpop.permute.xlu1 %3498  ;;  %v3504_v40 = vpop.permute.xlu0 %3503  ;;  %v2914_v31 = vpack.c.bf16 %v896_v35, %v885_v34  ;;  %v2916_v41 = vpack.c.bf16 %v895_v32, %v884_v21  ;;  %v907_v47 = vsel %vm398_vm0, %v3495_v29, %v3496_v23  ;;  %vm5254_vm9 = vcmask 695296  }
 0x3ab   : > { %v3501_v42 = vunpack.i.h.bf16 %v3499_v39  ;;  %v3500_v43 = vunpack.i.l.bf16 %v3499_v39  ;;  %2959 = vmatpush1.bf16.msra.mxu1 %v2958_v33  ;;  %v3505_v46 = vunpack.i.l.bf16 %v3504_v40  ;;  %v3506_v38 = vunpack.i.h.bf16 %v3504_v40  ;;  %vm5255_vm10 = vmmov %vm5254_vm9 }
 0x3ac   : > { %2915 = vmatprep.subr.bf16.mxu0 %v2914_v31  ;;  %2960 = vmatprep.subr.bf16.mxu1 %v4062_v10 }
 0x3ad   : > { %v917_v15 = vsel %vm5254_vm9, %v912_v63, %v3500_v43  ;;  %v2961_v48 = vpack.c.bf16 %v3501_v42, %v3496_v23  ;;  %2917 = vmatpush1.bf16.msra.mxu0 %v2916_v41  ;;  %v918_v50 = vsel %vm5255_vm10, %v3500_v43, %v3501_v42  ;;  %v928_v49 = vsel %vm422_vm12, %v4511_v52, %v3505_v46 }
 0x3ae   : > { %v3509_v37 = vpop.permute.xlu1 %3508  ;;  %v2918_v51 = vpack.c.bf16 %v918_v50, %v907_v47  ;;  %v2920_v20 = vpack.c.bf16 %v917_v15, %v906_v36  ;;  %v929_v56 = vsel %vm422_vm12, %v3505_v46, %v3506_v38  ;;  %v3514_v61 = vpop.permute.xlu0 %3513  ;;  %vm5256_vm9 = vcmask 875520  }
 0x3af   : > { %v3511_v30 = vunpack.i.h.bf16 %v3509_v37  ;;  %v3510_v53 = vunpack.i.l.bf16 %v3509_v37  ;;  %2962 = vmatpush1.bf16.msra.mxu1 %v2961_v48  ;;  %v3516_v52 = vunpack.i.h.bf16 %v3514_v61  ;;  %v3515_v4 = vunpack.i.l.bf16 %v3514_v61  ;;  %vm5257_vm10 = vmmov %vm5256_vm9 }
 0x3b0   : > { %2919 = vmatprep.subr.bf16.mxu0 %v2918_v51  ;;  %2963 = vmatprep.subr.bf16.mxu1 %v4062_v10 }
 0x3b1   : > { %v939_v54 = vsel %vm434_vm15, %v934_v9, %v3510_v53  ;;  %v2964_v44 = vpack.c.bf16 %v3511_v30, %v3506_v38  ;;  %2921 = vmatpush1.bf16.msra.mxu0 %v2920_v20  ;;  %v940_v57 = vsel %vm434_vm15, %v3510_v53, %v3511_v30  ;;  %v1023_v55 = vsel %vm519_vm13, %v3515_v4, %v3516_v52 }
 0x3b2   : > { %v2922_v58 = vpack.c.bf16 %v940_v57, %v929_v56  ;;  %v2924_v60 = vpack.c.bf16 %v939_v54, %v928_v49 }
 0x3b3   : > { %2965 = vmatpush1.bf16.msra.mxu1 %v2964_v44 }
 0x3b4   : > { %2923 = vmatprep.subr.bf16.mxu0 %v2922_v58  ;;  %2966 = vmatprep.subr.bf16.mxu1 %v4062_v10 }
 0x3b5   : > { %2925 = vmatpush1.bf16.msra.mxu0 %v2924_v60 }
 0x3f2   : > { %v3519_v62 = vpop.permute.xlu1 %3518 }
 0x3f3   : > { %v3521_v63 = vunpack.i.h.bf16 %v3519_v62  ;;  %v3520_v1 = vunpack.i.l.bf16 %v3519_v62  ;;  %v3524_v2 = vpop.permute.xlu0 %3523 }
 0x3f4   : > { %v3526_v59 = vunpack.i.h.bf16 %v3524_v2  ;;  %v3525_v3 = vunpack.i.l.bf16 %v3524_v2 }
 0x3f5   : > { %v2967_v5 = vpack.c.bf16 %v3521_v63, %v3516_v52  ;;  %v1025_v45 = vsel %vm519_vm13, %v3520_v1, %v3521_v63 }
 0x3f6   : > { %v1024_v6 = vsel %vm519_vm13, %v3526_v59, %v3520_v1  ;;  %v1022_v8 = vsel %vm519_vm13, %v3525_v3, %v3515_v4  ;;  %v3529_v9 = vpop.permute.xlu1 %3528  ;;  %v2926_v12 = vpack.c.bf16 %v1025_v45, %v1023_v55  ;;  %v2784_v3 = vld [vmem:[%s5235_s1 + $0x10] sm:$0xff] }
 0x3f7   : > { %2968 = vmatpush1.bf16.msra.mxu1 %v2967_v5  ;;  %v2928_v13 = vpack.c.bf16 %v1024_v6, %v1022_v8  ;;  %v3531_v16 = vunpack.i.h.bf16 %v3529_v9  ;;  %v3530_v18 = vunpack.i.l.bf16 %v3529_v9 }
 0x3f8   : > { %2927 = vmatprep.subr.bf16.mxu0 %v2926_v12  ;;  %2969 = vmatprep.subr.bf16.mxu1 %v4062_v10 }
 0x3f9   : > { %2929 = vmatpush1.bf16.msra.mxu0 %v2928_v13  ;;  %v1027_v27 = vsel %vm519_vm13, %v3530_v18, %v3531_v16 }
 0x3fa   : > { %v3539_v19 = vpop.permute.xlu1 %3538 }
 0x3fb   : > { %v3534_v22 = vpop.permute.xlu0 %3533  ;;  %v3541_v24 = vunpack.i.h.bf16 %v3539_v19  ;;  %v3540_v25 = vunpack.i.l.bf16 %v3539_v19 }
 0x3fc   : > { %v3536_v14 = vunpack.i.h.bf16 %v3534_v22  ;;  %v3535_v26 = vunpack.i.l.bf16 %v3534_v22 }
 0x3fd   : > { %v1026_v28 = vsel %vm519_vm13, %v3540_v25, %v3530_v18 }
 0x3fe   : > { %v2970_v21 = vpack.c.bf16 %v3536_v14, %v3531_v16  ;;  %v1028_v23 = vsel %vm519_vm13, %v3541_v24, %v3535_v26  ;;  %v1029_v29 = vsel %vm519_vm13, %v3535_v26, %v3536_v14  ;;  %v3549_v32 = vpop.permute.xlu1 %3548 }
 0x3ff   : > { %v3544_v33 = vpop.permute.xlu0 %3543  ;;  %v2930_v34 = vpack.c.bf16 %v1029_v29, %v1027_v27  ;;  %v2932_v35 = vpack.c.bf16 %v1028_v23, %v1026_v28  ;;  %v3551_v39 = vunpack.i.h.bf16 %v3549_v32  ;;  %v3550_v40 = vunpack.i.l.bf16 %v3549_v32 }
 0x400   : > { %v3546_v31 = vunpack.i.h.bf16 %v3544_v33  ;;  %v3545_v41 = vunpack.i.l.bf16 %v3544_v33  ;;  %2971 = vmatpush1.bf16.msra.mxu1 %v2970_v21 }
 0x401   : > { %2931 = vmatprep.subr.bf16.mxu0 %v2930_v34  ;;  %2972 = vmatprep.subr.bf16.mxu1 %v4062_v10  ;;  %v1033_v36 = vsel %vm519_vm13, %v3550_v40, %v3551_v39  ;;  %v4590_v34 = vld [vmem:[#allocation2 + $0x18] sm:$0xff] }
 0x402   : > { %v2973_v42 = vpack.c.bf16 %v3551_v39, %v3546_v31  ;;  %2933 = vmatpush1.bf16.msra.mxu0 %v2932_v35  ;;  %v1031_v43 = vsel %vm519_vm13, %v3545_v41, %v3546_v31  ;;  %v3559_v46 = vpop.permute.xlu1 %3558 }
 0x403   : > { %v3554_v47 = vpop.permute.xlu0 %3553  ;;  %v2934_v15 = vpack.c.bf16 %v1033_v36, %v1031_v43  ;;  %v3561_v50 = vunpack.i.h.bf16 %v3559_v46  ;;  %v3560_v37 = vunpack.i.l.bf16 %v3559_v46 }
 0x404   : > { %v3556_v48 = vunpack.i.h.bf16 %v3554_v47  ;;  %v3555_v38 = vunpack.i.l.bf16 %v3554_v47  ;;  %2974 = vmatpush1.bf16.msra.mxu1 %v2973_v42 }
 0x405   : > { %2935 = vmatprep.subr.bf16.mxu0 %v2934_v15  ;;  %2975 = vmatprep.subr.bf16.mxu1 %v4062_v10  ;;  %v1035_v58 = vsel %vm519_vm13, %v3560_v37, %v3561_v50 }
 0x406   : > { %v1032_v51 = vsel %vm519_vm13, %v3556_v48, %v3550_v40  ;;  %v1030_v20 = vsel %vm519_vm13, %v3555_v38, %v3545_v41  ;;  %v3569_v30 = vpop.permute.xlu1 %3568 }
 0x407   : > { %v3564_v53 = vpop.permute.xlu0 %3563  ;;  %v2936_v49 = vpack.c.bf16 %v1032_v51, %v1030_v20  ;;  %v3571_v54 = vunpack.i.h.bf16 %v3569_v30  ;;  %v3570_v44 = vunpack.i.l.bf16 %v3569_v30 }
 0x408   : > { %v3566_v56 = vunpack.i.h.bf16 %v3564_v53  ;;  %v3565_v57 = vunpack.i.l.bf16 %v3564_v53 }
 0x409   : > { %2937 = vmatpush1.bf16.msra.mxu0 %v2936_v49  ;;  %v1034_v60 = vsel %vm519_vm13, %v3570_v44, %v3560_v37 }
 0x40a   : > { %v2976_v61 = vpack.c.bf16 %v3566_v56, %v3561_v50  ;;  %v1036_v52 = vsel %vm519_vm13, %v3571_v54, %v3565_v57  ;;  %v1037_v4 = vsel %vm519_vm13, %v3565_v57, %v3566_v56  ;;  %v1021_v62 = vpop.permute.xlu1 %1020 }
 0x40b   : > { %v1019_v63 = vpop.permute.xlu0 %1018  ;;  %v2938_v1 = vpack.c.bf16 %v1037_v4, %v1035_v58  ;;  %v2940_v2 = vpack.c.bf16 %v1036_v52, %v1034_v60 }
 0x40c   : > { %2977 = vmatpush1.bf16.msra.mxu1 %v2976_v61  ;;  %v1039_v59 = vsel %vm519_vm13, %v1019_v63, %v1021_v62 }
 0x40d   : > { %2939 = vmatprep.subr.bf16.mxu0 %v2938_v1  ;;  %1192 = vmatprep.subr.mxu1 %v4057_v0 }
 0x40e   : > { %2941 = vmatpush1.bf16.msra.mxu0 %v2940_v2 }
 0x40f   : > { %v1017_v5 = vpop.permute.xlu0 %1016  ;;  %1121 = vmatprep.subr.mxu0 %v1039_v59 }
 0x410   : > { %v1038_v55 = vsel %vm519_vm13, %v1017_v5, %v1019_v63  ;;  %1193 = vmatpush1.msra.mxu1 %v1021_v62 }
 0x411   : > { %1209 = vmatmul.mubr.f32.vlgmr.msra.gmra.mrb[2].mxu1 %v2784_v3  ;;  %3026 = vmatprep.subr.bf16.mxu1 %v4062_v10 }
 0x412   : > { %1122 = vmatpush1.msra.mxu0 %v1038_v55 }
 0x413   : > { %1138 = vmatmul.mubr.f32.vlgmr.msra.gmra.mrb[2].mxu0 %v2784_v3 }
 0x41b   : > { %v1219_v45 = vpop.permute.xlu1 %1218 }
 0x420   : > { %v1229_v12 = vpop.permute.xlu0 %1228 }
 0x4e4   : > { %v1210_v6 = vpop.f32.mrb[2].mxu1 }
 0x4e5   : > { %v1223_v8 = vmul.f32 %v1219_v45, %v1210_v6  ;;  %v1212_v9 = vpop.f32.mrb[3].mxu1 }
 0x4e6   : > { %v1139_v13 = vpop.f32.mrb[2].mxu0 }
 0x4e7   : > { %v1233_v16 = vadd.f32 %v1229_v12, %v1223_v8  ;;  %v1221_v18 = vmul.f32 %v1219_v45, %v1139_v13  ;;  %v1141_v19 = vpop.f32.mrb[3].mxu0 }
 0x4e8   : > { %v1222_v22 = vmul.f32 %v1219_v45, %v1141_v19 }
 0x4e9   : > { %v1231_v24 = vadd.f32 %v1229_v12, %v1221_v18  ;;  %v1236_v14 = vmul.f32 0.01, %v1233_v16 }
 0x4ea   : > { %v1232_v25 = vadd.f32 %v1229_v12, %v1222_v22 }
 0x4eb   : > { %v1234_v26 = vmul.f32 0.01, %v1231_v24  ;;  %v1239_v23 = vmax.f32 %v1233_v16, %v1236_v14 }
 0x4ec   : > { %v1235_v27 = vmul.f32 0.01, %v1232_v25 }
 0x4ed   : > { %v1237_v28 = vmax.f32 %v1231_v24, %v1234_v26  ;;  %v1242_v33 = vmul.f32 %v1239_v23, %v4370_v17 }
 0x4ee   : > { %v1238_v21 = vmax.f32 %v1232_v25, %v1235_v27 }
 0x4ef   : > { %v1240_v29 = vmul.f32 %v1237_v28, %v4365_v7 }
 0x4f0   : > { %v1241_v32 = vmul.f32 %v1238_v21, %v4367_v11 }
 0x4f1   : > { %1246 = vrot.lane.b32.xlu1 %v1240_v29, %s4058_s24 }
 0x4f2   : > { %1248 = vrot.lane.b32.xlu0 %v1241_v32, %s4058_s24 }
 0x4f5   : > { %1250 = vrot.lane.b32.xlu1 %v1242_v33, %s4058_s24 }
 0x4f6   : > { %1453 = vrot.lane.b32.xlu0 %v4590_v34, %s4059_s25 }
 0x563   : > { %v1247_v35 = vpop.permute.xlu1 %1246 }
 0x564   : > { %1257 = vst.msk [vmem:[#allocation2] sm:$0xff] %vm249_vm1, %v1247_v35  ;;  %v1249_v39 = vpop.permute.xlu0 %1248 }
 0x565   : > { %v1252_v36 = vsel %vm243_vm2, %v1247_v35, %v1249_v39 }
 0x567   : > { %v1251_v40 = vpop.permute.xlu1 %1250 }
 0x568   : > { %v1253_v31 = vsel %vm243_vm2, %v1249_v39, %v1251_v40  ;;  %v4649_v47 = vpop.permute.xlu0 %1453 }
 0x569   : > { %1259 = vst.msk [vmem:[#allocation2 + $0x10] sm:$0xff] %vm252_vm3, %v1253_v31 }
 0x56b   : > { %v4598_v41 = vld [vmem:[#allocation2] sm:$0xff] }
 0x56c   : > { %1267 = vrot.lane.b32.xlu1 %v4598_v41, %s4061_s27  ;;  %1278 = vrot.lane.b32.xlu0 %v4598_v41, %s4060_s26  ;;  %v3572_v42 = vpack.i.bf16 %v4598_v41, %v4590_v34 }
 0x570   : > { %1289 = vrot.lane.b32.xlu1 %v4598_v41, %s4064_s29  ;;  %3573 = vrot.lane.b32.xlu0 %v3572_v42, %s4063_s28  ;;  %v1262_v43 = vld [vmem:[#allocation2 + $0x10] sm:$0xff] }
 0x571   : > { %v3592_v46 = vpack.i.bf16 %v1262_v43, %v1252_v36 }
 0x574   : > { %3578 = vrot.lane.b32.xlu1 %v3572_v42, %s4066_s6  ;;  %3583 = vrot.lane.b32.xlu0 %v3572_v42, %s4065_s30 }
 0x578   : > { %3588 = vrot.lane.b32.xlu1 %v3572_v42, %s4067_s7  ;;  %3593 = vrot.lane.b32.xlu0 %v3592_v46, %s4061_s27 }
 0x57c   : > { %1344 = vrot.lane.b32.xlu1 %v4598_v41, %s4059_s25  ;;  %3598 = vrot.lane.b32.xlu0 %v3592_v46, %s4060_s26 }
 0x580   : > { %3603 = vrot.lane.b32.xlu1 %v3592_v46, %s4064_s29  ;;  %3608 = vrot.lane.b32.xlu0 %v3592_v46, %s4066_s6 }
 0x584   : > { %3613 = vrot.lane.b32.xlu1 %v3592_v46, %s4063_s28  ;;  %3618 = vrot.lane.b32.xlu0 %v3592_v46, %s4065_s30 }
 0x588   : > { %3623 = vrot.lane.b32.xlu1 %v3592_v46, %s4067_s7  ;;  %1346 = vrot.lane.b32.xlu0 %v1252_v36, %s4059_s25 }
 0x58c   : > { %1348 = vrot.lane.b32.xlu1 %v1262_v43, %s4059_s25  ;;  %1366 = vrot.lane.b32.xlu0 %v4598_v41, %s4068_s8 }
 0x590   : > { %1300 = vrot.lane.b32.xlu1 %v4598_v41, %s4069_s9  ;;  %1388 = vrot.lane.b32.xlu0 %v4598_v41, %s4070_s10 }
 0x594   : > { %1355 = vrot.lane.b32.xlu1 %v4598_v41, %s4071_s11  ;;  %1410 = vrot.lane.b32.xlu0 %v4598_v41, %s4072_s12 }
 0x598   : > { %1377 = vrot.lane.b32.xlu1 %v4598_v41, %s4073_s13  ;;  %3628 = vrot.lane.b32.xlu0 %v3592_v46, %s4069_s9 }
 0x59c   : > { %1399 = vrot.lane.b32.xlu1 %v4598_v41, %s4074_s14  ;;  %3633 = vrot.lane.b32.xlu0 %v3592_v46, %s4071_s11 }
 0x5a0   : > { %1421 = vrot.lane.b32.xlu1 %v4598_v41, %s4075_s15  ;;  %3638 = vrot.lane.b32.xlu0 %v3592_v46, %s4068_s8 }
 0x5a4   : > { %3643 = vrot.lane.b32.xlu1 %v3592_v46, %s4073_s13  ;;  %3648 = vrot.lane.b32.xlu0 %v3592_v46, %s4070_s10 }
 0x5a8   : > { %3653 = vrot.lane.b32.xlu1 %v3592_v46, %s4074_s14  ;;  %3658 = vrot.lane.b32.xlu0 %v3592_v46, %s4072_s12 }
 0x5ac   : > { %3663 = vrot.lane.b32.xlu1 %v3592_v46, %s4075_s15  ;;  %3668 = vrot.lane.b32.xlu0 %v3592_v46, %s4076_s16 }
 0x5de   : > { %v1268_v15 = vpop.permute.xlu1 %1267  ;;  %v1279_v48 = vpop.permute.xlu0 %1278 }
 0x5e2   : > { %v1290_v38 = vpop.permute.xlu1 %1289  ;;  %v4651_v50 = vpop.permute.xlu0 %3573 }
 0x5e3   : > { %v3575_v9 = vunpack.i.l.bf16 %v4651_v50  ;;  %v3576_v40 = vunpack.i.h.bf16 %v4651_v50 }
 0x5e6   : > { %v4653_v37 = vpop.permute.xlu1 %3578  ;;  %v4655_v51 = vpop.permute.xlu0 %3583 }
 0x5e7   : > { %v3580_v2 = vunpack.i.l.bf16 %v4653_v37  ;;  %v3585_v33 = vunpack.i.l.bf16 %v4655_v51 }
 0x5ea   : > { %v4657_v20 = vpop.permute.xlu1 %3588  ;;  %v3594_v30 = vpop.permute.xlu0 %3593 }
 0x5eb   : > { %v3596_v53 = vunpack.i.h.bf16 %v3594_v30  ;;  %v3595_v49 = vunpack.i.l.bf16 %v3594_v30  ;;  %v3591_v30 = vunpack.i.h.bf16 %v4657_v20 }
 0x5ed   : > { %v1273_v54 = vsel %vm267_vm4, %v1268_v15, %v3595_v49  ;;  %v1274_v44 = vsel %vm267_vm4, %v3595_v49, %v3596_v53  ;;  %v3027_v56 = vpack.c.bf16 %v3596_v53, %v1262_v43 }
 0x5ee   : > { %v4661_v57 = vpop.permute.xlu1 %1344  ;;  %v3599_v58 = vpop.permute.xlu0 %3598  ;;  %v3672_v60 = vpack.i.bf16 %v3596_v53, %v1274_v44  ;;  %v2978_v61 = vpack.c.bf16 %v1274_v44, %v1252_v36  ;;  %v3677_v52 = vpack.i.bf16 %v1273_v54, %v4598_v41  ;;  %v2980_v4 = vpack.c.bf16 %v1273_v54, %v4598_v41 }
 0x5ef   : > { %v3601_v62 = vunpack.i.h.bf16 %v3599_v58  ;;  %v3600_v63 = vunpack.i.l.bf16 %v3599_v58  ;;  %3028 = vmatpush1.bf16.msra.mxu1 %v3027_v56  ;;  %v3590_v53 = vunpack.i.l.bf16 %v4657_v20  ;;  %v2791_v20 = vld [vmem:[%s5235_s1 + $0x28] sm:$0xff] }
 0x5f0   : > { %3673 = vrot.lane.b32.xlu1 %v3672_v60, %s4076_s16  ;;  %2979 = vmatprep.subr.bf16.mxu0 %v2978_v61 }
 0x5f1   : > { %v1285_v1 = vsel %vm279_vm5, %v3600_v63, %v3601_v62  ;;  %3678 = vrot.lane.b32.xlu0 %v3677_v52, %s4076_s16  ;;  %2981 = vmatpush1.bf16.msra.mxu0 %v2980_v4  ;;  %v1284_v12 = vsel %vm279_vm5, %v1279_v48, %v3600_v63  ;;  %v3581_v48 = vunpack.i.h.bf16 %v4653_v37  ;;  %v3586_v37 = vunpack.i.h.bf16 %v4655_v51 }
 0x5f2   : > { %v3604_v59 = vpop.permute.xlu1 %3603  ;;  %v3609_v3 = vpop.permute.xlu0 %3608  ;;  %v3682_v5 = vpack.i.bf16 %v3601_v62, %v1285_v1  ;;  %3029 = vmatprep.subr.bf16.mxu1 %v4062_v10 }
 0x5f3   : > { %v3606_v55 = vunpack.i.h.bf16 %v3604_v59  ;;  %v3605_v45 = vunpack.i.l.bf16 %v3604_v59  ;;  %v4670_v6 = vunpack.i.h.bf16 %v3609_v3  ;;  %v3610_v8 = vunpack.i.l.bf16 %v3609_v3 }
 0x5f4   : > { %3683 = vrot.lane.b32.xlu1 %v3682_v5, %s4076_s16 }
 0x5f5   : > { %v1295_v13 = vsel %vm5247_vm6, %v1290_v38, %v3605_v45  ;;  %v1296_v16 = vsel %vm5247_vm6, %v3605_v45, %v3606_v55  ;;  %v1446_v18 = vsel %vm315_vm7, %v4670_v6, %v3580_v2  ;;  %v4681_v19 = vsel %vm315_vm7, %v3610_v8, %v4670_v6 }
 0x5f6   : > { %v3614_v22 = vpop.permute.xlu1 %3613  ;;  %v3619_v24 = vpop.permute.xlu0 %3618  ;;  %v3030_v25 = vpack.c.bf16 %v3606_v55, %v3601_v62  ;;  %v3692_v14 = vpack.i.bf16 %v1295_v13, %v1284_v12  ;;  %v3687_v26 = vpack.i.bf16 %v3606_v55, %v1296_v16  ;;  %v2982_v29 = vpack.c.bf16 %v1296_v16, %v1285_v1  ;;  %v2794_v55 = vld [vmem:[%s5236_s2 + $0x10] sm:$0xff] }
 0x5f7   : > { %v3616_v27 = vunpack.i.h.bf16 %v3614_v22  ;;  %v3615_v28 = vunpack.i.l.bf16 %v3614_v22  ;;  %v4683_v21 = vunpack.i.h.bf16 %v3619_v24  ;;  %v3620_v23 = vunpack.i.l.bf16 %v3619_v24 }
 0x5f8   : > { %3031 = vmatpush1.bf16.msra.mxu1 %v3030_v25  ;;  %3693 = vrot.lane.b32.xlu1 %v3692_v14, %s4076_s16  ;;  %v2984_v32 = vpack.c.bf16 %v1295_v13, %v1284_v12  ;;  %v3702_v42 = vpack.i.bf16 %v1446_v18, %v4681_v19  ;;  %v1317_v49 = vsel %vm315_vm7, %v3581_v48, %v3610_v8  ;;  %v2795_v14 = vld [vmem:[%s5237_s3 + $0x10] sm:$0xff] }
 0x5f9   : > { %v1442_v35 = vsel %vm5246_vm8, %v3615_v28, %v3616_v27  ;;  %v1443_v39 = vsel %vm5246_vm8, %v3616_v27, %v3575_v9  ;;  %3688 = vrot.lane.b32.xlu0 %v3687_v26, %s4076_s16  ;;  %2983 = vmatprep.subr.bf16.mxu0 %v2982_v29  ;;  %v4694_v36 = vsel %vm5256_vm9, %v3620_v23, %v4683_v21 }
 0x5fa   : > { %v3624_v31 = vpop.permute.xlu1 %3623  ;;  %v1347_v41 = vpop.permute.xlu0 %1346  ;;  %v3697_v43 = vpack.i.bf16 %v1443_v39, %v1442_v35  ;;  %v1449_v46 = vsel %vm5257_vm10, %v4683_v21, %v3585_v33  ;;  %2985 = vmatpush1.bf16.msra.mxu0 %v2984_v32  ;;  %3032 = vmatprep.subr.bf16.mxu1 %v4062_v10  ;;  %v1441_v38 = vsel %vm5246_vm8, %v3576_v40, %v3615_v28  ;;  %vm5258_vm10 = vcmask 588800  }
 0x5fb   : > { %v3625_v15 = vunpack.i.l.bf16 %v3624_v31  ;;  %v3626_v50 = vunpack.i.h.bf16 %v3624_v31  ;;  %v3712_v56 = vpack.i.bf16 %v1449_v46, %v4694_v36  ;;  %v3707_v60 = vpack.i.bf16 %v1317_v49, %v1441_v38  ;;  %2793 = vmatprep.mubr.msk.f32.mxu1 %vm5258_vm10, %v2791_v20  ;;  %vm5259_vm8 = vmmov %vm5258_vm10 }
 0x5fc   : > { %3703 = vrot.lane.b32.xlu1 %v3702_v42, %s4076_s16  ;;  %v1328_v4 = vsel %vm5256_vm9, %v3586_v37, %v3620_v23  ;;  %2792 = vmatprep.mubr.msk.f32.mxu0 %vm5259_vm8, %v2791_v20  ;;  %v1350_v13 = vsel %vm350_vm11, %v4661_v57, %v1347_v41  ;;  %vm5260_vm8 = vcmask 1014784   ;;  %vm5262_vm10 = vcmask 850944  }
 0x5fd   : > { %3698 = vrot.lane.b32.xlu0 %v3697_v43, %s4076_s16  ;;  %v1339_v58 = vsel %vm252_vm3, %v3591_v30, %v3625_v15  ;;  %v1452_v61 = vsel %vm252_vm3, %v3626_v50, %v3590_v53  ;;  %v1340_v52 = vsel %vm252_vm3, %v3625_v15, %v3626_v50  ;;  %vm5261_vm9 = vmmov %vm5260_vm8 }
 0x5fe   : > { %v1349_v54 = vpop.permute.xlu1 %1348  ;;  %v4706_v44 = vpop.permute.xlu0 %1366  ;;  %v3722_v63 = vpack.i.bf16 %v1339_v58, %v1328_v4  ;;  %v3717_v1 = vpack.i.bf16 %v1452_v61, %v1340_v52  ;;  %v2990_v57 = vpack.c.bf16 %v1340_v52, %v4694_v36  ;;  %v2992_v32 = vpack.c.bf16 %v1339_v58, %v1328_v4 }
 0x5ff   : > { %v1455_v3 = vsel %vm350_vm11, %v1349_v54, %v4649_v47  ;;  %v1351_v5 = vsel %vm350_vm11, %v1347_v41, %v1349_v54 }
 0x600   : > { %3713 = vrot.lane.b32.xlu1 %v3712_v56, %s4076_s16 }
 0x601   : > { %3708 = vrot.lane.b32.xlu0 %v3707_v60, %s4076_s16 }
 0x602   : > { %v1301_v51 = vpop.permute.xlu1 %1300  ;;  %v4720_v62 = vpop.permute.xlu0 %1388 }
 0x604   : > { %3723 = vrot.lane.b32.xlu1 %v3722_v63, %s4076_s16 }
 0x605   : > { %3718 = vrot.lane.b32.xlu0 %v3717_v1, %s4076_s16 }
 0x606   : > { %v1356_v2 = vpop.permute.xlu1 %1355  ;;  %v4725_v59 = vpop.permute.xlu0 %1410 }
 0x608   : > { %1508 = vrot.lane.b32.xlu1 %v1455_v3, %s4076_s16 }
 0x609   : > { %1506 = vrot.lane.b32.xlu0 %v1351_v5, %s4076_s16 }
 0x60a   : > { %v1378_v45 = vpop.permute.xlu1 %1377  ;;  %v3629_v8 = vpop.permute.xlu0 %3628 }
 0x60b   : > { %v3631_v9 = vunpack.i.h.bf16 %v3629_v8  ;;  %v3630_v12 = vunpack.i.l.bf16 %v3629_v8 }
 0x60c   : > { %1706 = vperm.xlu1 %3416, %v2794_v55  }
 0x60d   : > { %v1306_v47 = vsel %vm5260_vm8, %v1301_v51, %v3630_v12  ;;  %v3033_v16 = vpack.c.bf16 %v4670_v6, %v3631_v9  ;;  %1504 = vrot.lane.b32.xlu0 %v1350_v13, %s4076_s16  ;;  %v1307_v18 = vsel %vm5261_vm9, %v3630_v12, %v3631_v9  ;;  %v3036_v6 = vpack.c.bf16 %v3626_v50, %v4683_v21  ;;  %vm5263_vm8 = vmmov %vm5262_vm10 }
 0x60e   : > { %v1400_v22 = vpop.permute.xlu1 %1399  ;;  %v3634_v24 = vpop.permute.xlu0 %3633  ;;  %v2986_v25 = vpack.c.bf16 %v4681_v19, %v1307_v18  ;;  %v2988_v26 = vpack.c.bf16 %v1317_v49, %v1306_v47  ;;  %vm5264_vm9 = vcmask 711680  }
 0x60f   : > { %v3636_v27 = vunpack.i.h.bf16 %v3634_v24  ;;  %v3635_v28 = vunpack.i.l.bf16 %v3634_v24  ;;  %3034 = vmatpush1.bf16.msra.mxu1 %v3033_v16 }
 0x610   : > { %2987 = vmatprep.subr.bf16.mxu0 %v2986_v25  ;;  %3035 = vmatprep.subr.bf16.mxu1 %v4062_v10 }
 0x611   : > { %1716 = vperm.xlu0 %3415, %v2795_v14   ;;  %2989 = vmatpush1.bf16.msra.mxu0 %v2988_v26  ;;  %v1362_v23 = vsel %vm5262_vm10, %v3635_v28, %v3636_v27  ;;  %v1361_v33 = vsel %vm5263_vm8, %v1356_v2, %v3635_v28  ;;  %v3039_v40 = vpack.c.bf16 %v3636_v27, %v1349_v54  ;;  %vm5265_vm10 = vmmov %vm5264_vm9  ;;  %vm5266_vm8 = vcmask 695296  }
 0x612   : > { %v1422_v19 = vpop.permute.xlu1 %1421  ;;  %v3639_v29 = vpop.permute.xlu0 %3638  ;;  %2991 = vmatprep.subr.bf16.mxu0 %v2990_v57  ;;  %v2994_v39 = vpack.c.bf16 %v1362_v23, %v1351_v5  ;;  %v2996_v36 = vpack.c.bf16 %v1361_v33, %v1350_v13 }
 0x613   : > { %3037 = vmatpush1.bf16.msra.mxu1 %v3036_v6  ;;  %v3640_v35 = vunpack.i.l.bf16 %v3639_v29  ;;  %v3641_v31 = vunpack.i.h.bf16 %v3639_v29 }
 0x614   : > { %3038 = vmatprep.subr.bf16.mxu1 %v4062_v10 }
 0x615   : > { %2993 = vmatpush1.bf16.msra.mxu0 %v2992_v32  ;;  %v1372_v46 = vsel %vm374_vm14, %v4706_v44, %v3640_v35  ;;  %v1373_v30 = vsel %vm374_vm14, %v3640_v35, %v3641_v31 }
 0x616   : > { %v3644_v41 = vpop.permute.xlu1 %3643  ;;  %v3649_v42 = vpop.permute.xlu0 %3648  ;;  %2995 = vmatprep.subr.bf16.mxu0 %v2994_v39 }
 0x617   : > { %v3646_v21 = vunpack.i.h.bf16 %v3644_v41  ;;  %v3645_v43 = vunpack.i.l.bf16 %v3644_v41  ;;  %3040 = vmatpush1.bf16.msra.mxu1 %v3039_v40  ;;  %v3651_v15 = vunpack.i.h.bf16 %v3649_v42  ;;  %v3650_v48 = vunpack.i.l.bf16 %v3649_v42 }
 0x618   : > { %3041 = vmatprep.subr.bf16.mxu1 %v4062_v10 }
 0x619   : > { %v1383_v38 = vsel %vm5264_vm9, %v1378_v45, %v3645_v43  ;;  %v3042_v50 = vpack.c.bf16 %v3646_v21, %v3641_v31  ;;  %2997 = vmatpush1.bf16.msra.mxu0 %v2996_v36  ;;  %v1384_v53 = vsel %vm5265_vm10, %v3645_v43, %v3646_v21  ;;  %v1394_v44 = vsel %vm398_vm0, %v4720_v62, %v3650_v48  ;;  %vm5267_vm9 = vmmov %vm5266_vm8 }
 0x61a   : > { %v3654_v49 = vpop.permute.xlu1 %3653  ;;  %v3659_v54 = vpop.permute.xlu0 %3658  ;;  %v2998_v56 = vpack.c.bf16 %v1384_v53, %v1373_v30  ;;  %v3000_v37 = vpack.c.bf16 %v1383_v38, %v1372_v46  ;;  %v1395_v52 = vsel %vm398_vm0, %v3650_v48, %v3651_v15  ;;  %vm5268_vm10 = vcmask 891904  }
 0x61b   : > { %v3656_v58 = vunpack.i.h.bf16 %v3654_v49  ;;  %v3655_v60 = vunpack.i.l.bf16 %v3654_v49  ;;  %3043 = vmatpush1.bf16.msra.mxu1 %v3042_v50  ;;  %v3660_v61 = vunpack.i.l.bf16 %v3659_v54  ;;  %v3661_v51 = vunpack.i.h.bf16 %v3659_v54 }
 0x61c   : > { %2999 = vmatprep.subr.bf16.mxu0 %v2998_v56  ;;  %3044 = vmatprep.subr.bf16.mxu1 %v4062_v10 }
 0x61d   : > { %v1405_v20 = vsel %vm5266_vm8, %v1400_v22, %v3655_v60  ;;  %v3045_v4 = vpack.c.bf16 %v3656_v58, %v3651_v15  ;;  %3001 = vmatpush1.bf16.msra.mxu0 %v3000_v37  ;;  %v1406_v63 = vsel %vm5267_vm9, %v3655_v60, %v3656_v58  ;;  %v1416_v62 = vsel %vm422_vm12, %v4725_v59, %v3660_v61  ;;  %vm5269_vm8 = vmmov %vm5268_vm10 }
 0x61e   : > { %v3664_v1 = vpop.permute.xlu1 %3663  ;;  %v3002_v2 = vpack.c.bf16 %v1406_v63, %v1395_v52  ;;  %v3004_v3 = vpack.c.bf16 %v1405_v20, %v1394_v44  ;;  %v1417_v9 = vsel %vm422_vm12, %v3660_v61, %v3661_v51  ;;  %v3669_v16 = vpop.permute.xlu0 %3668  ;;  %vm5270_vm9 = vmmov %vm5269_vm8 }
 0x61f   : > { %v3666_v5 = vunpack.i.h.bf16 %v3664_v1  ;;  %v3665_v55 = vunpack.i.l.bf16 %v3664_v1  ;;  %3046 = vmatpush1.bf16.msra.mxu1 %v3045_v4  ;;  %v3671_v59 = vunpack.i.h.bf16 %v3669_v16  ;;  %v3670_v18 = vunpack.i.l.bf16 %v3669_v16 }
 0x620   : > { %3003 = vmatprep.subr.bf16.mxu0 %v3002_v2  ;;  %3047 = vmatprep.subr.bf16.mxu1 %v4062_v10 }
 0x621   : > { %v1427_v45 = vsel %vm434_vm15, %v1422_v19, %v3665_v55  ;;  %v3048_v8 = vpack.c.bf16 %v3666_v5, %v3661_v51  ;;  %3005 = vmatpush1.bf16.msra.mxu0 %v3004_v3  ;;  %v1428_v12 = vsel %vm434_vm15, %v3665_v55, %v3666_v5  ;;  %v1511_v57 = vsel %vm519_vm13, %v3670_v18, %v3671_v59 }
 0x622   : > { %v3006_v13 = vpack.c.bf16 %v1428_v12, %v1417_v9  ;;  %v3008_v47 = vpack.c.bf16 %v1427_v45, %v1416_v62 }
 0x623   : > { %3049 = vmatpush1.bf16.msra.mxu1 %v3048_v8 }
 0x624   : > { %3007 = vmatprep.subr.bf16.mxu0 %v3006_v13  ;;  %3050 = vmatprep.subr.bf16.mxu1 %v4062_v10 }
 0x625   : > { %3009 = vmatpush1.bf16.msra.mxu0 %v3008_v47 }
 0x662   : > { %v3674_v22 = vpop.permute.xlu1 %3673 }
 0x663   : > { %v3676_v24 = vunpack.i.h.bf16 %v3674_v22  ;;  %v3675_v25 = vunpack.i.l.bf16 %v3674_v22  ;;  %v3679_v14 = vpop.permute.xlu0 %3678 }
 0x664   : > { %v3681_v26 = vunpack.i.h.bf16 %v3679_v14  ;;  %v3680_v27 = vunpack.i.l.bf16 %v3679_v14 }
 0x665   : > { %v3051_v28 = vpack.c.bf16 %v3676_v24, %v3671_v59  ;;  %v1513_v6 = vsel %vm519_vm13, %v3675_v25, %v3676_v24 }
 0x666   : > { %v1512_v23 = vsel %vm519_vm13, %v3681_v26, %v3675_v25  ;;  %v1510_v19 = vsel %vm519_vm13, %v3680_v27, %v3670_v18  ;;  %v3684_v29 = vpop.permute.xlu1 %3683  ;;  %v3010_v32 = vpack.c.bf16 %v1513_v6, %v1511_v57 }
 0x667   : > { %3052 = vmatpush1.bf16.msra.mxu1 %v3051_v28  ;;  %v3012_v33 = vpack.c.bf16 %v1512_v23, %v1510_v19  ;;  %v3686_v35 = vunpack.i.h.bf16 %v3684_v29  ;;  %v3685_v39 = vunpack.i.l.bf16 %v3684_v29  ;;  %v2790_v28 = vld [vmem:[%s5235_s1 + $0x20] sm:$0xff] }
 0x668   : > { %3011 = vmatprep.subr.bf16.mxu0 %v3010_v32  ;;  %3053 = vmatprep.subr.bf16.mxu1 %v4062_v10 }
 0x669   : > { %3013 = vmatpush1.bf16.msra.mxu0 %v3012_v33  ;;  %v1515_v38 = vsel %vm519_vm13, %v3685_v39, %v3686_v35 }
 0x66a   : > { %v3694_v40 = vpop.permute.xlu1 %3693 }
 0x66b   : > { %v3696_v31 = vunpack.i.h.bf16 %v3694_v40  ;;  %v3695_v41 = vunpack.i.l.bf16 %v3694_v40  ;;  %v3689_v42 = vpop.permute.xlu0 %3688 }
 0x66c   : > { %v3691_v21 = vunpack.i.h.bf16 %v3689_v42  ;;  %v3690_v43 = vunpack.i.l.bf16 %v3689_v42 }
 0x66d   : > { %v1514_v36 = vsel %vm519_vm13, %v3695_v41, %v3685_v39 }
 0x66e   : > { %v3054_v46 = vpack.c.bf16 %v3691_v21, %v3686_v35  ;;  %v1516_v15 = vsel %vm519_vm13, %v3696_v31, %v3690_v43  ;;  %v3704_v48 = vpop.permute.xlu1 %3703  ;;  %v1517_v50 = vsel %vm519_vm13, %v3690_v43, %v3691_v21 }
 0x66f   : > { %v3706_v30 = vunpack.i.h.bf16 %v3704_v48  ;;  %v3705_v53 = vunpack.i.l.bf16 %v3704_v48  ;;  %v3699_v49 = vpop.permute.xlu0 %3698  ;;  %v3014_v54 = vpack.c.bf16 %v1517_v50, %v1515_v38  ;;  %v3016_v56 = vpack.c.bf16 %v1516_v15, %v1514_v36 }
 0x670   : > { %v3701_v37 = vunpack.i.h.bf16 %v3699_v49  ;;  %v3700_v58 = vunpack.i.l.bf16 %v3699_v49  ;;  %3055 = vmatpush1.bf16.msra.mxu1 %v3054_v46 }
 0x671   : > { %3015 = vmatprep.subr.bf16.mxu0 %v3014_v54  ;;  %3056 = vmatprep.subr.bf16.mxu1 %v4062_v10  ;;  %v1521_v60 = vsel %vm519_vm13, %v3705_v53, %v3706_v30 }
 0x672   : > { %v3057_v44 = vpack.c.bf16 %v3706_v30, %v3701_v37  ;;  %3017 = vmatpush1.bf16.msra.mxu0 %v3016_v56  ;;  %v3714_v61 = vpop.permute.xlu1 %3713  ;;  %v1519_v52 = vsel %vm519_vm13, %v3700_v58, %v3701_v37 }
 0x673   : > { %v3709_v20 = vpop.permute.xlu0 %3708  ;;  %v3018_v4 = vpack.c.bf16 %v1521_v60, %v1519_v52  ;;  %v3716_v1 = vunpack.i.h.bf16 %v3714_v61  ;;  %v3715_v2 = vunpack.i.l.bf16 %v3714_v61 }
 0x674   : > { %v3711_v51 = vunpack.i.h.bf16 %v3709_v20  ;;  %v3710_v63 = vunpack.i.l.bf16 %v3709_v20  ;;  %3058 = vmatpush1.bf16.msra.mxu1 %v3057_v44 }
 0x675   : > { %3019 = vmatprep.subr.bf16.mxu0 %v3018_v4  ;;  %3059 = vmatprep.subr.bf16.mxu1 %v4062_v10  ;;  %v1523_v18 = vsel %vm519_vm13, %v3715_v2, %v3716_v1 }
 0x676   : > { %v1520_v3 = vsel %vm519_vm13, %v3711_v51, %v3705_v53  ;;  %v1518_v5 = vsel %vm519_vm13, %v3710_v63, %v3700_v58  ;;  %v3724_v55 = vpop.permute.xlu1 %3723 }
 0x677   : > { %v3726_v62 = vunpack.i.h.bf16 %v3724_v55  ;;  %v3725_v45 = vunpack.i.l.bf16 %v3724_v55  ;;  %v3719_v8 = vpop.permute.xlu0 %3718  ;;  %v3020_v9 = vpack.c.bf16 %v1520_v3, %v1518_v5 }
 0x678   : > { %v3721_v12 = vunpack.i.h.bf16 %v3719_v8  ;;  %v3720_v13 = vunpack.i.l.bf16 %v3719_v8 }
 0x679   : > { %v1522_v47 = vsel %vm519_vm13, %v3725_v45, %v3715_v2  ;;  %3021 = vmatpush1.bf16.msra.mxu0 %v3020_v9 }
 0x67a   : > { %v3060_v16 = vpack.c.bf16 %v3721_v12, %v3716_v1  ;;  %v1524_v59 = vsel %vm519_vm13, %v3726_v62, %v3720_v13  ;;  %v1525_v22 = vsel %vm519_vm13, %v3720_v13, %v3721_v12  ;;  %v1509_v24 = vpop.permute.xlu1 %1508 }
 0x67b   : > { %v1507_v25 = vpop.permute.xlu0 %1506  ;;  %v3022_v14 = vpack.c.bf16 %v1525_v22, %v1523_v18  ;;  %v3024_v26 = vpack.c.bf16 %v1524_v59, %v1522_v47 }
 0x67c   : > { %3061 = vmatpush1.bf16.msra.mxu1 %v3060_v16  ;;  %v1527_v27 = vsel %vm519_vm13, %v1507_v25, %v1509_v24 }
 0x67d   : > { %3023 = vmatprep.subr.bf16.mxu0 %v3022_v14  ;;  %1680 = vmatprep.subr.mxu1 %v4057_v0 }
 0x67e   : > { %3025 = vmatpush1.bf16.msra.mxu0 %v3024_v26 }
 0x67f   : > { %v1505_v57 = vpop.permute.xlu0 %1504  ;;  %1609 = vmatprep.subr.mxu0 %v1527_v27 }
 0x680   : > { %v1526_v6 = vsel %vm519_vm13, %v1505_v57, %v1507_v25  ;;  %1681 = vmatpush1.msra.mxu1 %v1509_v24 }
 0x681   : > { %1697 = vmatmul.mubr.f32.vlgmr.msra.gmra.mrb[4].mxu1 %v2790_v28  ;;  %3110 = vmatprep.subr.bf16.mxu1 %v4062_v10 }
 0x682   : > { %1610 = vmatpush1.msra.mxu0 %v1526_v6 }
 0x683   : > { %1626 = vmatmul.mubr.f32.vlgmr.msra.gmra.mrb[4].mxu0 %v2790_v28 }
 0x68b   : > { %v1707_v23 = vpop.permute.xlu1 %1706 }
 0x690   : > { %v1717_v33 = vpop.permute.xlu0 %1716 }
 0x754   : > { %v1698_v19 = vpop.f32.mrb[4].mxu1 }
 0x755   : > { %v1711_v29 = vmul.f32 %v1707_v23, %v1698_v19  ;;  %v1700_v32 = vpop.f32.mrb[5].mxu1 }
 0x756   : > { %v1627_v35 = vpop.f32.mrb[4].mxu0 }
 0x757   : > { %v1721_v39 = vadd.f32 %v1717_v33, %v1711_v29  ;;  %v1709_v40 = vmul.f32 %v1707_v23, %v1627_v35  ;;  %v1629_v31 = vpop.f32.mrb[5].mxu0 }
 0x758   : > { %v1710_v41 = vmul.f32 %v1707_v23, %v1629_v31 }
 0x759   : > { %v1719_v42 = vadd.f32 %v1717_v33, %v1709_v40  ;;  %v1724_v43 = vmul.f32 0.01, %v1721_v39 }
 0x75a   : > { %v1720_v21 = vadd.f32 %v1717_v33, %v1710_v41 }
 0x75b   : > { %v1722_v36 = vmul.f32 0.01, %v1719_v42  ;;  %v1727_v38 = vmax.f32 %v1721_v39, %v1724_v43 }
 0x75c   : > { %v1723_v46 = vmul.f32 0.01, %v1720_v21 }
 0x75d   : > { %v1725_v15 = vmax.f32 %v1719_v42, %v1722_v36  ;;  %v1730_v53 = vmul.f32 %v1727_v38, %v4370_v17 }
 0x75e   : > { %v1726_v48 = vmax.f32 %v1720_v21, %v1723_v46 }
 0x75f   : > { %v1728_v50 = vmul.f32 %v1725_v15, %v4365_v7 }
 0x760   : > { %v1729_v30 = vmul.f32 %v1726_v48, %v4367_v11 }
 0x761   : > { %1734 = vrot.lane.b32.xlu1 %v1728_v50, %s4058_s24 }
 0x762   : > { %1736 = vrot.lane.b32.xlu0 %v1729_v30, %s4058_s24 }
 0x765   : > { %1738 = vrot.lane.b32.xlu1 %v1730_v53, %s4058_s24 }
 0x766   : > { %1941 = vrot.lane.b32.xlu0 %v4590_v34, %s4059_s25 }
 0x7d3   : > { %v1735_v49 = vpop.permute.xlu1 %1734 }
 0x7d4   : > { %1745 = vst.msk [vmem:[#allocation2] sm:$0xff] %vm249_vm1, %v1735_v49  ;;  %v1737_v54 = vpop.permute.xlu0 %1736 }
 0x7d5   : > { %v1740_v61 = vsel %vm243_vm2, %v1735_v49, %v1737_v54 }
 0x7d7   : > { %v1739_v56 = vpop.permute.xlu1 %1738 }
 0x7d8   : > { %v1741_v37 = vsel %vm243_vm2, %v1737_v54, %v1739_v56 }
 0x7d9   : > { %1747 = vst.msk [vmem:[#allocation2 + $0x10] sm:$0xff] %vm252_vm3, %v1741_v37 }
 0x7db   : > { %v4807_v58 = vld [vmem:[#allocation2] sm:$0xff] }
 0x7dc   : > { %1755 = vrot.lane.b32.xlu1 %v4807_v58, %s4061_s27  ;;  %1766 = vrot.lane.b32.xlu0 %v4807_v58, %s4060_s26  ;;  %v3727_v60 = vpack.i.bf16 %v4807_v58, %v4590_v34  ;;  %v4858_v34 = vpop.permute.xlu0 %1941 }
 0x7e0   : > { %1777 = vrot.lane.b32.xlu1 %v4807_v58, %s4064_s29  ;;  %3728 = vrot.lane.b32.xlu0 %v3727_v60, %s4063_s28  ;;  %v1750_v44 = vld [vmem:[#allocation2 + $0x10] sm:$0xff] }
 0x7e1   : > { %v3747_v52 = vpack.i.bf16 %v1750_v44, %v1740_v61 }
 0x7e4   : > { %3733 = vrot.lane.b32.xlu1 %v3727_v60, %s4066_s6  ;;  %3738 = vrot.lane.b32.xlu0 %v3727_v60, %s4065_s30 }
 0x7e8   : > { %3743 = vrot.lane.b32.xlu1 %v3727_v60, %s4067_s7  ;;  %3748 = vrot.lane.b32.xlu0 %v3747_v52, %s4061_s27 }
 0x7ec   : > { %1832 = vrot.lane.b32.xlu1 %v4807_v58, %s4059_s25  ;;  %3753 = vrot.lane.b32.xlu0 %v3747_v52, %s4060_s26 }
 0x7f0   : > { %3758 = vrot.lane.b32.xlu1 %v3747_v52, %s4064_s29  ;;  %3763 = vrot.lane.b32.xlu0 %v3747_v52, %s4066_s6 }
 0x7f4   : > { %3768 = vrot.lane.b32.xlu1 %v3747_v52, %s4063_s28  ;;  %3773 = vrot.lane.b32.xlu0 %v3747_v52, %s4065_s30 }
 0x7f8   : > { %3778 = vrot.lane.b32.xlu1 %v3747_v52, %s4067_s7  ;;  %1834 = vrot.lane.b32.xlu0 %v1740_v61, %s4059_s25 }
 0x7fc   : > { %1836 = vrot.lane.b32.xlu1 %v1750_v44, %s4059_s25  ;;  %1854 = vrot.lane.b32.xlu0 %v4807_v58, %s4068_s8 }
 0x800   : > { %1788 = vrot.lane.b32.xlu1 %v4807_v58, %s4069_s9  ;;  %1876 = vrot.lane.b32.xlu0 %v4807_v58, %s4070_s10 }
 0x804   : > { %1843 = vrot.lane.b32.xlu1 %v4807_v58, %s4071_s11  ;;  %1898 = vrot.lane.b32.xlu0 %v4807_v58, %s4072_s12 }
 0x808   : > { %1865 = vrot.lane.b32.xlu1 %v4807_v58, %s4073_s13  ;;  %3783 = vrot.lane.b32.xlu0 %v3747_v52, %s4069_s9 }
 0x80c   : > { %1887 = vrot.lane.b32.xlu1 %v4807_v58, %s4074_s14  ;;  %3788 = vrot.lane.b32.xlu0 %v3747_v52, %s4071_s11 }
 0x810   : > { %1909 = vrot.lane.b32.xlu1 %v4807_v58, %s4075_s15  ;;  %3793 = vrot.lane.b32.xlu0 %v3747_v52, %s4068_s8 }
 0x814   : > { %3798 = vrot.lane.b32.xlu1 %v3747_v52, %s4073_s13  ;;  %3803 = vrot.lane.b32.xlu0 %v3747_v52, %s4070_s10 }
 0x818   : > { %3808 = vrot.lane.b32.xlu1 %v3747_v52, %s4074_s14  ;;  %3813 = vrot.lane.b32.xlu0 %v3747_v52, %s4072_s12 }
 0x81c   : > { %3818 = vrot.lane.b32.xlu1 %v3747_v52, %s4075_s15  ;;  %3823 = vrot.lane.b32.xlu0 %v3747_v52, %s4076_s16 }
 0x84e   : > { %v1756_v20 = vpop.permute.xlu1 %1755  ;;  %v1767_v4 = vpop.permute.xlu0 %1766 }
 0x852   : > { %v1778_v51 = vpop.permute.xlu1 %1777  ;;  %v4860_v63 = vpop.permute.xlu0 %3728 }
 0x853   : > { %v3730_v39 = vunpack.i.l.bf16 %v4860_v63  ;;  %v3731_v48 = vunpack.i.h.bf16 %v4860_v63 }
 0x856   : > { %v4862_v1 = vpop.permute.xlu1 %3733  ;;  %v4864_v2 = vpop.permute.xlu0 %3738 }
 0x857   : > { %v3735_v19 = vunpack.i.l.bf16 %v4862_v1  ;;  %v3740_v53 = vunpack.i.l.bf16 %v4864_v2  ;;  %v3736_v56 = vunpack.i.h.bf16 %v4862_v1 }
 0x85a   : > { %v4866_v3 = vpop.permute.xlu1 %3743  ;;  %v3749_v5 = vpop.permute.xlu0 %3748 }
 0x85b   : > { %v3751_v55 = vunpack.i.h.bf16 %v3749_v5  ;;  %v3750_v62 = vunpack.i.l.bf16 %v3749_v5  ;;  %v3746_v63 = vunpack.i.h.bf16 %v4866_v3  ;;  %v3745_v1 = vunpack.i.l.bf16 %v4866_v3  ;;  %v2797_v3 = vld [vmem:[%s5235_s1 + $0x38] sm:$0xff] }
 0x85d   : > { %v3111_v45 = vpack.c.bf16 %v3751_v55, %v1750_v44  ;;  %v1762_v8 = vsel %vm267_vm4, %v3750_v62, %v3751_v55  ;;  %v1761_v9 = vsel %vm267_vm4, %v1756_v20, %v3750_v62 }
 0x85e   : > { %v3827_v12 = vpack.i.bf16 %v3751_v55, %v1762_v8  ;;  %v3832_v13 = vpack.i.bf16 %v1761_v9, %v4807_v58  ;;  %v3064_v47 = vpack.c.bf16 %v1761_v9, %v4807_v58  ;;  %v4872_v16 = vpop.permute.xlu1 %1832  ;;  %v3754_v59 = vpop.permute.xlu0 %3753  ;;  %v3062_v18 = vpack.c.bf16 %v1762_v8, %v1740_v61 }
 0x85f   : > { %v3756_v22 = vunpack.i.h.bf16 %v3754_v59  ;;  %v3755_v24 = vunpack.i.l.bf16 %v3754_v59  ;;  %3112 = vmatpush1.bf16.msra.mxu1 %v3111_v45  ;;  %v3741_v9 = vunpack.i.h.bf16 %v4864_v2 }
 0x860   : > { %3828 = vrot.lane.b32.xlu1 %v3827_v12, %s4076_s16  ;;  %3063 = vmatprep.subr.bf16.mxu0 %v3062_v18 }
 0x861   : > { %v1773_v25 = vsel %vm279_vm5, %v3755_v24, %v3756_v22  ;;  %3833 = vrot.lane.b32.xlu0 %v3832_v13, %s4076_s16  ;;  %3065 = vmatpush1.bf16.msra.mxu0 %v3064_v47  ;;  %v1772_v29 = vsel %vm279_vm5, %v1767_v4, %v3755_v24 }
 0x862   : > { %v3837_v14 = vpack.i.bf16 %v3756_v22, %v1773_v25  ;;  %v3759_v26 = vpop.permute.xlu1 %3758  ;;  %v3764_v27 = vpop.permute.xlu0 %3763  ;;  %3113 = vmatprep.subr.bf16.mxu1 %v4062_v10 }
 0x863   : > { %v3761_v28 = vunpack.i.h.bf16 %v3759_v26  ;;  %v3760_v57 = vunpack.i.l.bf16 %v3759_v26  ;;  %v4878_v6 = vunpack.i.h.bf16 %v3764_v27  ;;  %v3765_v23 = vunpack.i.l.bf16 %v3764_v27 }
 0x864   : > { %3838 = vrot.lane.b32.xlu1 %v3837_v14, %s4076_s16 }
 0x865   : > { %v1784_v32 = vsel %vm5247_vm6, %v3760_v57, %v3761_v28  ;;  %v1783_v33 = vsel %vm5247_vm6, %v1778_v51, %v3760_v57  ;;  %v3114_v35 = vpack.c.bf16 %v3761_v28, %v3756_v22  ;;  %v1934_v41 = vsel %vm315_vm7, %v4878_v6, %v3735_v19 }
 0x866   : > { %v3842_v40 = vpack.i.bf16 %v3761_v28, %v1784_v32  ;;  %v3847_v31 = vpack.i.bf16 %v1783_v33, %v1772_v29  ;;  %v3769_v42 = vpop.permute.xlu1 %3768  ;;  %v3774_v21 = vpop.permute.xlu0 %3773  ;;  %v3068_v43 = vpack.c.bf16 %v1783_v33, %v1772_v29  ;;  %v4890_v36 = vsel %vm315_vm7, %v3765_v23, %v4878_v6  ;;  %v2800_v28 = vld [vmem:[%s5236_s2 + $0x18] sm:$0xff] }
 0x867   : > { %v3771_v46 = vunpack.i.h.bf16 %v3769_v42  ;;  %v3770_v15 = vunpack.i.l.bf16 %v3769_v42  ;;  %3115 = vmatpush1.bf16.msra.mxu1 %v3114_v35  ;;  %v4893_v38 = vunpack.i.h.bf16 %v3774_v21  ;;  %v3775_v50 = vunpack.i.l.bf16 %v3774_v21 }
 0x868   : > { %3848 = vrot.lane.b32.xlu1 %v3847_v31, %s4076_s16  ;;  %3843 = vrot.lane.b32.xlu0 %v3842_v40, %s4076_s16  ;;  %v3066_v30 = vpack.c.bf16 %v1784_v32, %v1773_v25  ;;  %v3857_v37 = vpack.i.bf16 %v1934_v41, %v4890_v36  ;;  %vm5271_vm6 = vcmask 875520   ;;  %v1805_v5 = vsel %vm315_vm7, %v3736_v56, %v3765_v23 }
 0x869   : > { %v1930_v49 = vsel %vm5268_vm10, %v3770_v15, %v3771_v46  ;;  %v1931_v54 = vsel %vm5269_vm8, %v3771_v46, %v3730_v39  ;;  %3116 = vmatprep.subr.bf16.mxu1 %v4062_v10  ;;  %v1929_v58 = vsel %vm5270_vm9, %v3731_v48, %v3770_v15  ;;  %v4906_v52 = vsel %vm5271_vm6, %v3775_v50, %v4893_v38  ;;  %vm5272_vm10 = vmmov %vm5271_vm6  ;;  %v2801_v39 = vld [vmem:[%s5237_s3 + $0x18] sm:$0xff] }
 0x86a   : > { %v3852_v60 = vpack.i.bf16 %v1931_v54, %v1930_v49  ;;  %3067 = vmatprep.subr.bf16.mxu0 %v3066_v30  ;;  %v3779_v44 = vpop.permute.xlu1 %3778  ;;  %v1835_v61 = vpop.permute.xlu0 %1834  ;;  %v1937_v20 = vsel %vm5272_vm10, %v4893_v38, %v3740_v53  ;;  %v3862_v55 = vpack.i.bf16 %v1805_v5, %v1929_v58  ;;  %v1816_v59 = vsel %vm5271_vm6, %v3741_v9, %v3775_v50 }
 0x86b   : > { %3069 = vmatpush1.bf16.msra.mxu0 %v3068_v43  ;;  %v4910_v4 = vunpack.i.h.bf16 %v3779_v44  ;;  %v3780_v51 = vunpack.i.l.bf16 %v3779_v44  ;;  %v3867_v62 = vpack.i.bf16 %v1937_v20, %v4906_v52  ;;  %vm5273_vm8 = vcmask 588800  }
 0x86c   : > { %3858 = vrot.lane.b32.xlu1 %v3857_v37, %s4076_s16  ;;  %3853 = vrot.lane.b32.xlu0 %v3852_v60, %s4076_s16  ;;  %vm5274_vm9 = vmmov %vm5273_vm8  ;;  %v1838_v19 = vsel %vm350_vm11, %v4872_v16, %v1835_v61  ;;  %vm5275_vm10 = vcmask 1014784  }
 0x86d   : > { %v1940_v12 = vsel %vm252_vm3, %v4910_v4, %v3745_v1  ;;  %v1828_v13 = vsel %vm252_vm3, %v3780_v51, %v4910_v4  ;;  %v1827_v47 = vsel %vm252_vm3, %v3746_v63, %v3780_v51  ;;  %2799 = vmatprep.mubr.msk.f32.mxu1 %vm5273_vm8, %v2797_v3  ;;  %2798 = vmatprep.mubr.msk.f32.mxu0 %vm5274_vm9, %v2797_v3  ;;  %vm5276_vm6 = vmmov %vm5275_vm10  ;;  %vm5277_vm8 = vcmask 850944  }
 0x86e   : > { %v1837_v45 = vpop.permute.xlu1 %1836  ;;  %v4918_v8 = vpop.permute.xlu0 %1854  ;;  %v3872_v2 = vpack.i.bf16 %v1940_v12, %v1828_v13  ;;  %v3877_v18 = vpack.i.bf16 %v1827_v47, %v1816_v59  ;;  %v3074_v43 = vpack.c.bf16 %v1828_v13, %v4906_v52  ;;  %v3076_v50 = vpack.c.bf16 %v1827_v47, %v1816_v59  ;;  %vm5278_vm9 = vmmov %vm5277_vm8 }
 0x86f   : > { %v1943_v26 = vsel %vm350_vm11, %v1837_v45, %v4858_v34  ;;  %v1839_v27 = vsel %vm350_vm11, %v1835_v61, %v1837_v45 }
 0x870   : > { %3868 = vrot.lane.b32.xlu1 %v3867_v62, %s4076_s16  ;;  %3863 = vrot.lane.b32.xlu0 %v3862_v55, %s4076_s16 }
 0x872   : > { %v1789_v22 = vpop.permute.xlu1 %1788  ;;  %v4934_v24 = vpop.permute.xlu0 %1876 }
 0x874   : > { %3878 = vrot.lane.b32.xlu1 %v3877_v18, %s4076_s16  ;;  %3873 = vrot.lane.b32.xlu0 %v3872_v2, %s4076_s16 }
 0x876   : > { %v1844_v25 = vpop.permute.xlu1 %1843  ;;  %v4938_v14 = vpop.permute.xlu0 %1898 }
 0x878   : > { %1996 = vrot.lane.b32.xlu1 %v1943_v26, %s4076_s16  ;;  %1994 = vrot.lane.b32.xlu0 %v1839_v27, %s4076_s16 }
 0x87a   : > { %v1866_v57 = vpop.permute.xlu1 %1865  ;;  %v3784_v23 = vpop.permute.xlu0 %3783 }
 0x87b   : > { %v3786_v29 = vunpack.i.h.bf16 %v3784_v23  ;;  %v3785_v32 = vunpack.i.l.bf16 %v3784_v23 }
 0x87c   : > { %2194 = vperm.xlu1 %3416, %v2800_v28   ;;  %1992 = vrot.lane.b32.xlu0 %v1838_v19, %s4076_s16 }
 0x87d   : > { %v1794_v34 = vsel %vm5275_vm10, %v1789_v22, %v3785_v32  ;;  %v3117_v33 = vpack.c.bf16 %v4878_v6, %v3786_v29  ;;  %v1795_v35 = vsel %vm5276_vm6, %v3785_v32, %v3786_v29  ;;  %v3120_v6 = vpack.c.bf16 %v4910_v4, %v4893_v38 }
 0x87e   : > { %v3072_v40 = vpack.c.bf16 %v1805_v5, %v1794_v34  ;;  %v1888_v31 = vpop.permute.xlu1 %1887  ;;  %v3789_v41 = vpop.permute.xlu0 %3788  ;;  %v3070_v16 = vpack.c.bf16 %v4890_v36, %v1795_v35  ;;  %vm5279_vm10 = vcmask 711680  }
 0x87f   : > { %v3791_v42 = vunpack.i.h.bf16 %v3789_v41  ;;  %v3790_v21 = vunpack.i.l.bf16 %v3789_v41  ;;  %3118 = vmatpush1.bf16.msra.mxu1 %v3117_v33  ;;  %vm5280_vm6 = vmmov %vm5279_vm10 }
 0x880   : > { %3071 = vmatprep.subr.bf16.mxu0 %v3070_v16  ;;  %2204 = vperm.xlu0 %3415, %v2801_v39  }
 0x881   : > { %3073 = vmatpush1.bf16.msra.mxu0 %v3072_v40  ;;  %3119 = vmatprep.subr.bf16.mxu1 %v4062_v10  ;;  %v1850_v46 = vsel %vm5277_vm8, %v3790_v21, %v3791_v42  ;;  %v1849_v36 = vsel %vm5278_vm9, %v1844_v25, %v3790_v21  ;;  %v3123_v49 = vpack.c.bf16 %v3791_v42, %v1837_v45  ;;  %vm5281_vm8 = vcmask 695296  }
 0x882   : > { %v1910_v15 = vpop.permute.xlu1 %1909  ;;  %v3794_v48 = vpop.permute.xlu0 %3793  ;;  %3075 = vmatprep.subr.bf16.mxu0 %v3074_v43  ;;  %v3078_v53 = vpack.c.bf16 %v1850_v46, %v1839_v27  ;;  %v3080_v37 = vpack.c.bf16 %v1849_v36, %v1838_v19  ;;  %vm5282_vm9 = vmmov %vm5281_vm8 }
 0x883   : > { %3121 = vmatpush1.bf16.msra.mxu1 %v3120_v6  ;;  %v3795_v30 = vunpack.i.l.bf16 %v3794_v48  ;;  %v3796_v54 = vunpack.i.h.bf16 %v3794_v48 }
 0x884   : > { %3122 = vmatprep.subr.bf16.mxu1 %v4062_v10 }
 0x885   : > { %3077 = vmatpush1.bf16.msra.mxu0 %v3076_v50  ;;  %v1860_v44 = vsel %vm374_vm14, %v4918_v8, %v3795_v30  ;;  %v1861_v51 = vsel %vm374_vm14, %v3795_v30, %v3796_v54 }
 0x886   : > { %v3799_v38 = vpop.permute.xlu1 %3798  ;;  %v3804_v56 = vpop.permute.xlu0 %3803  ;;  %3079 = vmatprep.subr.bf16.mxu0 %v3078_v53 }
 0x887   : > { %v3801_v58 = vunpack.i.h.bf16 %v3799_v38  ;;  %v3800_v60 = vunpack.i.l.bf16 %v3799_v38  ;;  %3124 = vmatpush1.bf16.msra.mxu1 %v3123_v49  ;;  %v3806_v61 = vunpack.i.h.bf16 %v3804_v56  ;;  %v3805_v52 = vunpack.i.l.bf16 %v3804_v56 }
 0x888   : > { %3125 = vmatprep.subr.bf16.mxu1 %v4062_v10 }
 0x889   : > { %v1871_v20 = vsel %vm5279_vm10, %v1866_v57, %v3800_v60  ;;  %v3126_v4 = vpack.c.bf16 %v3801_v58, %v3796_v54  ;;  %3081 = vmatpush1.bf16.msra.mxu0 %v3080_v37  ;;  %v1872_v63 = vsel %vm5280_vm6, %v3800_v60, %v3801_v58  ;;  %v1882_v8 = vsel %vm398_vm0, %v4934_v24, %v3805_v52 }
 0x88a   : > { %v3084_v1 = vpack.c.bf16 %v1871_v20, %v1860_v44  ;;  %v3809_v5 = vpop.permute.xlu1 %3808  ;;  %v3814_v55 = vpop.permute.xlu0 %3813  ;;  %v3082_v62 = vpack.c.bf16 %v1872_v63, %v1861_v51  ;;  %v1883_v13 = vsel %vm398_vm0, %v3805_v52, %v3806_v61  ;;  %vm5288_vm6 = vcmask 875520  }
 0x88b   : > { %v3811_v45 = vunpack.i.h.bf16 %v3809_v5  ;;  %v3810_v9 = vunpack.i.l.bf16 %v3809_v5  ;;  %3127 = vmatpush1.bf16.msra.mxu1 %v3126_v4  ;;  %v3815_v12 = vunpack.i.l.bf16 %v3814_v55  ;;  %v3816_v59 = vunpack.i.h.bf16 %v3814_v55 }
 0x88c   : > { %3083 = vmatprep.subr.bf16.mxu0 %v3082_v62  ;;  %3128 = vmatprep.subr.bf16.mxu1 %v4062_v10 }
 0x88d   : > { %v1893_v47 = vsel %vm5281_vm8, %v1888_v31, %v3810_v9  ;;  %v3129_v3 = vpack.c.bf16 %v3811_v45, %v3806_v61  ;;  %3085 = vmatpush1.bf16.msra.mxu0 %v3084_v1  ;;  %v1894_v2 = vsel %vm5282_vm9, %v3810_v9, %v3811_v45  ;;  %v1904_v24 = vsel %vm422_vm12, %v4938_v14, %v3815_v12  ;;  %vm5289_vm8 = vmmov %vm5288_vm6 }
 0x88e   : > { %v3088_v18 = vpack.c.bf16 %v1893_v47, %v1882_v8  ;;  %v3819_v22 = vpop.permute.xlu1 %3818  ;;  %v3086_v25 = vpack.c.bf16 %v1894_v2, %v1883_v13  ;;  %v1905_v23 = vsel %vm422_vm12, %v3815_v12, %v3816_v59  ;;  %v3824_v34 = vpop.permute.xlu0 %3823  ;;  %vm5291_vm9 = vcmask 588800  }
 0x88f   : > { %v3821_v26 = vunpack.i.h.bf16 %v3819_v22  ;;  %v3820_v27 = vunpack.i.l.bf16 %v3819_v22  ;;  %3130 = vmatpush1.bf16.msra.mxu1 %v3129_v3  ;;  %v3826_v14 = vunpack.i.h.bf16 %v3824_v34  ;;  %v3825_v33 = vunpack.i.l.bf16 %v3824_v34 }
 0x890   : > { %3087 = vmatprep.subr.bf16.mxu0 %v3086_v25  ;;  %3131 = vmatprep.subr.bf16.mxu1 %v4062_v10 }
 0x891   : > { %v1915_v28 = vsel %vm434_vm15, %v1910_v15, %v3820_v27  ;;  %v3132_v57 = vpack.c.bf16 %v3821_v26, %v3816_v59  ;;  %3089 = vmatpush1.bf16.msra.mxu0 %v3088_v18  ;;  %v1916_v19 = vsel %vm434_vm15, %v3820_v27, %v3821_v26  ;;  %v1999_v21 = vsel %vm519_vm13, %v3825_v33, %v3826_v14 }
 0x892   : > { %v3092_v29 = vpack.c.bf16 %v1915_v28, %v1904_v24  ;;  %v3090_v32 = vpack.c.bf16 %v1916_v19, %v1905_v23 }
 0x893   : > { %3133 = vmatpush1.bf16.msra.mxu1 %v3132_v57 }
 0x894   : > { %3091 = vmatprep.subr.bf16.mxu0 %v3090_v32  ;;  %3134 = vmatprep.subr.bf16.mxu1 %v4062_v10 }
 0x895   : > { %3093 = vmatpush1.bf16.msra.mxu0 %v3092_v29 }
 0x8d2   : > { %v3829_v35 = vpop.permute.xlu1 %3828 }
 0x8d3   : > { %v3831_v39 = vunpack.i.h.bf16 %v3829_v35  ;;  %v3830_v40 = vunpack.i.l.bf16 %v3829_v35  ;;  %v3834_v31 = vpop.permute.xlu0 %3833 }
 0x8d4   : > { %v3836_v41 = vunpack.i.h.bf16 %v3834_v31  ;;  %v3835_v16 = vunpack.i.l.bf16 %v3834_v31 }
 0x8d5   : > { %v3135_v42 = vpack.c.bf16 %v3831_v39, %v3826_v14  ;;  %v2001_v43 = vsel %vm519_vm13, %v3830_v40, %v3831_v39 }
 0x8d6   : > { %v2000_v6 = vsel %vm519_vm13, %v3836_v41, %v3830_v40  ;;  %v1998_v46 = vsel %vm519_vm13, %v3835_v16, %v3825_v33  ;;  %v3839_v15 = vpop.permute.xlu1 %3838  ;;  %v3094_v48 = vpack.c.bf16 %v2001_v43, %v1999_v21  ;;  %v2796_v16 = vld [vmem:[%s5235_s1 + $0x30] sm:$0xff] }
 0x8d7   : > { %v3096_v50 = vpack.c.bf16 %v2000_v6, %v1998_v46  ;;  %3136 = vmatpush1.bf16.msra.mxu1 %v3135_v42  ;;  %v3841_v36 = vunpack.i.h.bf16 %v3839_v15  ;;  %v3840_v30 = vunpack.i.l.bf16 %v3839_v15 }
 0x8d8   : > { %3095 = vmatprep.subr.bf16.mxu0 %v3094_v48  ;;  %3137 = vmatprep.subr.bf16.mxu1 %v4062_v10 }
 0x8d9   : > { %3097 = vmatpush1.bf16.msra.mxu0 %v3096_v50  ;;  %v2003_v58 = vsel %vm519_vm13, %v3840_v30, %v3841_v36 }
 0x8da   : > { %v3849_v53 = vpop.permute.xlu1 %3848  ;;  %v3844_v49 = vpop.permute.xlu0 %3843 }
 0x8db   : > { %v3851_v54 = vunpack.i.h.bf16 %v3849_v53  ;;  %v3850_v38 = vunpack.i.l.bf16 %v3849_v53  ;;  %v3846_v56 = vunpack.i.h.bf16 %v3844_v49  ;;  %v3845_v37 = vunpack.i.l.bf16 %v3844_v49 }
 0x8dd   : > { %v2002_v60 = vsel %vm519_vm13, %v3850_v38, %v3840_v30  ;;  %v3138_v44 = vpack.c.bf16 %v3846_v56, %v3841_v36  ;;  %v2004_v61 = vsel %vm519_vm13, %v3851_v54, %v3845_v37  ;;  %v2005_v52 = vsel %vm519_vm13, %v3845_v37, %v3846_v56 }
 0x8de   : > { %v3100_v20 = vpack.c.bf16 %v2004_v61, %v2002_v60  ;;  %v3859_v4 = vpop.permute.xlu1 %3858  ;;  %v3854_v51 = vpop.permute.xlu0 %3853  ;;  %v3098_v63 = vpack.c.bf16 %v2005_v52, %v2003_v58 }
 0x8df   : > { %v3861_v1 = vunpack.i.h.bf16 %v3859_v4  ;;  %v3860_v5 = vunpack.i.l.bf16 %v3859_v4  ;;  %v3856_v55 = vunpack.i.h.bf16 %v3854_v51  ;;  %v3855_v62 = vunpack.i.l.bf16 %v3854_v51  ;;  %3139 = vmatpush1.bf16.msra.mxu1 %v3138_v44  ;;  %v2239_v51 = vld [vmem:[#allocation2 + $0x18] sm:$0xff] }
 0x8e0   : > { %3099 = vmatprep.subr.bf16.mxu0 %v3098_v63  ;;  %3140 = vmatprep.subr.bf16.mxu1 %v4062_v10 }
 0x8e1   : > { %v3141_v45 = vpack.c.bf16 %v3861_v1, %v3856_v55  ;;  %3101 = vmatpush1.bf16.msra.mxu0 %v3100_v20  ;;  %v2007_v9 = vsel %vm519_vm13, %v3855_v62, %v3856_v55  ;;  %v2009_v8 = vsel %vm519_vm13, %v3860_v5, %v3861_v1 }
 0x8e2   : > { %v3869_v12 = vpop.permute.xlu1 %3868  ;;  %v3864_v13 = vpop.permute.xlu0 %3863  ;;  %v3102_v47 = vpack.c.bf16 %v2009_v8, %v2007_v9 }
 0x8e3   : > { %v3866_v3 = vunpack.i.h.bf16 %v3864_v13  ;;  %v3865_v59 = vunpack.i.l.bf16 %v3864_v13  ;;  %3142 = vmatpush1.bf16.msra.mxu1 %v3141_v45  ;;  %v3871_v2 = vunpack.i.h.bf16 %v3869_v12  ;;  %v3870_v18 = vunpack.i.l.bf16 %v3869_v12 }
 0x8e4   : > { %3103 = vmatprep.subr.bf16.mxu0 %v3102_v47  ;;  %3143 = vmatprep.subr.bf16.mxu1 %v4062_v10 }
 0x8e5   : > { %v2008_v22 = vsel %vm519_vm13, %v3866_v3, %v3860_v5  ;;  %v2006_v25 = vsel %vm519_vm13, %v3865_v59, %v3855_v62  ;;  %v2011_v29 = vsel %vm519_vm13, %v3870_v18, %v3871_v2 }
 0x8e6   : > { %v3104_v26 = vpack.c.bf16 %v2008_v22, %v2006_v25  ;;  %v3879_v27 = vpop.permute.xlu1 %3878  ;;  %v3874_v24 = vpop.permute.xlu0 %3873 }
 0x8e7   : > { %v3881_v28 = vunpack.i.h.bf16 %v3879_v27  ;;  %v3880_v57 = vunpack.i.l.bf16 %v3879_v27  ;;  %v3876_v23 = vunpack.i.h.bf16 %v3874_v24  ;;  %v3875_v19 = vunpack.i.l.bf16 %v3874_v24 }
 0x8e8   : > { %3105 = vmatpush1.bf16.msra.mxu0 %v3104_v26 }
 0x8e9   : > { %v2010_v32 = vsel %vm519_vm13, %v3880_v57, %v3870_v18  ;;  %v3144_v34 = vpack.c.bf16 %v3876_v23, %v3871_v2  ;;  %v2012_v14 = vsel %vm519_vm13, %v3881_v28, %v3875_v19  ;;  %v2013_v33 = vsel %vm519_vm13, %v3875_v19, %v3876_v23 }
 0x8ea   : > { %v3108_v35 = vpack.c.bf16 %v2012_v14, %v2010_v32  ;;  %v1997_v39 = vpop.permute.xlu1 %1996  ;;  %v1995_v40 = vpop.permute.xlu0 %1994  ;;  %v3106_v31 = vpack.c.bf16 %v2013_v33, %v2011_v29 }
 0x8eb   : > { %3145 = vmatpush1.bf16.msra.mxu1 %v3144_v34  ;;  %v2015_v41 = vsel %vm519_vm13, %v1995_v40, %v1997_v39 }
 0x8ec   : > { %3107 = vmatprep.subr.bf16.mxu0 %v3106_v31  ;;  %2168 = vmatprep.subr.mxu1 %v4057_v0 }
 0x8ed   : > { %3109 = vmatpush1.bf16.msra.mxu0 %v3108_v35 }
 0x8ee   : > { %v1993_v42 = vpop.permute.xlu0 %1992  ;;  %2097 = vmatprep.subr.mxu0 %v2015_v41 }
 0x8ef   : > { %v2014_v21 = vsel %vm519_vm13, %v1993_v42, %v1995_v40  ;;  %2169 = vmatpush1.msra.mxu1 %v1997_v39 }
 0x8f0   : > { %2185 = vmatmul.mubr.f32.vlgmr.msra.gmra.mrb[6].mxu1 %v2796_v16  ;;  %3194 = vmatprep.subr.bf16.mxu1 %v4062_v10 }
 0x8f1   : > { %2098 = vmatpush1.msra.mxu0 %v2014_v21 }
 0x8f2   : > { %2114 = vmatmul.mubr.f32.vlgmr.msra.gmra.mrb[6].mxu0 %v2796_v16 }
 0x8fb   : > { %v2195_v43 = vpop.permute.xlu1 %2194 }
 0x8ff   : > { %v2205_v48 = vpop.permute.xlu0 %2204 }
 0x9c3   : > { %v2186_v6 = vpop.f32.mrb[6].mxu1 }
 0x9c4   : > { %v2199_v46 = vmul.f32 %v2195_v43, %v2186_v6  ;;  %v2188_v15 = vpop.f32.mrb[7].mxu1 }
 0x9c5   : > { %v2115_v50 = vpop.f32.mrb[6].mxu0 }
 0x9c6   : > { %v2209_v36 = vadd.f32 %v2205_v48, %v2199_v46  ;;  %v2197_v30 = vmul.f32 %v2195_v43, %v2115_v50  ;;  %v2117_v53 = vpop.f32.mrb[7].mxu0 }
 0x9c7   : > { %v2198_v49 = vmul.f32 %v2195_v43, %v2117_v53 }
 0x9c8   : > { %v2207_v54 = vadd.f32 %v2205_v48, %v2197_v30  ;;  %v2212_v56 = vmul.f32 0.01, %v2209_v36 }
 0x9c9   : > { %v2208_v38 = vadd.f32 %v2205_v48, %v2198_v49 }
 0x9ca   : > { %v2210_v37 = vmul.f32 0.01, %v2207_v54  ;;  %v2215_v61 = vmax.f32 %v2209_v36, %v2212_v56 }
 0x9cb   : > { %v2211_v58 = vmul.f32 0.01, %v2208_v38 }
 0x9cc   : > { %v2213_v60 = vmax.f32 %v2207_v54, %v2210_v37  ;;  %v2218_v4 = vmul.f32 %v2215_v61, %v4370_v17 }
 0x9cd   : > { %v2214_v44 = vmax.f32 %v2208_v38, %v2211_v58 }
 0x9ce   : > { %v2216_v52 = vmul.f32 %v2213_v60, %v4365_v7 }
 0x9cf   : > { %v2217_v20 = vmul.f32 %v2214_v44, %v4367_v11 }
 0x9d0   : > { %2222 = vrot.lane.b32.xlu1 %v2216_v52, %s4058_s24 }
 0x9d1   : > { %2224 = vrot.lane.b32.xlu0 %v2217_v20, %s4058_s24 }
 0x9d4   : > { %2226 = vrot.lane.b32.xlu1 %v2218_v4, %s4058_s24 }
 0x9d5   : > { %2429 = vrot.lane.b32.xlu0 %v2239_v51, %s4059_s25 }
 0xa42   : > { %v2223_v63 = vpop.permute.xlu1 %2222 }
 0xa43   : > { %2233 = vst.msk [vmem:[#allocation2] sm:$0xff] %vm249_vm1, %v2223_v63  ;;  %v2225_v1 = vpop.permute.xlu0 %2224  ;;  %vm5283_vm1 = vcmask 1022976  }
 0xa44   : > { %v5019_v5 = vsel %vm243_vm2, %v2223_v63, %v2225_v1 }
 0xa46   : > { %v2227_v7 = vpop.permute.xlu1 %2226 }
 0xa47   : > { %v2229_v11 = vsel %vm243_vm2, %v2225_v1, %v2227_v7  ;;  %v5074_v9 = vpop.permute.xlu0 %2429  ;;  %vm5284_vm2 = vmmov %vm5283_vm1 }
 0xa48   : > { %2235 = vst.msk [vmem:[#allocation2 + $0x10] sm:$0xff] %vm252_vm3, %v2229_v11 }
 0xa4a   : > { %v5023_v55 = vld [vmem:[#allocation2] sm:$0xff] }
 0xa4b   : > { %2243 = vrot.lane.b32.xlu1 %v5023_v55, %s4061_s27  ;;  %2254 = vrot.lane.b32.xlu0 %v5023_v55, %s4060_s26  ;;  %v3882_v17 = vpack.i.bf16 %v5023_v55, %v2239_v51 }
 0xa4f   : > { %2265 = vrot.lane.b32.xlu1 %v5023_v55, %s4064_s29  ;;  %3883 = vrot.lane.b32.xlu0 %v3882_v17, %s4063_s28  ;;  %v2238_v62 = vld [vmem:[#allocation2 + $0x10] sm:$0xff] }
 0xa50   : > { %v3902_v45 = vpack.i.bf16 %v2238_v62, %v5019_v5 }
 0xa53   : > { %3888 = vrot.lane.b32.xlu1 %v3882_v17, %s4066_s6  ;;  %3893 = vrot.lane.b32.xlu0 %v3882_v17, %s4065_s30 }
 0xa57   : > { %3898 = vrot.lane.b32.xlu1 %v3882_v17, %s4067_s7  ;;  %3903 = vrot.lane.b32.xlu0 %v3902_v45, %s4061_s27 }
 0xa5b   : > { %2320 = vrot.lane.b32.xlu1 %v5023_v55, %s4059_s25  ;;  %3908 = vrot.lane.b32.xlu0 %v3902_v45, %s4060_s26 }
 0xa5f   : > { %3913 = vrot.lane.b32.xlu1 %v3902_v45, %s4064_s29  ;;  %3918 = vrot.lane.b32.xlu0 %v3902_v45, %s4066_s6 }
 0xa63   : > { %3923 = vrot.lane.b32.xlu1 %v3902_v45, %s4063_s28  ;;  %3928 = vrot.lane.b32.xlu0 %v3902_v45, %s4065_s30 }
 0xa67   : > { %3933 = vrot.lane.b32.xlu1 %v3902_v45, %s4067_s7  ;;  %2322 = vrot.lane.b32.xlu0 %v5019_v5, %s4059_s25 }
 0xa6b   : > { %2324 = vrot.lane.b32.xlu1 %v2238_v62, %s4059_s25  ;;  %2342 = vrot.lane.b32.xlu0 %v5023_v55, %s4068_s8 }
 0xa6f   : > { %2276 = vrot.lane.b32.xlu1 %v5023_v55, %s4069_s9  ;;  %2364 = vrot.lane.b32.xlu0 %v5023_v55, %s4070_s10 }
 0xa73   : > { %2331 = vrot.lane.b32.xlu1 %v5023_v55, %s4071_s11  ;;  %2386 = vrot.lane.b32.xlu0 %v5023_v55, %s4072_s12 }
 0xa77   : > { %2353 = vrot.lane.b32.xlu1 %v5023_v55, %s4073_s13  ;;  %3938 = vrot.lane.b32.xlu0 %v3902_v45, %s4069_s9  ;;  %s224_s9 = scalar_lea.vmem %s5239_s5, %s3230_s20 }
 0xa7b   : > { %2375 = vrot.lane.b32.xlu1 %v5023_v55, %s4074_s14  ;;  %3943 = vrot.lane.b32.xlu0 %v3902_v45, %s4071_s11 }
 0xa7f   : > { %2397 = vrot.lane.b32.xlu1 %v5023_v55, %s4075_s15  ;;  %3948 = vrot.lane.b32.xlu0 %v3902_v45, %s4068_s8 }
 0xa83   : > { %3953 = vrot.lane.b32.xlu1 %v3902_v45, %s4073_s13  ;;  %3958 = vrot.lane.b32.xlu0 %v3902_v45, %s4070_s10 }
 0xa87   : > { %3963 = vrot.lane.b32.xlu1 %v3902_v45, %s4074_s14  ;;  %3968 = vrot.lane.b32.xlu0 %v3902_v45, %s4072_s12 }
 0xa8b   : > { %3973 = vrot.lane.b32.xlu1 %v3902_v45, %s4075_s15  ;;  %3978 = vrot.lane.b32.xlu0 %v3902_v45, %s4076_s16 }
 0xabd   : > { %v2244_v8 = vpop.permute.xlu1 %2243  ;;  %v2255_v12 = vpop.permute.xlu0 %2254 }
 0xac1   : > { %v2266_v13 = vpop.permute.xlu1 %2265  ;;  %v5076_v47 = vpop.permute.xlu0 %3883 }
 0xac2   : > { %v3885_v48 = vunpack.i.l.bf16 %v5076_v47  ;;  %v3886_v58 = vunpack.i.h.bf16 %v5076_v47 }
 0xac5   : > { %v5078_v3 = vpop.permute.xlu1 %3888  ;;  %v5080_v59 = vpop.permute.xlu0 %3893 }
 0xac6   : > { %v3890_v21 = vunpack.i.l.bf16 %v5078_v3  ;;  %v3895_v52 = vunpack.i.l.bf16 %v5080_v59  ;;  %v3891_v51 = vunpack.i.h.bf16 %v5078_v3 }
 0xac9   : > { %v5082_v2 = vpop.permute.xlu1 %3898  ;;  %v3904_v18 = vpop.permute.xlu0 %3903 }
 0xaca   : > { %v3906_v22 = vunpack.i.h.bf16 %v3904_v18  ;;  %v3905_v25 = vunpack.i.l.bf16 %v3904_v18 }
 0xacc   : > { %v3195_v26 = vpack.c.bf16 %v3906_v22, %v2238_v62  ;;  %v2250_v27 = vsel %vm267_vm4, %v3905_v25, %v3906_v22  ;;  %v2249_v24 = vsel %vm267_vm4, %v2244_v8, %v3905_v25  ;;  %vm5285_vm4 = vcmask 891904  }
 0xacd   : > { %v3982_v28 = vpack.i.bf16 %v3906_v22, %v2250_v27  ;;  %v3987_v57 = vpack.i.bf16 %v2249_v24, %v5023_v55  ;;  %v3148_v23 = vpack.c.bf16 %v2249_v24, %v5023_v55  ;;  %v5088_v19 = vpop.permute.xlu1 %2320  ;;  %v3909_v29 = vpop.permute.xlu0 %3908  ;;  %v3146_v32 = vpack.c.bf16 %v2250_v27, %v5019_v5  ;;  %vm5287_vm10 = vmmov %vm5285_vm4 }
 0xace   : > { %v3911_v34 = vunpack.i.h.bf16 %v3909_v29  ;;  %v3910_v14 = vunpack.i.l.bf16 %v3909_v29  ;;  %3196 = vmatpush1.bf16.msra.mxu1 %v3195_v26  ;;  %v3901_v8 = vunpack.i.h.bf16 %v5082_v2  ;;  %v3896_v25 = vunpack.i.h.bf16 %v5080_v59 }
 0xacf   : > { %3983 = vrot.lane.b32.xlu1 %v3982_v28, %s4076_s16  ;;  %3147 = vmatprep.subr.bf16.mxu0 %v3146_v32 }
 0xad0   : > { %v2261_v33 = vsel %vm279_vm5, %v3910_v14, %v3911_v34  ;;  %3988 = vrot.lane.b32.xlu0 %v3987_v57, %s4076_s16  ;;  %3149 = vmatpush1.bf16.msra.mxu0 %v3148_v23  ;;  %v2260_v43 = vsel %vm279_vm5, %v2255_v12, %v3910_v14  ;;  %vm5286_vm5 = vmmov %vm5285_vm4  ;;  %v3900_v12 = vunpack.i.l.bf16 %v5082_v2  ;;  %v2803_v2 = vld [vmem:[%s5235_s1 + $0x48] sm:$0xff] }
 0xad1   : > { %v3992_v35 = vpack.i.bf16 %v3911_v34, %v2261_v33  ;;  %v3914_v39 = vpop.permute.xlu1 %3913  ;;  %v3919_v40 = vpop.permute.xlu0 %3918  ;;  %3197 = vmatprep.subr.bf16.mxu1 %v4062_v10  ;;  %2805 = vmatprep.mubr.msk.f32.mxu1 %vm5291_vm9, %v2803_v2 }
 0xad2   : > { %v3916_v31 = vunpack.i.h.bf16 %v3914_v39  ;;  %v3915_v41 = vunpack.i.l.bf16 %v3914_v39  ;;  %v5095_v16 = vunpack.i.h.bf16 %v3919_v40  ;;  %v3920_v42 = vunpack.i.l.bf16 %v3919_v40 }
 0xad3   : > { %3993 = vrot.lane.b32.xlu1 %v3992_v35, %s4076_s16  ;;  %v2806_v35 = vld [vmem:[%s5236_s2 + $0x20] sm:$0xff] }
 0xad4   : > { %v2272_v6 = vsel %vm5283_vm1, %v3915_v41, %v3916_v31  ;;  %v2271_v46 = vsel %vm5284_vm2, %v2266_v13, %v3915_v41  ;;  %v3198_v15 = vpack.c.bf16 %v3916_v31, %v3911_v34  ;;  %v2422_v30 = vsel %vm315_vm7, %v5095_v16, %v3890_v21  ;;  %vm5292_vm1 = vmmov %vm5291_vm9 }
 0xad5   : > { %v3997_v50 = vpack.i.bf16 %v3916_v31, %v2272_v6  ;;  %v4002_v36 = vpack.i.bf16 %v2271_v46, %v2260_v43  ;;  %v3924_v53 = vpop.permute.xlu1 %3923  ;;  %v3929_v49 = vpop.permute.xlu0 %3928  ;;  %v3152_v54 = vpack.c.bf16 %v2271_v46, %v2260_v43  ;;  %v5107_v38 = vsel %vm315_vm7, %v3920_v42, %v5095_v16  ;;  %2804 = vmatprep.mubr.msk.f32.mxu0 %vm5292_vm1, %v2803_v2 }
 0xad6   : > { %v3926_v56 = vunpack.i.h.bf16 %v3924_v53  ;;  %v3925_v37 = vunpack.i.l.bf16 %v3924_v53  ;;  %3199 = vmatpush1.bf16.msra.mxu1 %v3198_v15  ;;  %v5110_v60 = vunpack.i.h.bf16 %v3929_v49  ;;  %v3930_v44 = vunpack.i.l.bf16 %v3929_v49 }
 0xad7   : > { %4003 = vrot.lane.b32.xlu1 %v4002_v36, %s4076_s16  ;;  %3998 = vrot.lane.b32.xlu0 %v3997_v50, %s4076_s16  ;;  %v3150_v61 = vpack.c.bf16 %v2272_v6, %v2261_v33  ;;  %v4012_v63 = vpack.i.bf16 %v2422_v30, %v5107_v38  ;;  %v2293_v13 = vsel %vm315_vm7, %v3891_v51, %v3920_v42  ;;  %vm5290_vm7 = vmmov %vm5288_vm6  ;;  %v2807_v6 = vld [vmem:[%s5237_s3 + $0x20] sm:$0xff] }
 0xad8   : > { %v2418_v20 = vsel %vm5285_vm4, %v3925_v37, %v3926_v56  ;;  %v2419_v4 = vsel %vm5286_vm5, %v3926_v56, %v3885_v48  ;;  %3200 = vmatprep.subr.bf16.mxu1 %v4062_v10  ;;  %v2417_v1 = vsel %vm5287_vm10, %v3886_v58, %v3925_v37  ;;  %v5123_v55 = vsel %vm5288_vm6, %v3930_v44, %v5110_v60 }
 0xad9   : > { %v4007_v5 = vpack.i.bf16 %v2419_v4, %v2418_v20  ;;  %3151 = vmatprep.subr.bf16.mxu0 %v3150_v61  ;;  %v3934_v7 = vpop.permute.xlu1 %3933  ;;  %v2323_v11 = vpop.permute.xlu0 %2322  ;;  %v2425_v17 = vsel %vm5289_vm8, %v5110_v60, %v3895_v52  ;;  %v4017_v47 = vpack.i.bf16 %v2293_v13, %v2417_v1  ;;  %v2304_v28 = vsel %vm5290_vm7, %v3896_v25, %v3930_v44 }
 0xada   : > { %3153 = vmatpush1.bf16.msra.mxu0 %v3152_v54  ;;  %v5127_v62 = vunpack.i.h.bf16 %v3934_v7  ;;  %v3935_v45 = vunpack.i.l.bf16 %v3934_v7  ;;  %v4022_v3 = vpack.i.bf16 %v2425_v17, %v5123_v55  ;;  %v2326_v31 = vsel %vm350_vm11, %v5088_v19, %v2323_v11 }
 0xadb   : > { %4013 = vrot.lane.b32.xlu1 %v4012_v63, %s4076_s16  ;;  %4008 = vrot.lane.b32.xlu0 %v4007_v5, %s4076_s16  ;;  %vm5297_vm5 = vcmask 711680   ;;  %vm5299_vm6 = vcmask 695296  }
 0xadc   : > { %v2428_v26 = vsel %vm252_vm3, %v5127_v62, %v3900_v12  ;;  %v2316_v27 = vsel %vm252_vm3, %v3935_v45, %v5127_v62  ;;  %v2315_v24 = vsel %vm252_vm3, %v3901_v8, %v3935_v45  ;;  %vm5293_vm3 = vcmask 1014784   ;;  %vm5298_vm10 = vmmov %vm5297_vm5 }
 0xadd   : > { %v2325_v18 = vpop.permute.xlu1 %2324  ;;  %v5135_v22 = vpop.permute.xlu0 %2342  ;;  %v4027_v59 = vpack.i.bf16 %v2428_v26, %v2316_v27  ;;  %v4032_v57 = vpack.i.bf16 %v2315_v24, %v2304_v28  ;;  %vm5294_vm2 = vmmov %vm5293_vm3  ;;  %v3158_v30 = vpack.c.bf16 %v2316_v27, %v5123_v55  ;;  %v3160_v56 = vpack.c.bf16 %v2315_v24, %v2304_v28 }
 0xade   : > { %v2431_v14 = vsel %vm350_vm11, %v2325_v18, %v5074_v9  ;;  %v2327_v33 = vsel %vm350_vm11, %v2323_v11, %v2325_v18  ;;  %vm5295_vm11 = vcmask 850944  }
 0xadf   : > { %4023 = vrot.lane.b32.xlu1 %v4022_v3, %s4076_s16  ;;  %4018 = vrot.lane.b32.xlu0 %v4017_v47, %s4076_s16  ;;  %vm5296_vm4 = vmmov %vm5295_vm11 }
 0xae1   : > { %v2277_v23 = vpop.permute.xlu1 %2276  ;;  %v5151_v29 = vpop.permute.xlu0 %2364 }
 0xae3   : > { %4033 = vrot.lane.b32.xlu1 %v4032_v57, %s4076_s16  ;;  %4028 = vrot.lane.b32.xlu0 %v4027_v59, %s4076_s16 }
 0xae5   : > { %v2332_v32 = vpop.permute.xlu1 %2331  ;;  %v5155_v34 = vpop.permute.xlu0 %2386 }
 0xae7   : > { %2484 = vrot.lane.b32.xlu1 %v2431_v14, %s4076_s16  ;;  %2482 = vrot.lane.b32.xlu0 %v2327_v33, %s4076_s16 }
 0xae9   : > { %v2354_v39 = vpop.permute.xlu1 %2353  ;;  %v3939_v40 = vpop.permute.xlu0 %3938 }
 0xaea   : > { %v3941_v41 = vunpack.i.h.bf16 %v3939_v40  ;;  %v3940_v42 = vunpack.i.l.bf16 %v3939_v40 }
 0xaeb   : > { %2682 = vperm.xlu1 %3416, %v2806_v35   ;;  %2480 = vrot.lane.b32.xlu0 %v2326_v31, %s4076_s16 }
 0xaec   : > { %v2282_v9 = vsel %vm5293_vm3, %v2277_v23, %v3940_v42  ;;  %v3201_v21 = vpack.c.bf16 %v5095_v16, %v3941_v41  ;;  %v2283_v43 = vsel %vm5294_vm2, %v3940_v42, %v3941_v41  ;;  %v3204_v16 = vpack.c.bf16 %v5127_v62, %v5110_v60 }
 0xaed   : > { %v3156_v46 = vpack.c.bf16 %v2293_v13, %v2282_v9  ;;  %v2376_v15 = vpop.permute.xlu1 %2375  ;;  %v3944_v48 = vpop.permute.xlu0 %3943  ;;  %v3154_v19 = vpack.c.bf16 %v5107_v38, %v2283_v43 }
 0xaee   : > { %v3946_v50 = vunpack.i.h.bf16 %v3944_v48  ;;  %v3945_v36 = vunpack.i.l.bf16 %v3944_v48  ;;  %3202 = vmatpush1.bf16.msra.mxu1 %v3201_v21 }
 0xaef   : > { %3155 = vmatprep.subr.bf16.mxu0 %v3154_v19  ;;  %2692 = vperm.xlu0 %3415, %v2807_v6  }
 0xaf0   : > { %3157 = vmatpush1.bf16.msra.mxu0 %v3156_v46  ;;  %3203 = vmatprep.subr.bf16.mxu1 %v4062_v10  ;;  %v2338_v53 = vsel %vm5295_vm11, %v3945_v36, %v3946_v50  ;;  %v2337_v38 = vsel %vm5296_vm4, %v2332_v32, %v3945_v36  ;;  %v3207_v44 = vpack.c.bf16 %v3946_v50, %v2325_v18 }
 0xaf1   : > { %v2398_v49 = vpop.permute.xlu1 %2397  ;;  %v3949_v54 = vpop.permute.xlu0 %3948  ;;  %3159 = vmatprep.subr.bf16.mxu0 %v3158_v30  ;;  %v3162_v58 = vpack.c.bf16 %v2338_v53, %v2327_v33  ;;  %v3164_v20 = vpack.c.bf16 %v2337_v38, %v2326_v31 }
 0xaf2   : > { %3205 = vmatpush1.bf16.msra.mxu1 %v3204_v16  ;;  %v3950_v37 = vunpack.i.l.bf16 %v3949_v54  ;;  %v3951_v61 = vunpack.i.h.bf16 %v3949_v54 }
 0xaf3   : > { %3206 = vmatprep.subr.bf16.mxu1 %v4062_v10 }
 0xaf4   : > { %3161 = vmatpush1.bf16.msra.mxu0 %v3160_v56  ;;  %v2348_v63 = vsel %vm374_vm14, %v5135_v22, %v3950_v37  ;;  %v2349_v55 = vsel %vm374_vm14, %v3950_v37, %v3951_v61  ;;  %vm5300_vm14 = vmmov %vm5299_vm6 }
 0xaf5   : > { %v3954_v60 = vpop.permute.xlu1 %3953  ;;  %v3959_v52 = vpop.permute.xlu0 %3958  ;;  %3163 = vmatprep.subr.bf16.mxu0 %v3162_v58 }
 0xaf6   : > { %v3956_v4 = vunpack.i.h.bf16 %v3954_v60  ;;  %v3955_v51 = vunpack.i.l.bf16 %v3954_v60  ;;  %3208 = vmatpush1.bf16.msra.mxu1 %v3207_v44  ;;  %v3961_v1 = vunpack.i.h.bf16 %v3959_v52  ;;  %v3960_v5 = vunpack.i.l.bf16 %v3959_v52 }
 0xaf7   : > { %3209 = vmatprep.subr.bf16.mxu1 %v4062_v10 }
 0xaf8   : > { %v2359_v7 = vsel %vm5297_vm5, %v2354_v39, %v3955_v51  ;;  %v3210_v11 = vpack.c.bf16 %v3956_v4, %v3951_v61  ;;  %3165 = vmatpush1.bf16.msra.mxu0 %v3164_v20  ;;  %v2360_v17 = vsel %vm5298_vm10, %v3955_v51, %v3956_v4  ;;  %v2370_v3 = vsel %vm398_vm0, %v5151_v29, %v3960_v5 }
 0xaf9   : > { %v3168_v62 = vpack.c.bf16 %v2359_v7, %v2348_v63  ;;  %v3964_v45 = vpop.permute.xlu1 %3963  ;;  %v3969_v8 = vpop.permute.xlu0 %3968  ;;  %v3166_v12 = vpack.c.bf16 %v2360_v17, %v2349_v55  ;;  %v2371_v22 = vsel %vm398_vm0, %v3960_v5, %v3961_v1 }
 0xafa   : > { %v3966_v13 = vunpack.i.h.bf16 %v3964_v45  ;;  %v3965_v47 = vunpack.i.l.bf16 %v3964_v45  ;;  %3211 = vmatpush1.bf16.msra.mxu1 %v3210_v11  ;;  %v3970_v18 = vunpack.i.l.bf16 %v3969_v8  ;;  %v3971_v27 = vunpack.i.h.bf16 %v3969_v8 }
 0xafb   : > { %3167 = vmatprep.subr.bf16.mxu0 %v3166_v12  ;;  %3212 = vmatprep.subr.bf16.mxu1 %v4062_v10 }
 0xafc   : > { %v2381_v25 = vsel %vm5299_vm6, %v2376_v15, %v3965_v47  ;;  %v3213_v26 = vpack.c.bf16 %v3966_v13, %v3961_v1  ;;  %3169 = vmatpush1.bf16.msra.mxu0 %v3168_v62  ;;  %v2382_v24 = vsel %vm5300_vm14, %v3965_v47, %v3966_v13  ;;  %v2392_v29 = vsel %vm422_vm12, %v5155_v34, %v3970_v18 }
 0xafd   : > { %v3172_v2 = vpack.c.bf16 %v2381_v25, %v2370_v3  ;;  %v3974_v28 = vpop.permute.xlu1 %3973  ;;  %v3170_v59 = vpack.c.bf16 %v2382_v24, %v2371_v22  ;;  %v2393_v33 = vsel %vm422_vm12, %v3970_v18, %v3971_v27  ;;  %v3979_v31 = vpop.permute.xlu0 %3978  ;;  %vm2718_vm12 = vcmask 523264  }
 0xafe   : > { %v3976_v57 = vunpack.i.h.bf16 %v3974_v28  ;;  %v3975_v23 = vunpack.i.l.bf16 %v3974_v28  ;;  %3214 = vmatpush1.bf16.msra.mxu1 %v3213_v26  ;;  %v3981_v34 = vunpack.i.h.bf16 %v3979_v31  ;;  %v3980_v41 = vunpack.i.l.bf16 %v3979_v31 }
 0xaff   : > { %3171 = vmatprep.subr.bf16.mxu0 %v3170_v59  ;;  %3215 = vmatprep.subr.bf16.mxu1 %v4062_v10 }
 0xb00   : > { %v2403_v32 = vsel %vm434_vm15, %v2398_v49, %v3975_v23  ;;  %v3216_v14 = vpack.c.bf16 %v3976_v57, %v3971_v27  ;;  %3173 = vmatpush1.bf16.msra.mxu0 %v3172_v2  ;;  %v2404_v35 = vsel %vm434_vm15, %v3975_v23, %v3976_v57  ;;  %v2487_v48 = vsel %vm519_vm13, %v3980_v41, %v3981_v34 }
 0xb01   : > { %v3176_v39 = vpack.c.bf16 %v2403_v32, %v2392_v29  ;;  %v3174_v40 = vpack.c.bf16 %v2404_v35, %v2393_v33 }
 0xb02   : > { %3217 = vmatpush1.bf16.msra.mxu1 %v3216_v14 }
 0xb03   : > { %3175 = vmatprep.subr.bf16.mxu0 %v3174_v40  ;;  %3218 = vmatprep.subr.bf16.mxu1 %v4062_v10 }
 0xb04   : > { %3177 = vmatpush1.bf16.msra.mxu0 %v3176_v39 }
 0xb41   : > { %v3984_v42 = vpop.permute.xlu1 %3983 }
 0xb42   : > { %v3986_v9 = vunpack.i.h.bf16 %v3984_v42  ;;  %v3985_v21 = vunpack.i.l.bf16 %v3984_v42  ;;  %v3989_v43 = vpop.permute.xlu0 %3988 }
 0xb43   : > { %v3991_v6 = vunpack.i.h.bf16 %v3989_v43  ;;  %v3990_v46 = vunpack.i.l.bf16 %v3989_v43 }
 0xb44   : > { %v3219_v15 = vpack.c.bf16 %v3986_v9, %v3981_v34  ;;  %v2489_v19 = vsel %vm519_vm13, %v3985_v21, %v3986_v9  ;;  %v2802_v9 = vld [vmem:[%s5235_s1 + $0x40] sm:$0xff] }
 0xb45   : > { %v2488_v50 = vsel %vm519_vm13, %v3991_v6, %v3985_v21  ;;  %v2486_v36 = vsel %vm519_vm13, %v3990_v46, %v3980_v41  ;;  %v3994_v30 = vpop.permute.xlu1 %3993  ;;  %v3178_v16 = vpack.c.bf16 %v2489_v19, %v2487_v48 }
 0xb46   : > { %v3180_v53 = vpack.c.bf16 %v2488_v50, %v2486_v36  ;;  %3220 = vmatpush1.bf16.msra.mxu1 %v3219_v15  ;;  %v3996_v49 = vunpack.i.h.bf16 %v3994_v30  ;;  %v3995_v54 = vunpack.i.l.bf16 %v3994_v30 }
 0xb47   : > { %3179 = vmatprep.subr.bf16.mxu0 %v3178_v16  ;;  %3221 = vmatprep.subr.bf16.mxu1 %v4062_v10 }
 0xb48   : > { %3181 = vmatpush1.bf16.msra.mxu0 %v3180_v53  ;;  %v2491_v60 = vsel %vm519_vm13, %v3995_v54, %v3996_v49 }
 0xb49   : > { %v4004_v56 = vpop.permute.xlu1 %4003  ;;  %v3999_v38 = vpop.permute.xlu0 %3998 }
 0xb4a   : > { %v4006_v37 = vunpack.i.h.bf16 %v4004_v56  ;;  %v4005_v58 = vunpack.i.l.bf16 %v4004_v56  ;;  %v4001_v44 = vunpack.i.h.bf16 %v3999_v38  ;;  %v4000_v61 = vunpack.i.l.bf16 %v3999_v38 }
 0xb4c   : > { %v2490_v52 = vsel %vm519_vm13, %v4005_v58, %v3995_v54  ;;  %v3222_v20 = vpack.c.bf16 %v4001_v44, %v3996_v49  ;;  %v2492_v4 = vsel %vm519_vm13, %v4006_v37, %v4000_v61  ;;  %v2493_v51 = vsel %vm519_vm13, %v4000_v61, %v4001_v44 }
 0xb4d   : > { %v3184_v63 = vpack.c.bf16 %v2492_v4, %v2490_v52  ;;  %v4014_v1 = vpop.permute.xlu1 %4013  ;;  %v4009_v5 = vpop.permute.xlu0 %4008  ;;  %v3182_v7 = vpack.c.bf16 %v2493_v51, %v2491_v60 }
 0xb4e   : > { %v4016_v11 = vunpack.i.h.bf16 %v4014_v1  ;;  %v4015_v55 = vunpack.i.l.bf16 %v4014_v1  ;;  %v4011_v17 = vunpack.i.h.bf16 %v4009_v5  ;;  %v4010_v62 = vunpack.i.l.bf16 %v4009_v5  ;;  %3223 = vmatpush1.bf16.msra.mxu1 %v3222_v20 }
 0xb4f   : > { %3183 = vmatprep.subr.bf16.mxu0 %v3182_v7  ;;  %3224 = vmatprep.subr.bf16.mxu1 %v4062_v10 }
 0xb50   : > { %v3225_v45 = vpack.c.bf16 %v4016_v11, %v4011_v17  ;;  %3185 = vmatpush1.bf16.msra.mxu0 %v3184_v63  ;;  %v2495_v8 = vsel %vm519_vm13, %v4010_v62, %v4011_v17  ;;  %v2497_v12 = vsel %vm519_vm13, %v4015_v55, %v4016_v11 }
 0xb51   : > { %v4024_v13 = vpop.permute.xlu1 %4023  ;;  %v4019_v47 = vpop.permute.xlu0 %4018  ;;  %v3186_v3 = vpack.c.bf16 %v2497_v12, %v2495_v8 }
 0xb52   : > { %v4021_v18 = vunpack.i.h.bf16 %v4019_v47  ;;  %v4020_v22 = vunpack.i.l.bf16 %v4019_v47  ;;  %3226 = vmatpush1.bf16.msra.mxu1 %v3225_v45  ;;  %v4026_v25 = vunpack.i.h.bf16 %v4024_v13  ;;  %v4025_v26 = vunpack.i.l.bf16 %v4024_v13 }
 0xb53   : > { %3187 = vmatprep.subr.bf16.mxu0 %v3186_v3  ;;  %3227 = vmatprep.subr.bf16.mxu1 %v4062_v10 }
 0xb54   : > { %v2496_v27 = vsel %vm519_vm13, %v4021_v18, %v4015_v55  ;;  %v2494_v24 = vsel %vm519_vm13, %v4020_v22, %v4010_v62  ;;  %v2499_v14 = vsel %vm519_vm13, %v4025_v26, %v4026_v25 }
 0xb55   : > { %v3188_v2 = vpack.c.bf16 %v2496_v27, %v2494_v24  ;;  %v4034_v28 = vpop.permute.xlu1 %4033  ;;  %v4029_v59 = vpop.permute.xlu0 %4028 }
 0xb56   : > { %v4036_v57 = vunpack.i.h.bf16 %v4034_v28  ;;  %v4035_v23 = vunpack.i.l.bf16 %v4034_v28  ;;  %v4031_v29 = vunpack.i.h.bf16 %v4029_v59  ;;  %v4030_v32 = vunpack.i.l.bf16 %v4029_v59 }
 0xb57   : > { %3189 = vmatpush1.bf16.msra.mxu0 %v3188_v2 }
 0xb58   : > { %v2498_v33 = vsel %vm519_vm13, %v4035_v23, %v4025_v26  ;;  %v3228_v35 = vpack.c.bf16 %v4031_v29, %v4026_v25  ;;  %v2500_v39 = vsel %vm519_vm13, %v4036_v57, %v4030_v32  ;;  %v2501_v10 = vsel %vm519_vm13, %v4030_v32, %v4031_v29 }
 0xb59   : > { %v3192_v40 = vpack.c.bf16 %v2500_v39, %v2498_v33  ;;  %v2485_v31 = vpop.permute.xlu1 %2484  ;;  %v2483_v34 = vpop.permute.xlu0 %2482  ;;  %v3190_v41 = vpack.c.bf16 %v2501_v10, %v2499_v14 }
 0xb5a   : > { %3229 = vmatpush1.bf16.msra.mxu1 %v3228_v35  ;;  %v2503_v42 = vsel %vm519_vm13, %v2483_v34, %v2485_v31 }
 0xb5b   : > { %3191 = vmatprep.subr.bf16.mxu0 %v3190_v41  ;;  %2656 = vmatprep.subr.mxu1 %v4057_v0 }
 0xb5c   : > { %3193 = vmatpush1.bf16.msra.mxu0 %v3192_v40 }
 0xb5d   : > { %v2481_v21 = vpop.permute.xlu0 %2480  ;;  %2585 = vmatprep.subr.mxu0 %v2503_v42 }
 0xb5e   : > { %v2502_v43 = vsel %vm519_vm13, %v2481_v21, %v2483_v34  ;;  %2657 = vmatpush1.msra.mxu1 %v2485_v31 }
 0xb5f   : > { %2673 = vmatmul.mubr.f32.vlgmr.msra.gmra.mrb[8].mxu1 %v2802_v9 }
 0xb60   : > { %2586 = vmatpush1.msra.mxu0 %v2502_v43 }
 0xb61   : > { %2602 = vmatmul.mubr.f32.vlgmr.msra.gmra.mrb[8].mxu0 %v2802_v9 }
 0xb6a   : > { %v2683_v6 = vpop.permute.xlu1 %2682 }
 0xb6e   : > { %v2693_v0 = vpop.permute.xlu0 %2692 }
 0xc32   : > { %v2674_v46 = vpop.f32.mrb[8].mxu1 }
 0xc33   : > { %v2687_v15 = vmul.f32 %v2683_v6, %v2674_v46  ;;  %v2676_v48 = vpop.f32.mrb[9].mxu1 }
 0xc34   : > { %v2603_v19 = vpop.f32.mrb[8].mxu0 }
 0xc35   : > { %v2697_v50 = vadd.f32 %v2693_v0, %v2687_v15  ;;  %v2685_v36 = vmul.f32 %v2683_v6, %v2603_v19  ;;  %v2605_v30 = vpop.f32.mrb[9].mxu0 }
 0xc36   : > { %v2686_v16 = vmul.f32 %v2683_v6, %v2605_v30 }
 0xc37   : > { %v2700_v53 = vsub.f32 0.0, %v2697_v50  ;;  %v2695_v49 = vadd.f32 %v2693_v0, %v2685_v36 }
 0xc38   : > { %v2696_v54 = vadd.f32 %v2693_v0, %v2686_v16 }
 0xc39   : > { %v2705_v56 = vmul.f32 1.442695, %v2700_v53  ;;  %v2698_v38 = vsub.f32 0.0, %v2695_v49 }
 0xc3a   : > { %v2699_v37 = vsub.f32 0.0, %v2696_v54 }
 0xc3b   : > { %4037 = vpow2.f32 %v2705_v56  ;;  %v2701_v58 = vmul.f32 1.442695, %v2698_v38 }
 0xc3c   : > { %v2703_v44 = vmul.f32 1.442695, %v2699_v37 }
 0xc3d   : > { %4039 = vpow2.f32 %v2701_v58 }
 0xc3e   : > { %4041 = vpow2.f32 %v2703_v44 }
 0xc45   : > { %v4038_v61 = vpop.eup %4037 }
 0xc46   : > { %v2709_v60 = vadd.f32 1.0, %v4038_v61 }
 0xc47   : > { %v4040_v52 = vpop.eup %4039 }
 0xc48   : > { %v4042_v20 = vpop.eup %4041  ;;  %4043 = vrcp.f32 %v2709_v60  ;;  %v2707_v4 = vadd.f32 1.0, %v4040_v52 }
 0xc49   : > { %v2708_v51 = vadd.f32 1.0, %v4042_v20 }
 0xc4a   : > { %4045 = vrcp.f32 %v2707_v4 }
 0xc4b   : > { %4047 = vrcp.f32 %v2708_v51 }
 0xc52   : > { %v4044_v63 = vpop.eup %4043 }
 0xc53   : > { %2719 = vst.msk [vmem:[%s224_s9 + $0x10] sm:$0xff] %vm2718_vm12, %v4044_v63 }
 0xc54   : > { %v4046_v1 = vpop.eup %4045 }
 0xc55   : > { %v4048_v5 = vpop.eup %4047  ;;  %2716 = vst [vmem:[%s224_s9] sm:$0xff] %v4046_v1 }
 0xc56   : > { %2717 = vst [vmem:[%s224_s9 + $0x8] sm:$0xff] %v4048_v5 }
 0xc57 PF: > { %s15_s18 = sadd.s32 1, %s4055_s18  }
 0xc58   : > { %p12_p4 = scmp.ge.s32.totalorder %s15_s18, 4  }
 0xc5a   :  { %14 = sbr.rel (!%p12_p4) target bundleno = 1 (0x1), region = 82 }

</bundles_post_ra>
